<compile_context>
chip_gen: v7x
topology: tpu7x:2x2x1
jax: 0.10.0
libtpu: 0.0.40
codegen_flags: <defaults>
</compile_context>

<pallas_src>
import functools

import jax
import jax.numpy as jnp
from jax.experimental import pallas as pl
from jax.experimental.pallas import tpu as pltpu


def _round_up(x, m):
    return ((x + m - 1) // m) * m


def _num_tensorcores():
    """Best-effort TensorCore count per chip (megacore chips -> 2)."""
    try:
        kind = jax.devices()[0].device_kind.lower()
    except Exception:
        return 1
    return 2 if any(t in kind for t in ("v4", "v7")) else 1


def _vmem_capacity_bytes():
    try:
        return int(pltpu.get_tpu_info().vmem_capacity_bytes)
    except Exception:
        return 64 * 1024 * 1024  # conservative fallback (v7x per-TC VMEM)


def _mlp_kernel(*refs, num_hidden_layers):
    """Fused MLP forward for one (bm, in_dim) batch tile.

    x is loaded in its stored dtype (f32) and cast to the weight dtype in-kernel;
    all matmuls run on the MXU with f32 accumulation; activations stay bf16
    between layers to keep vreg/VMEM pressure low.
    """
    if num_hidden_layers > 0:
        x_ref, w1_ref, wh_ref, uw_ref, ub_ref, o_ref = refs
    else:
        x_ref, w1_ref, uw_ref, ub_ref, o_ref = refs
        wh_ref = None

    cd = w1_ref.dtype
    x = x_ref[...].astype(cd)

    # Layer 1: (bm, in_dim) @ (in_dim, hid_p) -> ReLU
    h = jnp.dot(x, w1_ref[...], preferred_element_type=jnp.float32)
    h = jnp.maximum(h, 0.0).astype(cd)

    # L-1 hidden layers (statically unrolled): (bm, hid_p) @ (hid_p, hid_p) -> ReLU
    for i in range(num_hidden_layers):
        h = jnp.dot(h, wh_ref[i], preferred_element_type=jnp.float32)
        h = jnp.maximum(h, 0.0).astype(cd)

    # Final projection with bias (f32): (bm, hid_p) @ (hid_p, out_p) + (1, out_p)
    out = jnp.dot(h, uw_ref[...], preferred_element_type=jnp.float32) + ub_ref[...]
    o_ref[...] = out.astype(o_ref.dtype)


def prepare_params(w1, wh, uw, ub, compute_dtype=jnp.bfloat16):
    """One-time weight pad/cast (hoisted out of the per-call path).

    Zero padding keeps the math exact: padded hidden columns are 0 after the
    bias-free ReLU layers, and padded output columns are sliced off by
    net_forward. The K (in_dim) axis is NOT padded: the kernel block covers the
    full extent, which satisfies the (8,128) rule.
    """
    in_dim, hidden = w1.shape
    out_dim = uw.shape[1]
    hid_p = _round_up(hidden, 128)
    out_p = _round_up(out_dim, 128)

    w1_p = jnp.pad(w1, ((0, 0), (0, hid_p - hidden))).astype(compute_dtype)
    if wh.shape[0] > 0:
        wh_p = jnp.pad(
            wh, ((0, 0), (0, hid_p - hidden), (0, hid_p - hidden))
        ).astype(compute_dtype)
    else:
        wh_p = jnp.zeros((0, hid_p, hid_p), compute_dtype)
    uw_p = jnp.pad(uw, ((0, hid_p - hidden), (0, out_p - out_dim))).astype(compute_dtype)
    ub_p = jnp.pad(ub, ((0, 0), (0, out_p - out_dim))).astype(jnp.float32)
    return w1_p, wh_p, uw_p, ub_p, out_dim


def net_forward(x, w1_p, wh_p, uw_p, ub_p, out_dim, *, block_m=None):
    """out = relu-MLP(x) @ Uw + Ub, matching Net.forward = U(v(x)).

    Takes weights already padded/cast by prepare_params (reuse across calls).
    x is streamed unpadded (only the batch axis is padded to a multiple of the
    batch tile when needed) and the result is sliced back to (B, out_dim).
    """
    B, in_dim = x.shape
    assert w1_p.shape[0] == in_dim
    hid_p = w1_p.shape[1]
    out_p = uw_p.shape[1]
    num_hidden_layers = wh_p.shape[0]  # = L - 1

    # Per-generation batch tile: one big step on single-TC chips, >= num_TC
    # "parallel" steps on megacore chips. bf16 packed tiles want bm % 16 == 0.
    num_tc = _num_tensorcores()
    if block_m is None:
        if num_tc >= 2:
            bm = min(256, _round_up(pl.cdiv(B, num_tc), 16))
        else:
            bm = min(256, _round_up(B, 16))
    else:
        bm = block_m
    bm = max(16, _round_up(bm, 16))
    B_p = _round_up(B, bm)

    x_in = x if B_p == B else jnp.pad(x, ((0, B_p - B), (0, 0)))

    # VMEM budget: weights are single-buffered (Buffered(1)) so counted once;
    # x/out tiles double-buffered; activation headroom; 1.5x safety margin;
    # cap at 75% of per-TC physical VMEM (<=48 MiB on v7x, more on v5e/v6e).
    x_bpe = jnp.dtype(x.dtype).itemsize
    w_bpe = jnp.dtype(w1_p.dtype).itemsize
    weight_bytes = (in_dim * hid_p + num_hidden_layers * hid_p * hid_p
                    + hid_p * out_p) * w_bpe + out_p * 4
    stream_bytes = 2 * bm * in_dim * x_bpe + 2 * bm * out_p * 4
    act_bytes = bm * hid_p * (4 + w_bpe) + bm * in_dim * w_bpe
    est = weight_bytes + stream_bytes + act_bytes
    vmem_cap = _vmem_capacity_bytes()
    vmem_limit = int(min(max(32 * 1024 * 1024, int(1.5 * est)),
                         int(0.75 * vmem_cap)))

    flops = 2 * B_p * (in_dim * hid_p + num_hidden_layers * hid_p * hid_p
                       + hid_p * out_p)
    bytes_accessed = weight_bytes + B_p * in_dim * x_bpe + B_p * out_p * 4
    cost = pl.CostEstimate(flops=flops, transcendentals=0,
                           bytes_accessed=bytes_accessed)

    kernel = functools.partial(_mlp_kernel, num_hidden_layers=num_hidden_layers)

    # Weights/bias have a constant block index across the batch grid -> one
    # VMEM buffer each (no double buffering).
    # TODO(synk): once the resident Wh stack ((L-1)*hid_p^2*2B) approaches the
    # per-TC VMEM budget (hidden >~ 1024 on v7x with L=10), stream Wh one layer
    # at a time via an extra "arbitrary" grid axis or a manual make_async_copy
    # ping-pong instead of keeping the whole stack resident.
    wmode = pl.Buffered(1)

    in_specs = [
        pl.BlockSpec((bm, in_dim), lambda i: (i, 0)),
        pl.BlockSpec((in_dim, hid_p), lambda i: (0, 0), pipeline_mode=wmode),
    ]
    args = [x_in, w1_p]
    if num_hidden_layers > 0:
        in_specs.append(pl.BlockSpec((num_hidden_layers, hid_p, hid_p),
                                     lambda i: (0, 0, 0), pipeline_mode=wmode))
        args.append(wh_p)
    in_specs += [
        pl.BlockSpec((hid_p, out_p), lambda i: (0, 0), pipeline_mode=wmode),
        pl.BlockSpec((1, out_p), lambda i: (0, 0), pipeline_mode=wmode),
    ]
    args += [uw_p, ub_p]

    out_padded = pl.pallas_call(
        kernel,
        out_shape=jax.ShapeDtypeStruct((B_p, out_p), jnp.float32),
        grid_spec=pltpu.PrefetchScalarGridSpec(
            num_scalar_prefetch=0,
            grid=(B_p // bm,),
            in_specs=in_specs,
            out_specs=pl.BlockSpec((bm, out_p), lambda i: (i, 0)),
        ),
        compiler_params=pltpu.CompilerParams(
            dimension_semantics=("parallel",),
            vmem_limit_bytes=vmem_limit,
        ),
        cost_estimate=cost,
    )(*args)

    return out_padded[:B, :out_dim]


def init_params(key, in_dim, hidden, out_dim, L, dtype=jnp.float32):
    """PyTorch nn.Linear-style init: U(-1/sqrt(fan_in), 1/sqrt(fan_in))."""
    keys = jax.random.split(key, L + 2)

    def lin_w(k, fan_in, fan_out):
        bound = 1.0 / float(fan_in) ** 0.5
        # stored pre-transposed: (fan_in, fan_out) so forward is x @ W
        return jax.random.uniform(k, (fan_in, fan_out), dtype, -bound, bound)

    w1 = lin_w(keys[0], in_dim, hidden)                        # v layer 1 (no bias)
    if L > 1:
        wh = jnp.stack([lin_w(keys[1 + i], hidden, hidden)     # v layers 2..L (no bias)
                        for i in range(L - 1)], axis=0)
    else:
        wh = jnp.zeros((0, hidden, hidden), dtype)
    uw = lin_w(keys[L], hidden, out_dim)                       # U weight
    ub_bound = 1.0 / float(hidden) ** 0.5
    ub = jax.random.uniform(keys[L + 1], (1, out_dim), dtype, -ub_bound, ub_bound)
    return w1, wh, uw, ub


def reference_forward(x, w1, wh, uw, ub, compute_dtype=jnp.bfloat16):
    """Pure-JAX reference with the same bf16-operand / f32-accumulate policy."""
    cd = compute_dtype
    h = jnp.maximum(
        jnp.dot(x.astype(cd), w1.astype(cd), preferred_element_type=jnp.float32), 0.0)
    for i in range(wh.shape[0]):
        h = jnp.maximum(
            jnp.dot(h.astype(cd), wh[i].astype(cd),
                    preferred_element_type=jnp.float32), 0.0)
    return jnp.dot(h.astype(cd), uw.astype(cd),
                   preferred_element_type=jnp.float32) + ub


if __name__ == "__main__":
    # Module defaults: in_dim=784, hidden_dim=128, out_dim=64, L=10.
    B, in_dim, hidden, out_dim, L = 256, 784, 128, 64, 10

    key = jax.random.PRNGKey(0)
    k_x, k_p = jax.random.split(key)
    x = jax.random.normal(k_x, (B, in_dim), jnp.float32)
    w1, wh, uw, ub = init_params(k_p, in_dim, hidden, out_dim, L)

    # One-time weight pad/cast, reused across every forward call.
    w1_p, wh_p, uw_p, ub_p, odim = prepare_params(w1, wh, uw, ub)

    fwd = jax.jit(net_forward, static_argnums=(5,))
    out = jax.block_until_ready(fwd(x, w1_p, wh_p, uw_p, ub_p, odim))

    ref = reference_forward(x, w1, wh, uw, ub)
    assert out.shape == (B, out_dim)
    assert jnp.allclose(out, ref, atol=1e-2, rtol=1e-2), "mismatch vs reference"

    print("KERNEL_OK")
</pallas_src>

<mosaic_0001>
module attributes {stable_mosaic.version = 11 : i64} {
  func.func @_mlp_kernel(%arg0: i32, %arg1: memref<256x784xf32, #tpu.memory_space<vmem>>, %arg2: memref<784x128xbf16, #tpu.memory_space<vmem>>, %arg3: memref<9x128x128xbf16, #tpu.memory_space<vmem>>, %arg4: memref<128x128xbf16, #tpu.memory_space<vmem>>, %arg5: memref<1x128xf32, #tpu.memory_space<vmem>>, %arg6: memref<256x128xf32, #tpu.memory_space<vmem>>) attributes {dimension_semantics = [#tpu.dimension_semantics<parallel>], iteration_bounds = array<i64: 1>, scalar_prefetch = 0 : i64, scratch_operands = 0 : i64, tpu.core_type = #tpu.core_type<tc>, window_params = [{transform_indices = @transform_0, window_bounds = array<i64: 256, 784>}, {pipeline_mode = #tpu.pipeline_mode<synchronous>, transform_indices = @transform_1, window_bounds = array<i64: 784, 128>}, {pipeline_mode = #tpu.pipeline_mode<synchronous>, transform_indices = @transform_2, window_bounds = array<i64: 9, 128, 128>}, {pipeline_mode = #tpu.pipeline_mode<synchronous>, transform_indices = @transform_3, window_bounds = array<i64: 128, 128>}, {pipeline_mode = #tpu.pipeline_mode<synchronous>, transform_indices = @transform_4, window_bounds = array<i64: 1, 128>}, {transform_indices = @transform_5, window_bounds = array<i64: 256, 128>}]} {
    %c0 = arith.constant 0 : index
    %c0_0 = arith.constant 0 : index
    %0 = vector.load %arg1[%c0, %c0_0] : memref<256x784xf32, #tpu.memory_space<vmem>>, vector<256x784xf32>
    %1 = arith.truncf %0 : vector<256x784xf32> to vector<256x784xbf16>
    %c0_1 = arith.constant 0 : index
    %c0_2 = arith.constant 0 : index
    %2 = vector.load %arg2[%c0_1, %c0_2] : memref<784x128xbf16, #tpu.memory_space<vmem>>, vector<784x128xbf16>
    %cst = arith.constant dense<0.000000e+00> : vector<256x128xf32>
    %3 = tpu.matmul %1, %2, %cst {dimension_numbers = #tpu.dot_dimension_numbers<[1], [0], [0], [1], [0, 0, 1, 1], [], []>} : vector<256x784xbf16>, vector<784x128xbf16>, vector<256x128xf32> -> vector<256x128xf32>
    %cst_3 = arith.constant 0.000000e+00 : f32
    %4 = vector.broadcast %cst_3 : f32 to vector<256x128xf32>
    %5 = arith.maximumf %3, %4 : vector<256x128xf32>
    %6 = arith.truncf %5 : vector<256x128xf32> to vector<256x128xbf16>
    %c0_4 = arith.constant 0 : index
    %c0_5 = arith.constant 0 : index
    %c0_6 = arith.constant 0 : index
    %7 = vector.load %arg3[%c0_4, %c0_5, %c0_6] : memref<9x128x128xbf16, #tpu.memory_space<vmem>>, vector<1x128x128xbf16>
    %8 = vector.shape_cast %7 : vector<1x128x128xbf16> to vector<128x128xbf16>
    %cst_7 = arith.constant dense<0.000000e+00> : vector<256x128xf32>
    %9 = tpu.matmul %6, %8, %cst_7 {dimension_numbers = #tpu.dot_dimension_numbers<[1], [0], [0], [1], [0, 0, 1, 1], [], []>} : vector<256x128xbf16>, vector<128x128xbf16>, vector<256x128xf32> -> vector<256x128xf32>
    %cst_8 = arith.constant 0.000000e+00 : f32
    %10 = vector.broadcast %cst_8 : f32 to vector<256x128xf32>
    %11 = arith.maximumf %9, %10 : vector<256x128xf32>
    %12 = arith.truncf %11 : vector<256x128xf32> to vector<256x128xbf16>
    %c1 = arith.constant 1 : index
    %c0_9 = arith.constant 0 : index
    %c0_10 = arith.constant 0 : index
    %13 = vector.load %arg3[%c1, %c0_9, %c0_10] : memref<9x128x128xbf16, #tpu.memory_space<vmem>>, vector<1x128x128xbf16>
    %14 = vector.shape_cast %13 : vector<1x128x128xbf16> to vector<128x128xbf16>
    %cst_11 = arith.constant dense<0.000000e+00> : vector<256x128xf32>
    %15 = tpu.matmul %12, %14, %cst_11 {dimension_numbers = #tpu.dot_dimension_numbers<[1], [0], [0], [1], [0, 0, 1, 1], [], []>} : vector<256x128xbf16>, vector<128x128xbf16>, vector<256x128xf32> -> vector<256x128xf32>
    %cst_12 = arith.constant 0.000000e+00 : f32
    %16 = vector.broadcast %cst_12 : f32 to vector<256x128xf32>
    %17 = arith.maximumf %15, %16 : vector<256x128xf32>
    %18 = arith.truncf %17 : vector<256x128xf32> to vector<256x128xbf16>
    %c2 = arith.constant 2 : index
    %c0_13 = arith.constant 0 : index
    %c0_14 = arith.constant 0 : index
    %19 = vector.load %arg3[%c2, %c0_13, %c0_14] : memref<9x128x128xbf16, #tpu.memory_space<vmem>>, vector<1x128x128xbf16>
    %20 = vector.shape_cast %19 : vector<1x128x128xbf16> to vector<128x128xbf16>
    %cst_15 = arith.constant dense<0.000000e+00> : vector<256x128xf32>
    %21 = tpu.matmul %18, %20, %cst_15 {dimension_numbers = #tpu.dot_dimension_numbers<[1], [0], [0], [1], [0, 0, 1, 1], [], []>} : vector<256x128xbf16>, vector<128x128xbf16>, vector<256x128xf32> -> vector<256x128xf32>
    %cst_16 = arith.constant 0.000000e+00 : f32
    %22 = vector.broadcast %cst_16 : f32 to vector<256x128xf32>
    %23 = arith.maximumf %21, %22 : vector<256x128xf32>
    %24 = arith.truncf %23 : vector<256x128xf32> to vector<256x128xbf16>
    %c3 = arith.constant 3 : index
    %c0_17 = arith.constant 0 : index
    %c0_18 = arith.constant 0 : index
    %25 = vector.load %arg3[%c3, %c0_17, %c0_18] : memref<9x128x128xbf16, #tpu.memory_space<vmem>>, vector<1x128x128xbf16>
    %26 = vector.shape_cast %25 : vector<1x128x128xbf16> to vector<128x128xbf16>
    %cst_19 = arith.constant dense<0.000000e+00> : vector<256x128xf32>
    %27 = tpu.matmul %24, %26, %cst_19 {dimension_numbers = #tpu.dot_dimension_numbers<[1], [0], [0], [1], [0, 0, 1, 1], [], []>} : vector<256x128xbf16>, vector<128x128xbf16>, vector<256x128xf32> -> vector<256x128xf32>
    %cst_20 = arith.constant 0.000000e+00 : f32
    %28 = vector.broadcast %cst_20 : f32 to vector<256x128xf32>
    %29 = arith.maximumf %27, %28 : vector<256x128xf32>
    %30 = arith.truncf %29 : vector<256x128xf32> to vector<256x128xbf16>
    %c4 = arith.constant 4 : index
    %c0_21 = arith.constant 0 : index
    %c0_22 = arith.constant 0 : index
    %31 = vector.load %arg3[%c4, %c0_21, %c0_22] : memref<9x128x128xbf16, #tpu.memory_space<vmem>>, vector<1x128x128xbf16>
    %32 = vector.shape_cast %31 : vector<1x128x128xbf16> to vector<128x128xbf16>
    %cst_23 = arith.constant dense<0.000000e+00> : vector<256x128xf32>
    %33 = tpu.matmul %30, %32, %cst_23 {dimension_numbers = #tpu.dot_dimension_numbers<[1], [0], [0], [1], [0, 0, 1, 1], [], []>} : vector<256x128xbf16>, vector<128x128xbf16>, vector<256x128xf32> -> vector<256x128xf32>
    %cst_24 = arith.constant 0.000000e+00 : f32
    %34 = vector.broadcast %cst_24 : f32 to vector<256x128xf32>
    %35 = arith.maximumf %33, %34 : vector<256x128xf32>
    %36 = arith.truncf %35 : vector<256x128xf32> to vector<256x128xbf16>
    %c5 = arith.constant 5 : index
    %c0_25 = arith.constant 0 : index
    %c0_26 = arith.constant 0 : index
    %37 = vector.load %arg3[%c5, %c0_25, %c0_26] : memref<9x128x128xbf16, #tpu.memory_space<vmem>>, vector<1x128x128xbf16>
    %38 = vector.shape_cast %37 : vector<1x128x128xbf16> to vector<128x128xbf16>
    %cst_27 = arith.constant dense<0.000000e+00> : vector<256x128xf32>
    %39 = tpu.matmul %36, %38, %cst_27 {dimension_numbers = #tpu.dot_dimension_numbers<[1], [0], [0], [1], [0, 0, 1, 1], [], []>} : vector<256x128xbf16>, vector<128x128xbf16>, vector<256x128xf32> -> vector<256x128xf32>
    %cst_28 = arith.constant 0.000000e+00 : f32
    %40 = vector.broadcast %cst_28 : f32 to vector<256x128xf32>
    %41 = arith.maximumf %39, %40 : vector<256x128xf32>
    %42 = arith.truncf %41 : vector<256x128xf32> to vector<256x128xbf16>
    %c6 = arith.constant 6 : index
    %c0_29 = arith.constant 0 : index
    %c0_30 = arith.constant 0 : index
    %43 = vector.load %arg3[%c6, %c0_29, %c0_30] : memref<9x128x128xbf16, #tpu.memory_space<vmem>>, vector<1x128x128xbf16>
    %44 = vector.shape_cast %43 : vector<1x128x128xbf16> to vector<128x128xbf16>
    %cst_31 = arith.constant dense<0.000000e+00> : vector<256x128xf32>
    %45 = tpu.matmul %42, %44, %cst_31 {dimension_numbers = #tpu.dot_dimension_numbers<[1], [0], [0], [1], [0, 0, 1, 1], [], []>} : vector<256x128xbf16>, vector<128x128xbf16>, vector<256x128xf32> -> vector<256x128xf32>
    %cst_32 = arith.constant 0.000000e+00 : f32
    %46 = vector.broadcast %cst_32 : f32 to vector<256x128xf32>
    %47 = arith.maximumf %45, %46 : vector<256x128xf32>
    %48 = arith.truncf %47 : vector<256x128xf32> to vector<256x128xbf16>
    %c7 = arith.constant 7 : index
    %c0_33 = arith.constant 0 : index
    %c0_34 = arith.constant 0 : index
    %49 = vector.load %arg3[%c7, %c0_33, %c0_34] : memref<9x128x128xbf16, #tpu.memory_space<vmem>>, vector<1x128x128xbf16>
    %50 = vector.shape_cast %49 : vector<1x128x128xbf16> to vector<128x128xbf16>
    %cst_35 = arith.constant dense<0.000000e+00> : vector<256x128xf32>
    %51 = tpu.matmul %48, %50, %cst_35 {dimension_numbers = #tpu.dot_dimension_numbers<[1], [0], [0], [1], [0, 0, 1, 1], [], []>} : vector<256x128xbf16>, vector<128x128xbf16>, vector<256x128xf32> -> vector<256x128xf32>
    %cst_36 = arith.constant 0.000000e+00 : f32
    %52 = vector.broadcast %cst_36 : f32 to vector<256x128xf32>
    %53 = arith.maximumf %51, %52 : vector<256x128xf32>
    %54 = arith.truncf %53 : vector<256x128xf32> to vector<256x128xbf16>
    %c8 = arith.constant 8 : index
    %c0_37 = arith.constant 0 : index
    %c0_38 = arith.constant 0 : index
    %55 = vector.load %arg3[%c8, %c0_37, %c0_38] : memref<9x128x128xbf16, #tpu.memory_space<vmem>>, vector<1x128x128xbf16>
    %56 = vector.shape_cast %55 : vector<1x128x128xbf16> to vector<128x128xbf16>
    %cst_39 = arith.constant dense<0.000000e+00> : vector<256x128xf32>
    %57 = tpu.matmul %54, %56, %cst_39 {dimension_numbers = #tpu.dot_dimension_numbers<[1], [0], [0], [1], [0, 0, 1, 1], [], []>} : vector<256x128xbf16>, vector<128x128xbf16>, vector<256x128xf32> -> vector<256x128xf32>
    %cst_40 = arith.constant 0.000000e+00 : f32
    %58 = vector.broadcast %cst_40 : f32 to vector<256x128xf32>
    %59 = arith.maximumf %57, %58 : vector<256x128xf32>
    %60 = arith.truncf %59 : vector<256x128xf32> to vector<256x128xbf16>
    %c0_41 = arith.constant 0 : index
    %c0_42 = arith.constant 0 : index
    %61 = vector.load %arg4[%c0_41, %c0_42] : memref<128x128xbf16, #tpu.memory_space<vmem>>, vector<128x128xbf16>
    %cst_43 = arith.constant dense<0.000000e+00> : vector<256x128xf32>
    %62 = tpu.matmul %60, %61, %cst_43 {dimension_numbers = #tpu.dot_dimension_numbers<[1], [0], [0], [1], [0, 0, 1, 1], [], []>} : vector<256x128xbf16>, vector<128x128xbf16>, vector<256x128xf32> -> vector<256x128xf32>
    %c0_44 = arith.constant 0 : index
    %c0_45 = arith.constant 0 : index
    %63 = vector.load %arg5[%c0_44, %c0_45] : memref<1x128xf32, #tpu.memory_space<vmem>>, vector<1x128xf32>
    %64 = vector.broadcast %63 : vector<1x128xf32> to vector<256x128xf32>
    %65 = arith.addf %62, %64 : vector<256x128xf32>
    %c0_46 = arith.constant 0 : index
    %c0_47 = arith.constant 0 : index
    %66 = vector.load %arg6[%c0_46, %c0_47] : memref<256x128xf32, #tpu.memory_space<vmem>>, vector<256x128xf32>
    tpu.vector_store %arg6[%c0_46, %c0_47], %65 {strides = array<i32>} : memref<256x128xf32, #tpu.memory_space<vmem>>, vector<256x128xf32>,
    return
  }
  func.func @transform_0(%arg0: i32) -> (i32, i32) {
    %c0_i32 = arith.constant 0 : i32
    %c0_i32_0 = arith.constant 0 : i32
    return %arg0, %c0_i32 : i32, i32
  }
  func.func @transform_1(%arg0: i32) -> (i32, i32) {
    %c0_i32 = arith.constant 0 : i32
    %c0_i32_0 = arith.constant 0 : i32
    %c0_i32_1 = arith.constant 0 : i32
    return %c0_i32, %c0_i32_0 : i32, i32
  }
  func.func @transform_2(%arg0: i32) -> (i32, i32, i32) {
    %c0_i32 = arith.constant 0 : i32
    %c0_i32_0 = arith.constant 0 : i32
    %c0_i32_1 = arith.constant 0 : i32
    %c0_i32_2 = arith.constant 0 : i32
    return %c0_i32, %c0_i32_0, %c0_i32_1 : i32, i32, i32
  }
  func.func @transform_3(%arg0: i32) -> (i32, i32) {
    %c0_i32 = arith.constant 0 : i32
    %c0_i32_0 = arith.constant 0 : i32
    %c0_i32_1 = arith.constant 0 : i32
    return %c0_i32, %c0_i32_0 : i32, i32
  }
  func.func @transform_4(%arg0: i32) -> (i32, i32) {
    %c0_i32 = arith.constant 0 : i32
    %c0_i32_0 = arith.constant 0 : i32
    %c0_i32_1 = arith.constant 0 : i32
    return %c0_i32, %c0_i32_0 : i32, i32
  }
  func.func @transform_5(%arg0: i32) -> (i32, i32) {
    %c0_i32 = arith.constant 0 : i32
    %c0_i32_0 = arith.constant 0 : i32
    return %arg0, %c0_i32 : i32, i32
  }
}

</mosaic_0001>

<bundles_post_ra>
// kernel: net_forward.1
= control target key start
LH: loop header
LB: loop body
LE: loop exit
PB: predicated region body
PF: predicated region fallthrough
CT: control target
= control target key end

     0   :  { %vm749_vm0 = vcmask 130048   ;;  %s7209_s1 = inlined_call_operand.vmem [shape: bf16[784,128], index: 1, kind: input, shape index: {}]   ;;  %s7210_s0 = inlined_call_operand.vmem [shape: f32[256,784], index: 0, kind: input, shape index: {}]   ;;  %s7211_s2 = inlined_call_operand.vmem [shape: bf16[9,128,128], index: 2, kind: input, shape index: {}]   ;;  %s7212_s3 = inlined_call_operand.vmem [shape: bf16[128,128], index: 3, kind: input, shape index: {}]   ;;  %s7213_s4 = inlined_call_operand.vmem [shape: f32[1,128], index: 4, kind: input, shape index: {}]   ;;  %s7214_s5 = inlined_call_operand.vmem [shape: f32[256,128], index: 5, kind: output, shape index: {}]  }
   0x1   :  { %v5620_v0 = vld [vmem:[%s7209_s1 + $0x40] sm:$0xff]   ;;  %v5622_v2 = vld [vmem:[%s7209_s1 + $0x48] sm:$0xff]   ;;  %v5624_v4 = vld [vmem:[%s7209_s1 + $0x50] sm:$0xff]  }
   0x2   :  { %v5621_v1 = vld [vmem:[%s7209_s1] sm:$0xff]   ;;  %4497 = vmatprep.subr.bf16.mxu0 %v5620_v0  ;;  %5604 = vmatprep.subr.bf16.mxu1 %v5620_v0  ;;  %v5623_v3 = vld [vmem:[%s7209_s1 + $0x8] sm:$0xff]   ;;  %v5625_v5 = vld [vmem:[%s7209_s1 + $0x10] sm:$0xff]  }
   0x3   :  { %4498 = vmatpush3.bf16.msra.mxu0 %v5621_v1  ;;  %5612 = vmatpush3.bf16.msra.mxu1 %v5621_v1  ;;  %v5626_v6 = vld [vmem:[%s7209_s1 + $0x58] sm:$0xff]   ;;  %v5628_v8 = vld [vmem:[%s7209_s1 + $0x60] sm:$0xff]   ;;  %v5630_v10 = vld [vmem:[%s7209_s1 + $0x68] sm:$0xff]  }
   0x4   :  { %4499 = vmatprep.subr.bf16.mxu0 %v5622_v2  ;;  %5605 = vmatprep.subr.bf16.mxu1 %v5622_v2  ;;  %v5627_v7 = vld [vmem:[%s7209_s1 + $0x18] sm:$0xff]   ;;  %v5629_v9 = vld [vmem:[%s7209_s1 + $0x20] sm:$0xff]   ;;  %v22_v11 = vld [vmem:[%s7210_s0 + $0x8] sm:$0xff] }
   0x5   :  { %v29_v12 = vld [vmem:[%s7210_s0 + $0x40] sm:$0xff]  ;;  %v190_v13 = vld [vmem:[%s7210_s0 + $0x548] sm:$0xff]  ;;  %v5632_v18 = vld [vmem:[%s7209_s1 + $0x70] sm:$0xff]  }
   0x6   :  { %v246_v14 = vpack.c.bf16 %v29_v12, %v22_v11  ;;  %v197_v15 = vld [vmem:[%s7210_s0 + $0x580] sm:$0xff]  ;;  %v5631_v17 = vld [vmem:[%s7209_s1 + $0x28] sm:$0xff]   ;;  %v5633_v19 = vld [vmem:[%s7209_s1 + $0x30] sm:$0xff]  }
   0x7   :  { %4500 = vmatpush3.bf16.msra.mxu0 %v5623_v3  ;;  %5613 = vmatpush3.bf16.msra.mxu1 %v5623_v3  ;;  %v330_v16 = vpack.c.bf16 %v197_v15, %v190_v13  ;;  %v5634_v20 = vld [vmem:[%s7209_s1 + $0x78] sm:$0xff]   ;;  %v21_v22 = vld [vmem:[%s7210_s0] sm:$0xff]  ;;  %v43_v29 = vld [vmem:[%s7210_s0 + $0xb0] sm:$0xff] }
   0x8   :  { %4501 = vmatprep.subr.bf16.mxu0 %v5624_v4  ;;  %5606 = vmatprep.subr.bf16.mxu1 %v5624_v4  ;;  %v5635_v21 = vld [vmem:[%s7209_s1 + $0x38] sm:$0xff]   ;;  %v189_v24 = vld [vmem:[%s7210_s0 + $0x540] sm:$0xff]  ;;  %v211_v34 = vld [vmem:[%s7210_s0 + $0x5f0] sm:$0xff] }
   0x9   :  { %830 = vmatprep.mubr.bf16.mxu0 %v246_v14  ;;  %926 = vmatprep.mubr.bf16.mxu1 %v330_v16  ;;  %v28_v23 = vld [vmem:[%s7210_s0 + $0x38] sm:$0xff]  ;;  %v5636_v26 = vld [vmem:[%s7209_s1 + $0xc0] sm:$0xff]   ;;  %v5640_v36 = vld [vmem:[%s7209_s1 + $0xc8] sm:$0xff]  }
   0xa   :  { %v196_v25 = vld [vmem:[%s7210_s0 + $0x578] sm:$0xff]  ;;  %v5637_v27 = vld [vmem:[%s7209_s1 + $0x140] sm:$0xff]   ;;  %v245_v32 = vpack.c.bf16 %v28_v23, %v21_v22  ;;  %v5641_v38 = vld [vmem:[%s7209_s1 + $0x88] sm:$0xff]  }
   0xb   :  { %4502 = vmatpush3.bf16.msra.mxu0 %v5625_v5  ;;  %5614 = vmatpush3.bf16.msra.mxu1 %v5625_v5  ;;  %v36_v28 = vld [vmem:[%s7210_s0 + $0x78] sm:$0xff]  ;;  %v5638_v30 = vld [vmem:[%s7209_s1 + $0x80] sm:$0xff]   ;;  %v329_v33 = vpack.c.bf16 %v196_v25, %v189_v24  ;;  %v35_v40 = vld [vmem:[%s7210_s0 + $0x70] sm:$0xff] }
   0xc   :  { %4503 = vmatprep.subr.bf16.mxu0 %v5626_v6  ;;  %5607 = vmatprep.subr.bf16.mxu1 %v5626_v6  ;;  %v204_v31 = vld [vmem:[%s7210_s0 + $0x5b8] sm:$0xff]  ;;  %v5639_v35 = vld [vmem:[%s7209_s1 + $0x100] sm:$0xff]   ;;  %v253_v37 = vpack.c.bf16 %v43_v29, %v36_v28  ;;  %v42_v41 = vld [vmem:[%s7210_s0 + $0xa8] sm:$0xff] }
   0xd   :  { %v337_v39 = vpack.c.bf16 %v211_v34, %v204_v31  ;;  %v5645_v42 = vld [vmem:[%s7209_s1 + $0x148] sm:$0xff]   ;;  %v203_v43 = vld [vmem:[%s7210_s0 + $0x5b0] sm:$0xff]  ;;  %v57_v48 = vld [vmem:[%s7210_s0 + $0x120] sm:$0xff]  ;;  %v252_v51 = vpack.c.bf16 %v42_v41, %v35_v40 }
   0xe   :  { %v210_v44 = vld [vmem:[%s7210_s0 + $0x5e8] sm:$0xff]  ;;  %v5642_v45 = vld [vmem:[%s7209_s1 + $0xd0] sm:$0xff]   ;;  %v225_v50 = vld [vmem:[%s7210_s0 + $0x660] sm:$0xff] }
   0xf   :  { %4504 = vmatpush3.bf16.msra.mxu0 %v5627_v7  ;;  %5615 = vmatpush3.bf16.msra.mxu1 %v5627_v7  ;;  %v5647_v46 = vld [vmem:[%s7209_s1 + $0x108] sm:$0xff]   ;;  %v336_v52 = vpack.c.bf16 %v210_v44, %v203_v43  ;;  %v5643_v53 = vld [vmem:[%s7209_s1 + $0x90] sm:$0xff]   ;;  %v5644_v55 = vld [vmem:[%s7209_s1 + $0xd8] sm:$0xff]  }
  0x10   :  { %4505 = vmatprep.subr.bf16.mxu0 %v5628_v8  ;;  %5608 = vmatprep.subr.bf16.mxu1 %v5628_v8  ;;  %v50_v47 = vld [vmem:[%s7210_s0 + $0xe8] sm:$0xff]  ;;  %v5646_v57 = vld [vmem:[%s7209_s1 + $0x98] sm:$0xff]   ;;  %v49_v58 = vld [vmem:[%s7210_s0 + $0xe0] sm:$0xff] }
  0x11   :  { %v218_v49 = vld [vmem:[%s7210_s0 + $0x628] sm:$0xff]  ;;  %v260_v54 = vpack.c.bf16 %v57_v48, %v50_v47  ;;  %v56_v59 = vld [vmem:[%s7210_s0 + $0x118] sm:$0xff]  ;;  %v217_v60 = vld [vmem:[%s7210_s0 + $0x620] sm:$0xff] }
  0x12   :  { %v344_v56 = vpack.c.bf16 %v225_v50, %v218_v49  ;;  %v224_v61 = vld [vmem:[%s7210_s0 + $0x658] sm:$0xff]  ;;  %v5648_v62 = vld [vmem:[%s7209_s1 + $0xe0] sm:$0xff]   ;;  %v71_v0 = vld [vmem:[%s7210_s0 + $0x190] sm:$0xff]  ;;  %v259_v4 = vpack.c.bf16 %v56_v59, %v49_v58 }
  0x13   :  { %4506 = vmatpush3.bf16.msra.mxu0 %v5629_v9  ;;  %5616 = vmatpush3.bf16.msra.mxu1 %v5629_v9  ;;  %v64_v63 = vld [vmem:[%s7210_s0 + $0x158] sm:$0xff]  ;;  %v5653_v2 = vld [vmem:[%s7209_s1 + $0x150] sm:$0xff]   ;;  %v343_v5 = vpack.c.bf16 %v224_v61, %v217_v60  ;;  %v5649_v7 = vld [vmem:[%s7209_s1 + $0xa0] sm:$0xff]  }
  0x14   :  { %4507 = vmatprep.subr.bf16.mxu0 %v5630_v10  ;;  %5609 = vmatprep.subr.bf16.mxu1 %v5630_v10  ;;  %v232_v1 = vld [vmem:[%s7210_s0 + $0x698] sm:$0xff]  ;;  %v239_v3 = vld [vmem:[%s7210_s0 + $0x6d0] sm:$0xff]  ;;  %v267_v8 = vpack.c.bf16 %v71_v0, %v64_v63  ;;  %v5650_v9 = vld [vmem:[%s7209_s1 + $0xe8] sm:$0xff]  }
  0x15   :  { %v5655_v6 = vld [vmem:[%s7209_s1 + $0x110] sm:$0xff]   ;;  %v351_v10 = vpack.c.bf16 %v239_v3, %v232_v1  ;;  %v5651_v11 = vld [vmem:[%s7209_s1 + $0xa8] sm:$0xff]   ;;  %v5660_v24 = vld [vmem:[%s7209_s1 + $0x118] sm:$0xff]  }
  0x16   :  { %v63_v12 = vld [vmem:[%s7210_s0 + $0x150] sm:$0xff]  ;;  %v70_v13 = vld [vmem:[%s7210_s0 + $0x188] sm:$0xff]  ;;  %v5657_v29 = vld [vmem:[%s7209_s1 + $0xb8] sm:$0xff]  }
  0x17   :  { %4508 = vmatpush3.bf16.msra.mxu0 %v5631_v17  ;;  %5617 = vmatpush3.bf16.msra.mxu1 %v5631_v17  ;;  %v231_v14 = vld [vmem:[%s7210_s0 + $0x690] sm:$0xff]  ;;  %v238_v15 = vld [vmem:[%s7210_s0 + $0x6c8] sm:$0xff]  ;;  %v266_v22 = vpack.c.bf16 %v70_v13, %v63_v12  ;;  %v84_v31 = vld [vmem:[%s7210_s0 + $0x1f8] sm:$0xff] }
  0x18   :  { %4509 = vmatprep.subr.bf16.mxu0 %v5632_v18  ;;  %5610 = vmatprep.subr.bf16.mxu1 %v5632_v18  ;;  %v5652_v16 = vld [vmem:[%s7209_s1 + $0xf0] sm:$0xff]   ;;  %v78_v17 = vld [vmem:[%s7210_s0 + $0x1c8] sm:$0xff]  ;;  %v85_v18 = vld [vmem:[%s7210_s0 + $0x200] sm:$0xff]  ;;  %v350_v23 = vpack.c.bf16 %v238_v15, %v231_v14 }
  0x19   :  { %v5654_v25 = vld [vmem:[%s7209_s1 + $0xb0] sm:$0xff]   ;;  %v5658_v34 = vld [vmem:[%s7209_s1 + $0x180] sm:$0xff]   ;;  %v98_v47 = vld [vmem:[%s7210_s0 + $0x268] sm:$0xff] }
  0x1a   :  { %v5662_v40 = vld [vmem:[%s7209_s1 + $0x120] sm:$0xff]   ;;  %v5664_v48 = vld [vmem:[%s7209_s1 + $0x128] sm:$0xff]   ;;  %v44_v50 = vld [vmem:[%s7210_s0 + $0xb8] sm:$0xff] }
  0x1b   :  { %4510 = vmatpush3.bf16.msra.mxu0 %v5633_v19  ;;  %5618 = vmatpush3.bf16.msra.mxu1 %v5633_v19  ;;  %v24_v19 = vld [vmem:[%s7210_s0 + $0x18] sm:$0xff]  ;;  %v37_v49 = vld [vmem:[%s7210_s0 + $0x80] sm:$0xff]  ;;  %v5665_v59 = vld [vmem:[%s7209_s1 + $0x170] sm:$0xff]  }
  0x1c   :  { %4511 = vmatprep.subr.bf16.mxu0 %v5634_v20  ;;  %5611 = vmatprep.subr.bf16.mxu1 %v5634_v20  ;;  %v31_v20 = vld [vmem:[%s7210_s0 + $0x50] sm:$0xff]  ;;  %v105_v60 = vld [vmem:[%s7210_s0 + $0x2a0] sm:$0xff]  ;;  %v58_v0 = vld [vmem:[%s7210_s0 + $0x128] sm:$0xff] }
  0x1d   :  { %v248_v28 = vpack.c.bf16 %v31_v20, %v24_v19  ;;  %v5666_v61 = vld [vmem:[%s7209_s1 + $0x130] sm:$0xff]   ;;  %v120_v1 = vld [vmem:[%s7210_s0 + $0x318] sm:$0xff]  ;;  %v66_v3 = vld [vmem:[%s7210_s0 + $0x168] sm:$0xff] }
  0x1e   :  { %v51_v63 = vld [vmem:[%s7210_s0 + $0xf0] sm:$0xff]  ;;  %v126_v12 = vld [vmem:[%s7210_s0 + $0x348] sm:$0xff]  ;;  %v65_v13 = vld [vmem:[%s7210_s0 + $0x160] sm:$0xff] }
  0x1f   :  { %4512 = vmatpush3.bf16.msra.mxu0 %v5635_v21  ;;  %5619 = vmatpush3.bf16.msra.mxu1 %v5635_v21  ;;  %v5659_v21 = vld [vmem:[%s7209_s1 + $0x158] sm:$0xff]   ;;  %v134_v15 = vld [vmem:[%s7210_s0 + $0x388] sm:$0xff] }
  0x20   :  { %4609 = vmatprep.subr.bf16.mxu1 %v5636_v26  ;;  %4721 = vmatprep.subr.bf16.mxu0 %v5637_v27  ;;  %v274_v26 = vpack.c.bf16 %v85_v18, %v78_v17  ;;  %v5656_v27 = vld [vmem:[%s7209_s1 + $0xf8] sm:$0xff]   ;;  %v87_v18 = vld [vmem:[%s7210_s0 + $0x210] sm:$0xff] }
  0x21   :  { %v72_v14 = vld [vmem:[%s7210_s0 + $0x198] sm:$0xff] }
  0x22   :  { %831 = vmatmul.mubr.bf16.vlgmr.msra.gmra.mrb[0].mxu0 %v245_v32  ;;  %927 = vmatmul.mubr.bf16.vlgmr.msra.gmra.mrb[0].mxu1 %v329_v33  ;;  %v23_v32 = vld [vmem:[%s7210_s0 + $0x10] sm:$0xff]  ;;  %v30_v33 = vld [vmem:[%s7210_s0 + $0x48] sm:$0xff]  ;;  %v80_v17 = vld [vmem:[%s7210_s0 + $0x1d8] sm:$0xff]  ;;  %v268_v20 = vpack.c.bf16 %v72_v14, %v65_v13 }
  0x23   :  { %4610 = vmatpush3.bf16.msra.mxu1 %v5638_v30  ;;  %4722 = vmatpush3.bf16.msra.mxu0 %v5639_v35  ;;  %v77_v30 = vld [vmem:[%s7210_s0 + $0x1c0] sm:$0xff]  ;;  %v92_v35 = vld [vmem:[%s7210_s0 + $0x238] sm:$0xff]  ;;  %v47_v14 = vld [vmem:[%s7210_s0 + $0xd0] sm:$0xff] }
  0x24   :  { %4611 = vmatprep.subr.bf16.mxu1 %v5640_v36  ;;  %838 = vmatprep.mubr.bf16.mxu0 %v253_v37  ;;  %v99_v36 = vld [vmem:[%s7210_s0 + $0x270] sm:$0xff]  ;;  %v38_v37 = vld [vmem:[%s7210_s0 + $0x88] sm:$0xff]  ;;  %v273_v41 = vpack.c.bf16 %v84_v31, %v77_v30  ;;  %v101_v30 = vld [vmem:[%s7210_s0 + $0x280] sm:$0xff] }
  0x25   :  { %934 = vmatprep.mubr.bf16.mxu1 %v337_v39  ;;  %4723 = vmatprep.subr.bf16.mxu0 %v5645_v42  ;;  %v45_v39 = vld [vmem:[%s7210_s0 + $0xc0] sm:$0xff]  ;;  %v247_v42 = vpack.c.bf16 %v30_v33, %v23_v32  ;;  %v281_v43 = vpack.c.bf16 %v99_v36, %v92_v35  ;;  %v147_v35 = vld [vmem:[%s7210_s0 + $0x3f0] sm:$0xff]  ;;  %v154_v36 = vld [vmem:[%s7210_s0 + $0x428] sm:$0xff] }
  0x26   :  { %v255_v44 = vpack.c.bf16 %v45_v39, %v38_v37  ;;  %v93_v37 = vld [vmem:[%s7210_s0 + $0x240] sm:$0xff]  ;;  %v162_v39 = vld [vmem:[%s7210_s0 + $0x468] sm:$0xff]  ;;  %v40_v13 = vld [vmem:[%s7210_s0 + $0x98] sm:$0xff] }
  0x27   :  { %4612 = vmatpush3.bf16.msra.mxu1 %v5641_v38  ;;  %4724 = vmatpush3.bf16.msra.mxu0 %v5647_v46  ;;  %v5661_v38 = vld [vmem:[%s7209_s1 + $0x160] sm:$0xff]   ;;  %v91_v46 = vld [vmem:[%s7210_s0 + $0x230] sm:$0xff] }
  0x28   :  { %4613 = vmatprep.subr.bf16.mxu1 %v5642_v45  ;;  %4725 = vmatprep.subr.bf16.mxu0 %v5653_v2  ;;  %v5663_v45 = vld [vmem:[%s7209_s1 + $0x168] sm:$0xff]   ;;  %v127_v2 = vld [vmem:[%s7210_s0 + $0x350] sm:$0xff] }
  0x2a   :  { %839 = vmatmul.mubr.bf16.gmra.mrb[4].mxu0 %v252_v51  ;;  %935 = vmatmul.mubr.bf16.gmra.mrb[4].mxu1 %v336_v52  ;;  %v106_v51 = vld [vmem:[%s7210_s0 + $0x2a8] sm:$0xff]  ;;  %v113_v52 = vld [vmem:[%s7210_s0 + $0x2e0] sm:$0xff] }
  0x2b   :  { %4614 = vmatpush3.bf16.msra.mxu1 %v5643_v53  ;;  %846 = vmatprep.mubr.bf16.mxu0 %v260_v54  ;;  %v52_v53 = vld [vmem:[%s7210_s0 + $0xf8] sm:$0xff]  ;;  %v59_v54 = vld [vmem:[%s7210_s0 + $0x130] sm:$0xff] }
  0x2c   :  { %4615 = vmatprep.subr.bf16.mxu1 %v5644_v55  ;;  %942 = vmatprep.mubr.bf16.mxu1 %v344_v56  ;;  %v280_v55 = vpack.c.bf16 %v98_v47, %v91_v46  ;;  %v254_v56 = vpack.c.bf16 %v44_v50, %v37_v49  ;;  %v262_v58 = vpack.c.bf16 %v59_v54, %v52_v53  ;;  %v161_v47 = vld [vmem:[%s7210_s0 + $0x460] sm:$0xff]  ;;  %v107_v49 = vld [vmem:[%s7210_s0 + $0x2b0] sm:$0xff]  ;;  %v114_v50 = vld [vmem:[%s7210_s0 + $0x2e8] sm:$0xff] }
  0x2d   :  { %4726 = vmatpush3.bf16.msra.mxu0 %v5655_v6  ;;  %v122_v53 = vld [vmem:[%s7210_s0 + $0x328] sm:$0xff]  ;;  %v129_v54 = vld [vmem:[%s7210_s0 + $0x360] sm:$0xff] }
  0x2e   :  { %4727 = vmatprep.subr.bf16.mxu0 %v5659_v21 }
  0x2f   :  { %4616 = vmatpush3.bf16.msra.mxu1 %v5646_v57  ;;  %v288_v57 = vpack.c.bf16 %v113_v52, %v106_v51  ;;  %v176_v51 = vld [vmem:[%s7210_s0 + $0x4d8] sm:$0xff]  ;;  %v183_v52 = vld [vmem:[%s7210_s0 + $0x510] sm:$0xff] }
  0x30   :  { %4617 = vmatprep.subr.bf16.mxu1 %v5648_v62  ;;  %v112_v62 = vld [vmem:[%s7210_s0 + $0x2d8] sm:$0xff] }
  0x31   :  { %4728 = vmatpush3.bf16.msra.mxu0 %v5660_v24  ;;  %v287_v6 = vpack.c.bf16 %v112_v62, %v105_v60  ;;  %v140_v24 = vld [vmem:[%s7210_s0 + $0x3b8] sm:$0xff]  ;;  %v182_v60 = vld [vmem:[%s7210_s0 + $0x508] sm:$0xff] }
  0x32   :  { %847 = vmatmul.mubr.bf16.gmra.mrb[8].mxu0 %v259_v4  ;;  %943 = vmatmul.mubr.bf16.gmra.mrb[8].mxu1 %v343_v5  ;;  %v73_v4 = vld [vmem:[%s7210_s0 + $0x1a0] sm:$0xff]  ;;  %v5667_v5 = vld [vmem:[%s7209_s1 + $0x178] sm:$0xff]  }
  0x33   :  { %4618 = vmatpush3.bf16.msra.mxu1 %v5649_v7  ;;  %854 = vmatprep.mubr.bf16.mxu0 %v267_v8  ;;  %v261_v7 = vpack.c.bf16 %v58_v0, %v51_v63  ;;  %v5668_v8 = vld [vmem:[%s7209_s1 + $0x138] sm:$0xff]   ;;  %v143_v0 = vld [vmem:[%s7210_s0 + $0x3d0] sm:$0xff] }
  0x34   :  { %4619 = vmatprep.subr.bf16.mxu1 %v5650_v9  ;;  %950 = vmatprep.mubr.bf16.mxu1 %v351_v10  ;;  %v295_v9 = vpack.c.bf16 %v127_v2, %v120_v1  ;;  %v269_v10 = vpack.c.bf16 %v73_v4, %v66_v3  ;;  %v128_v62 = vld [vmem:[%s7210_s0 + $0x358] sm:$0xff]  ;;  %v26_v1 = vld [vmem:[%s7210_s0 + $0x28] sm:$0xff]  ;;  %v33_v2 = vld [vmem:[%s7210_s0 + $0x60] sm:$0xff] }
  0x35   :  { %4729 = vmatprep.subr.bf16.mxu0 %v5661_v38  ;;  %v100_v38 = vld [vmem:[%s7210_s0 + $0x278] sm:$0xff] }
  0x36   :  { %4730 = vmatpush3.bf16.msra.mxu0 %v5662_v40  ;;  %v169_v40 = vld [vmem:[%s7210_s0 + $0x4a0] sm:$0xff]  ;;  %v136_v63 = vld [vmem:[%s7210_s0 + $0x398] sm:$0xff] }
  0x37   :  { %4620 = vmatpush3.bf16.msra.mxu1 %v5651_v11  ;;  %4731 = vmatprep.subr.bf16.mxu0 %v5663_v45  ;;  %v119_v11 = vld [vmem:[%s7210_s0 + $0x310] sm:$0xff]  ;;  %v316_v45 = vpack.c.bf16 %v169_v40, %v162_v39 }
  0x38   :  { %4621 = vmatprep.subr.bf16.mxu1 %v5652_v16  ;;  %v141_v16 = vld [vmem:[%s7210_s0 + $0x3c0] sm:$0xff]  ;;  %v294_v19 = vpack.c.bf16 %v126_v12, %v119_v11  ;;  %v150_v11 = vld [vmem:[%s7210_s0 + $0x408] sm:$0xff] }
  0x39   :  { %v302_v21 = vpack.c.bf16 %v141_v16, %v134_v15  ;;  %v157_v12 = vld [vmem:[%s7210_s0 + $0x440] sm:$0xff] }
  0x3a   :  { %855 = vmatmul.mubr.bf16.gmra.mrb[12].mxu0 %v266_v22  ;;  %951 = vmatmul.mubr.bf16.gmra.mrb[12].mxu1 %v350_v23  ;;  %v276_v22 = vpack.c.bf16 %v87_v18, %v80_v17  ;;  %v133_v23 = vld [vmem:[%s7210_s0 + $0x380] sm:$0xff]  ;;  %v311_v17 = vpack.c.bf16 %v157_v12, %v150_v11  ;;  %v257_v18 = vpack.c.bf16 %v47_v14, %v40_v13 }
  0x3b   :  { %4622 = vmatpush3.bf16.msra.mxu1 %v5654_v25  ;;  %862 = vmatprep.mubr.bf16.mxu0 %v274_v26  ;;  %v79_v25 = vld [vmem:[%s7210_s0 + $0x1d0] sm:$0xff]  ;;  %v86_v26 = vld [vmem:[%s7210_s0 + $0x208] sm:$0xff]  ;;  %v301_v31 = vpack.c.bf16 %v140_v24, %v133_v23  ;;  %v164_v23 = vld [vmem:[%s7210_s0 + $0x478] sm:$0xff] }
  0x3c   :  { %4623 = vmatprep.subr.bf16.mxu1 %v5656_v27  ;;  %991 = vmatprep.mubr.bf16.mxu1 %v248_v28  ;;  %v148_v27 = vld [vmem:[%s7210_s0 + $0x3f8] sm:$0xff]  ;;  %v155_v28 = vld [vmem:[%s7210_s0 + $0x430] sm:$0xff]  ;;  %v275_v32 = vpack.c.bf16 %v86_v26, %v79_v25  ;;  %v54_v25 = vld [vmem:[%s7210_s0 + $0x108] sm:$0xff] }
  0x3d   :  { %4732 = vmatpush3.bf16.msra.mxu0 %v5664_v48  ;;  %v309_v33 = vpack.c.bf16 %v155_v28, %v148_v27  ;;  %v168_v48 = vld [vmem:[%s7210_s0 + $0x498] sm:$0xff]  ;;  %v171_v24 = vld [vmem:[%s7210_s0 + $0x4b0] sm:$0xff]  ;;  %v61_v26 = vld [vmem:[%s7210_s0 + $0x140] sm:$0xff] }
  0x3e   :  { %4733 = vmatprep.subr.bf16.mxu0 %v5665_v59  ;;  %v175_v59 = vld [vmem:[%s7210_s0 + $0x4d0] sm:$0xff] }
  0x3f   :  { %4624 = vmatpush3.bf16.msra.mxu1 %v5657_v29  ;;  %v94_v29 = vld [vmem:[%s7210_s0 + $0x248] sm:$0xff]  ;;  %v322_v3 = vpack.c.bf16 %v182_v60, %v175_v59  ;;  %v213_v60 = vld [vmem:[%s7210_s0 + $0x600] sm:$0xff] }
  0x40   :  { %5090 = vmatprep.subr.bf16.mxu1 %v5658_v34  ;;  %v206_v59 = vld [vmem:[%s7210_s0 + $0x5c8] sm:$0xff] }
  0x41   :  { %4734 = vmatpush3.bf16.msra.mxu0 %v5666_v61  ;;  %v121_v61 = vld [vmem:[%s7210_s0 + $0x320] sm:$0xff] }
  0x42   :  { %863 = vmatmul.mubr.bf16.gmra.mrb[16].mxu0 %v273_v41  ;;  %992 = vmatmul.mubr.bf16.vlgmr.msra.gmra.mrb[16].mxu1 %v247_v42  ;;  %v108_v41 = vld [vmem:[%s7210_s0 + $0x2b8] sm:$0xff]  ;;  %v115_v42 = vld [vmem:[%s7210_s0 + $0x2f0] sm:$0xff]  ;;  %v296_v4 = vpack.c.bf16 %v128_v62, %v121_v61 }
  0x43   :  { %5091 = vmatpush3.bf16.msra.mxu1 %v5658_v34  ;;  %870 = vmatprep.mubr.bf16.mxu0 %v281_v43  ;;  %v283_v34 = vpack.c.bf16 %v101_v30, %v94_v29  ;;  %v308_v43 = vpack.c.bf16 %v154_v36, %v147_v35  ;;  %v290_v46 = vpack.c.bf16 %v115_v42, %v108_v41  ;;  %v178_v35 = vld [vmem:[%s7210_s0 + $0x4e8] sm:$0xff]  ;;  %v185_v36 = vld [vmem:[%s7210_s0 + $0x520] sm:$0xff]  ;;  %v96_v61 = vld [vmem:[%s7210_s0 + $0x258] sm:$0xff] }
  0x44   :  { %999 = vmatprep.mubr.bf16.mxu1 %v255_v44  ;;  %4735 = vmatprep.subr.bf16.mxu0 %v5667_v5  ;;  %v282_v44 = vpack.c.bf16 %v100_v38, %v93_v37  ;;  %v304_v5 = vpack.c.bf16 %v143_v0, %v136_v63  ;;  %v318_v29 = vpack.c.bf16 %v171_v24, %v164_v23  ;;  %v68_v37 = vld [vmem:[%s7210_s0 + $0x178] sm:$0xff]  ;;  %v75_v38 = vld [vmem:[%s7210_s0 + $0x1b0] sm:$0xff] }
  0x45   :  { %4736 = vmatpush3.bf16.msra.mxu0 %v5668_v8  ;;  %v142_v8 = vld [vmem:[%s7210_s0 + $0x3c8] sm:$0xff]  ;;  %v264_v30 = vpack.c.bf16 %v61_v26, %v54_v25  ;;  %v325_v41 = vpack.c.bf16 %v185_v36, %v178_v35  ;;  %v271_v42 = vpack.c.bf16 %v75_v38, %v68_v37  ;;  %v103_v62 = vld [vmem:[%s7210_s0 + $0x290] sm:$0xff] }
  0x4a   :  { %871 = vmatmul.mubr.bf16.gmra.mrb[20].mxu0 %v280_v55  ;;  %1000 = vmatmul.mubr.bf16.gmra.mrb[20].mxu1 %v254_v56  ;;  %v315_v55 = vpack.c.bf16 %v168_v48, %v161_v47  ;;  %v289_v56 = vpack.c.bf16 %v114_v50, %v107_v49  ;;  %v192_v47 = vld [vmem:[%s7210_s0 + $0x558] sm:$0xff]  ;;  %v199_v48 = vld [vmem:[%s7210_s0 + $0x590] sm:$0xff]  ;;  %v82_v49 = vld [vmem:[%s7210_s0 + $0x1e8] sm:$0xff] }
  0x4b   :  { %878 = vmatprep.mubr.bf16.mxu0 %v288_v57  ;;  %1007 = vmatprep.mubr.bf16.mxu1 %v262_v58  ;;  %v323_v57 = vpack.c.bf16 %v183_v52, %v176_v51  ;;  %v297_v58 = vpack.c.bf16 %v129_v54, %v122_v53  ;;  %v89_v50 = vld [vmem:[%s7210_s0 + $0x220] sm:$0xff]  ;;  %v332_v53 = vpack.c.bf16 %v199_v48, %v192_v47 }
  0x4c   :  { %v278_v54 = vpack.c.bf16 %v89_v50, %v82_v49 }
  0x52   :  { %879 = vmatmul.mubr.bf16.gmra.mrb[24].mxu0 %v287_v6  ;;  %1008 = vmatmul.mubr.bf16.gmra.mrb[24].mxu1 %v261_v7  ;;  %v250_v6 = vpack.c.bf16 %v33_v2, %v26_v1  ;;  %v135_v7 = vld [vmem:[%s7210_s0 + $0x390] sm:$0xff]  ;;  %v339_v1 = vpack.c.bf16 %v213_v60, %v206_v59  ;;  %v285_v2 = vpack.c.bf16 %v103_v62, %v96_v61 }
  0x53   :  { %886 = vmatprep.mubr.bf16.mxu0 %v295_v9  ;;  %1015 = vmatprep.mubr.bf16.mxu1 %v269_v10  ;;  %v25_v9 = vld [vmem:[%s7210_s0 + $0x20] sm:$0xff]  ;;  %v32_v10 = vld [vmem:[%s7210_s0 + $0x58] sm:$0xff]  ;;  %v303_v15 = vpack.c.bf16 %v142_v8, %v135_v7  ;;  %v227_v8 = vld [vmem:[%s7210_s0 + $0x670] sm:$0xff] }
  0x54   :  { %v249_v16 = vpack.c.bf16 %v32_v10, %v25_v9  ;;  %v220_v7 = vld [vmem:[%s7210_s0 + $0x638] sm:$0xff]  ;;  %v110_v9 = vld [vmem:[%s7210_s0 + $0x2c8] sm:$0xff]  ;;  %v117_v10 = vld [vmem:[%s7210_s0 + $0x300] sm:$0xff] }
  0x55   :  { %v346_v13 = vpack.c.bf16 %v227_v8, %v220_v7  ;;  %v292_v14 = vpack.c.bf16 %v117_v10, %v110_v9 }
  0x5a   :  { %887 = vmatmul.mubr.bf16.gmra.mrb[28].mxu0 %v294_v19  ;;  %1016 = vmatmul.mubr.bf16.gmra.mrb[28].mxu1 %v268_v20  ;;  %v149_v19 = vld [vmem:[%s7210_s0 + $0x400] sm:$0xff]  ;;  %v156_v20 = vld [vmem:[%s7210_s0 + $0x438] sm:$0xff] }
  0x5b   :  { %894 = vmatprep.mubr.bf16.mxu0 %v302_v21  ;;  %1023 = vmatprep.mubr.bf16.mxu1 %v276_v22  ;;  %v39_v21 = vld [vmem:[%s7210_s0 + $0x90] sm:$0xff]  ;;  %v46_v22 = vld [vmem:[%s7210_s0 + $0xc8] sm:$0xff]  ;;  %v310_v27 = vpack.c.bf16 %v156_v20, %v149_v19  ;;  %v241_v20 = vld [vmem:[%s7210_s0 + $0x6e0] sm:$0xff] }
  0x5c   :  { %v256_v28 = vpack.c.bf16 %v46_v22, %v39_v21  ;;  %v234_v19 = vld [vmem:[%s7210_s0 + $0x6a8] sm:$0xff]  ;;  %v124_v21 = vld [vmem:[%s7210_s0 + $0x338] sm:$0xff]  ;;  %v131_v22 = vld [vmem:[%s7210_s0 + $0x370] sm:$0xff] }
  0x5d   :  { %v353_v25 = vpack.c.bf16 %v241_v20, %v234_v19  ;;  %v299_v26 = vpack.c.bf16 %v131_v22, %v124_v21 }
  0x62   :  { %895 = vmatmul.mubr.bf16.gmra.mrb[32].mxu0 %v301_v31  ;;  %1024 = vmatmul.mubr.bf16.gmra.mrb[32].mxu1 %v275_v32  ;;  %v163_v31 = vld [vmem:[%s7210_s0 + $0x470] sm:$0xff]  ;;  %v170_v32 = vld [vmem:[%s7210_s0 + $0x4a8] sm:$0xff] }
  0x63   :  { %902 = vmatprep.mubr.bf16.mxu0 %v309_v33  ;;  %1031 = vmatprep.mubr.bf16.mxu1 %v283_v34  ;;  %v53_v33 = vld [vmem:[%s7210_s0 + $0x100] sm:$0xff]  ;;  %v60_v34 = vld [vmem:[%s7210_s0 + $0x138] sm:$0xff]  ;;  %v317_v39 = vpack.c.bf16 %v170_v32, %v163_v31  ;;  %v138_v31 = vld [vmem:[%s7210_s0 + $0x3a8] sm:$0xff] }
  0x64   :  { %v263_v40 = vpack.c.bf16 %v60_v34, %v53_v33  ;;  %v145_v32 = vld [vmem:[%s7210_s0 + $0x3e0] sm:$0xff]  ;;  %v27_v33 = vld [vmem:[%s7210_s0 + $0x30] sm:$0xff]  ;;  %v34_v34 = vld [vmem:[%s7210_s0 + $0x68] sm:$0xff] }
  0x65   :  { %v306_v37 = vpack.c.bf16 %v145_v32, %v138_v31  ;;  %v251_v38 = vpack.c.bf16 %v34_v34, %v27_v33 }
  0x6a   :  { %903 = vmatmul.mubr.bf16.gmra.mrb[36].mxu0 %v308_v43  ;;  %1032 = vmatmul.mubr.bf16.gmra.mrb[36].mxu1 %v282_v44  ;;  %v177_v43 = vld [vmem:[%s7210_s0 + $0x4e0] sm:$0xff]  ;;  %v184_v44 = vld [vmem:[%s7210_s0 + $0x518] sm:$0xff] }
  0x6b   :  { %910 = vmatprep.mubr.bf16.mxu0 %v316_v45  ;;  %1039 = vmatprep.mubr.bf16.mxu1 %v290_v46  ;;  %v67_v45 = vld [vmem:[%s7210_s0 + $0x170] sm:$0xff]  ;;  %v74_v46 = vld [vmem:[%s7210_s0 + $0x1a8] sm:$0xff]  ;;  %v324_v51 = vpack.c.bf16 %v184_v44, %v177_v43  ;;  %v152_v43 = vld [vmem:[%s7210_s0 + $0x418] sm:$0xff] }
  0x6c   :  { %v270_v52 = vpack.c.bf16 %v74_v46, %v67_v45  ;;  %v159_v44 = vld [vmem:[%s7210_s0 + $0x450] sm:$0xff]  ;;  %v62_v46 = vld [vmem:[%s7210_s0 + $0x148] sm:$0xff] }
  0x6d   :  { %v55_v45 = vld [vmem:[%s7210_s0 + $0x110] sm:$0xff]  ;;  %v313_v49 = vpack.c.bf16 %v159_v44, %v152_v43  ;;  %v5669_v43 = vld [vmem:[%s7211_s2] sm:$0xff]  }
  0x6e   :  { %v265_v50 = vpack.c.bf16 %v62_v46, %v55_v45  ;;  %5124 = vmatprep.subr.bf16.mxu1 %v5669_v43 }
  0x72   :  { %911 = vmatmul.mubr.bf16.gmra.mrb[40].mxu0 %v315_v55  ;;  %1040 = vmatmul.mubr.bf16.gmra.mrb[40].mxu1 %v289_v56  ;;  %v191_v55 = vld [vmem:[%s7210_s0 + $0x550] sm:$0xff]  ;;  %v198_v56 = vld [vmem:[%s7210_s0 + $0x588] sm:$0xff] }
  0x73   :  { %918 = vmatprep.mubr.bf16.mxu0 %v323_v57  ;;  %1047 = vmatprep.mubr.bf16.mxu1 %v297_v58  ;;  %v81_v57 = vld [vmem:[%s7210_s0 + $0x1e0] sm:$0xff]  ;;  %v88_v58 = vld [vmem:[%s7210_s0 + $0x218] sm:$0xff]  ;;  %v331_v63 = vpack.c.bf16 %v198_v56, %v191_v55  ;;  %v166_v55 = vld [vmem:[%s7210_s0 + $0x488] sm:$0xff] }
  0x74   :  { %v277_v0 = vpack.c.bf16 %v88_v58, %v81_v57  ;;  %v173_v56 = vld [vmem:[%s7210_s0 + $0x4c0] sm:$0xff]  ;;  %v83_v57 = vld [vmem:[%s7210_s0 + $0x1f0] sm:$0xff]  ;;  %v90_v58 = vld [vmem:[%s7210_s0 + $0x228] sm:$0xff] }
  0x75   :  { %v320_v61 = vpack.c.bf16 %v173_v56, %v166_v55  ;;  %v279_v62 = vpack.c.bf16 %v90_v58, %v83_v57  ;;  %v230_v55 = vld [vmem:[%s7210_s0 + $0x688] sm:$0xff] }
  0x76   :  { %v5670_v56 = vld [vmem:[%s7211_s2 + $0x8] sm:$0xff]  }
  0x7a   :  { %919 = vmatmul.mubr.bf16.gmra.mrb[44].mxu0 %v322_v3  ;;  %1048 = vmatmul.mubr.bf16.gmra.mrb[44].mxu1 %v296_v4  ;;  %v205_v3 = vld [vmem:[%s7210_s0 + $0x5c0] sm:$0xff]  ;;  %v212_v4 = vld [vmem:[%s7210_s0 + $0x5f8] sm:$0xff] }
  0x7b   :  { %1055 = vmatprep.mubr.bf16.mxu1 %v304_v5  ;;  %1152 = vmatprep.mubr.bf16.mxu0 %v250_v6  ;;  %v95_v5 = vld [vmem:[%s7210_s0 + $0x250] sm:$0xff]  ;;  %v102_v6 = vld [vmem:[%s7210_s0 + $0x288] sm:$0xff]  ;;  %v338_v11 = vpack.c.bf16 %v212_v4, %v205_v3  ;;  %v180_v3 = vld [vmem:[%s7210_s0 + $0x4f8] sm:$0xff] }
  0x7c   :  { %v284_v12 = vpack.c.bf16 %v102_v6, %v95_v5  ;;  %v187_v4 = vld [vmem:[%s7210_s0 + $0x530] sm:$0xff]  ;;  %v118_v6 = vld [vmem:[%s7210_s0 + $0x308] sm:$0xff] }
  0x7d   :  { %v111_v5 = vld [vmem:[%s7210_s0 + $0x2d0] sm:$0xff]  ;;  %v327_v9 = vpack.c.bf16 %v187_v4, %v180_v3 }
  0x7e   :  { %v293_v10 = vpack.c.bf16 %v118_v6, %v111_v5 }
  0x82   :  { %1056 = vmatmul.mubr.bf16.gmra.mrb[48].mxu1 %v303_v15  ;;  %1153 = vmatmul.mubr.bf16.vlgmr.msra.gmra.mrb[48].mxu0 %v249_v16  ;;  %v219_v15 = vld [vmem:[%s7210_s0 + $0x630] sm:$0xff]  ;;  %v226_v16 = vld [vmem:[%s7210_s0 + $0x668] sm:$0xff] }
  0x83   :  { %1063 = vmatprep.mubr.bf16.mxu1 %v311_v17  ;;  %1160 = vmatprep.mubr.bf16.mxu0 %v257_v18  ;;  %v109_v17 = vld [vmem:[%s7210_s0 + $0x2c0] sm:$0xff]  ;;  %v116_v18 = vld [vmem:[%s7210_s0 + $0x2f8] sm:$0xff]  ;;  %v345_v23 = vpack.c.bf16 %v226_v16, %v219_v15  ;;  %v194_v15 = vld [vmem:[%s7210_s0 + $0x568] sm:$0xff] }
  0x84   :  { %v291_v24 = vpack.c.bf16 %v116_v18, %v109_v17  ;;  %v201_v16 = vld [vmem:[%s7210_s0 + $0x5a0] sm:$0xff]  ;;  %v139_v17 = vld [vmem:[%s7210_s0 + $0x3b0] sm:$0xff]  ;;  %v146_v18 = vld [vmem:[%s7210_s0 + $0x3e8] sm:$0xff] }
  0x85   :  { %v334_v21 = vpack.c.bf16 %v201_v16, %v194_v15  ;;  %v307_v22 = vpack.c.bf16 %v146_v18, %v139_v17  ;;  %v5672_v16 = vld [vmem:[%s7211_s2 + $0x18] sm:$0xff]  }
  0x8a   :  { %1064 = vmatmul.mubr.bf16.gmra.mrb[52].mxu1 %v310_v27  ;;  %1161 = vmatmul.mubr.bf16.gmra.mrb[52].mxu0 %v256_v28  ;;  %v233_v27 = vld [vmem:[%s7210_s0 + $0x6a0] sm:$0xff]  ;;  %v240_v28 = vld [vmem:[%s7210_s0 + $0x6d8] sm:$0xff] }
  0x8b   :  { %1071 = vmatprep.mubr.bf16.mxu1 %v318_v29  ;;  %1168 = vmatprep.mubr.bf16.mxu0 %v264_v30  ;;  %v123_v29 = vld [vmem:[%s7210_s0 + $0x330] sm:$0xff]  ;;  %v130_v30 = vld [vmem:[%s7210_s0 + $0x368] sm:$0xff]  ;;  %v352_v35 = vpack.c.bf16 %v240_v28, %v233_v27  ;;  %v208_v27 = vld [vmem:[%s7210_s0 + $0x5d8] sm:$0xff] }
  0x8c   :  { %v298_v36 = vpack.c.bf16 %v130_v30, %v123_v29  ;;  %v215_v28 = vld [vmem:[%s7210_s0 + $0x610] sm:$0xff]  ;;  %v174_v30 = vld [vmem:[%s7210_s0 + $0x4c8] sm:$0xff] }
  0x8d   :  { %v167_v29 = vld [vmem:[%s7210_s0 + $0x490] sm:$0xff]  ;;  %v341_v33 = vpack.c.bf16 %v215_v28, %v208_v27 }
  0x8e   :  { %v321_v34 = vpack.c.bf16 %v174_v30, %v167_v29  ;;  %v5673_v29 = vld [vmem:[%s7211_s2 + $0x20] sm:$0xff]  }
  0x92   :  { %1072 = vmatmul.mubr.bf16.gmra.mrb[56].mxu1 %v317_v39  ;;  %1169 = vmatmul.mubr.bf16.gmra.mrb[56].mxu0 %v263_v40  ;;  %v137_v39 = vld [vmem:[%s7210_s0 + $0x3a0] sm:$0xff]  ;;  %v144_v40 = vld [vmem:[%s7210_s0 + $0x3d8] sm:$0xff] }
  0x93   :  { %1079 = vmatprep.mubr.bf16.mxu1 %v325_v41  ;;  %1176 = vmatprep.mubr.bf16.mxu0 %v271_v42  ;;  %v41_v41 = vld [vmem:[%s7210_s0 + $0xa0] sm:$0xff]  ;;  %v48_v42 = vld [vmem:[%s7210_s0 + $0xd8] sm:$0xff]  ;;  %v305_v47 = vpack.c.bf16 %v144_v40, %v137_v39  ;;  %v222_v39 = vld [vmem:[%s7210_s0 + $0x648] sm:$0xff] }
  0x94   :  { %v258_v48 = vpack.c.bf16 %v48_v42, %v41_v41  ;;  %v229_v40 = vld [vmem:[%s7210_s0 + $0x680] sm:$0xff]  ;;  %v195_v41 = vld [vmem:[%s7210_s0 + $0x570] sm:$0xff]  ;;  %v202_v42 = vld [vmem:[%s7210_s0 + $0x5a8] sm:$0xff] }
  0x95   :  { %v348_v46 = vpack.c.bf16 %v229_v40, %v222_v39 }
  0x9a   :  { %1080 = vmatmul.mubr.bf16.gmra.mrb[60].mxu1 %v324_v51  ;;  %1177 = vmatmul.mubr.bf16.gmra.mrb[60].mxu0 %v270_v52  ;;  %v151_v51 = vld [vmem:[%s7210_s0 + $0x410] sm:$0xff]  ;;  %v158_v52 = vld [vmem:[%s7210_s0 + $0x448] sm:$0xff] }
  0x9b   :  { %1087 = vmatprep.mubr.bf16.mxu1 %v332_v53  ;;  %1184 = vmatprep.mubr.bf16.mxu0 %v278_v54  ;;  %v69_v53 = vld [vmem:[%s7210_s0 + $0x180] sm:$0xff]  ;;  %v76_v54 = vld [vmem:[%s7210_s0 + $0x1b8] sm:$0xff]  ;;  %v312_v59 = vpack.c.bf16 %v158_v52, %v151_v51 }
  0x9c   :  { %v272_v60 = vpack.c.bf16 %v76_v54, %v69_v53  ;;  %v216_v51 = vld [vmem:[%s7210_s0 + $0x618] sm:$0xff]  ;;  %v243_v53 = vld [vmem:[%s7210_s0 + $0x6f0] sm:$0xff] }
  0x9d   :  { %v236_v52 = vld [vmem:[%s7210_s0 + $0x6b8] sm:$0xff]  ;;  %v223_v54 = vld [vmem:[%s7210_s0 + $0x650] sm:$0xff] }
  0xa2   :  { %1088 = vmatmul.mubr.bf16.gmra.mrb[64].mxu1 %v331_v63  ;;  %1185 = vmatmul.mubr.bf16.gmra.mrb[64].mxu0 %v277_v0  ;;  %v165_v63 = vld [vmem:[%s7210_s0 + $0x480] sm:$0xff]  ;;  %v172_v0 = vld [vmem:[%s7210_s0 + $0x4b8] sm:$0xff] }
  0xa3   :  { %1095 = vmatprep.mubr.bf16.mxu1 %v339_v1  ;;  %1192 = vmatprep.mubr.bf16.mxu0 %v285_v2  ;;  %v97_v1 = vld [vmem:[%s7210_s0 + $0x260] sm:$0xff]  ;;  %v104_v2 = vld [vmem:[%s7210_s0 + $0x298] sm:$0xff]  ;;  %v319_v7 = vpack.c.bf16 %v172_v0, %v165_v63 }
  0xa4   :  { %v286_v8 = vpack.c.bf16 %v104_v2, %v97_v1  ;;  %v237_v63 = vld [vmem:[%s7210_s0 + $0x6c0] sm:$0xff]  ;;  %v244_v0 = vld [vmem:[%s7210_s0 + $0x6f8] sm:$0xff]  ;;  %v5671_v1 = vld [vmem:[%s7211_s2 + $0x10] sm:$0xff]  }
  0xaa   :  { %1096 = vmatmul.mubr.bf16.gmra.mrb[68].mxu1 %v338_v11  ;;  %1193 = vmatmul.mubr.bf16.gmra.mrb[68].mxu0 %v284_v12  ;;  %v179_v11 = vld [vmem:[%s7210_s0 + $0x4f0] sm:$0xff]  ;;  %v186_v12 = vld [vmem:[%s7210_s0 + $0x528] sm:$0xff] }
  0xab   :  { %1103 = vmatprep.mubr.bf16.mxu1 %v346_v13  ;;  %1200 = vmatprep.mubr.bf16.mxu0 %v292_v14  ;;  %v125_v13 = vld [vmem:[%s7210_s0 + $0x340] sm:$0xff]  ;;  %v132_v14 = vld [vmem:[%s7210_s0 + $0x378] sm:$0xff]  ;;  %v326_v19 = vpack.c.bf16 %v186_v12, %v179_v11 }
  0xac   :  { %v300_v20 = vpack.c.bf16 %v132_v14, %v125_v13 }
  0xb2   :  { %1104 = vmatmul.mubr.bf16.gmra.mrb[72].mxu1 %v345_v23  ;;  %1201 = vmatmul.mubr.bf16.gmra.mrb[72].mxu0 %v291_v24  ;;  %v193_v23 = vld [vmem:[%s7210_s0 + $0x560] sm:$0xff]  ;;  %v200_v24 = vld [vmem:[%s7210_s0 + $0x598] sm:$0xff] }
  0xb3   :  { %1111 = vmatprep.mubr.bf16.mxu1 %v353_v25  ;;  %1208 = vmatprep.mubr.bf16.mxu0 %v299_v26  ;;  %v153_v25 = vld [vmem:[%s7210_s0 + $0x420] sm:$0xff]  ;;  %v160_v26 = vld [vmem:[%s7210_s0 + $0x458] sm:$0xff]  ;;  %v333_v31 = vpack.c.bf16 %v200_v24, %v193_v23 }
  0xb4   :  { %v314_v32 = vpack.c.bf16 %v160_v26, %v153_v25 }
  0xba   :  { %1112 = vmatmul.mubr.bf16.gmra.mrb[76].mxu1 %v352_v35  ;;  %1209 = vmatmul.mubr.bf16.gmra.mrb[76].mxu0 %v298_v36  ;;  %v207_v35 = vld [vmem:[%s7210_s0 + $0x5d0] sm:$0xff]  ;;  %v214_v36 = vld [vmem:[%s7210_s0 + $0x608] sm:$0xff] }
  0xbb   :  { %1216 = vmatprep.mubr.bf16.mxu0 %v306_v37  ;;  %5092 = vmatprep.mubr.msk.bf16.mxu1 %vm749_vm0, %v251_v38  ;;  %v181_v37 = vld [vmem:[%s7210_s0 + $0x500] sm:$0xff]  ;;  %v188_v38 = vld [vmem:[%s7210_s0 + $0x538] sm:$0xff]  ;;  %v340_v44 = vpack.c.bf16 %v214_v36, %v207_v35 }
  0xbc   :  { %v328_v45 = vpack.c.bf16 %v188_v38, %v181_v37 }
  0xc2   :  { %1217 = vmatmul.mubr.bf16.gmra.mrb[80].mxu0 %v305_v47  ;;  %5093 = vmatmul.mubr.msk.bf16.vlgmr.msra.gmra.mrb[80].mxu1 %vm749_vm0, %v258_v48  ;;  %v335_v47 = vpack.c.bf16 %v202_v42, %v195_v41  ;;  %v221_v48 = vld [vmem:[%s7210_s0 + $0x640] sm:$0xff]  ;;  %v5674_v42 = vld [vmem:[%s7211_s2 + $0x28] sm:$0xff]  }
  0xc3   :  { %1224 = vmatprep.mubr.bf16.mxu0 %v313_v49  ;;  %5096 = vmatprep.mubr.msk.bf16.mxu1 %vm749_vm0, %v265_v50  ;;  %v228_v49 = vld [vmem:[%s7210_s0 + $0x678] sm:$0xff]  ;;  %v209_v50 = vld [vmem:[%s7210_s0 + $0x5e0] sm:$0xff] }
  0xc4   :  { %5125 = vmatpush3.bf16.msra.mxu1 %v5669_v43  ;;  %v347_v57 = vpack.c.bf16 %v228_v49, %v221_v48  ;;  %v342_v58 = vpack.c.bf16 %v216_v51, %v209_v50 }
  0xc5   :  { %5126 = vmatprep.subr.bf16.mxu1 %v5670_v56 }
  0xc8   :  { %5127 = vmatpush3.bf16.msra.mxu1 %v5670_v56 }
  0xc9   :  { %5128 = vmatprep.subr.bf16.mxu1 %v5671_v1 }
  0xca   :  { %1225 = vmatmul.mubr.bf16.gmra.mrb[84].mxu0 %v312_v59  ;;  %5097 = vmatmul.mubr.msk.bf16.gmra.mrb[84].mxu1 %vm749_vm0, %v272_v60  ;;  %v355_v59 = vpack.c.bf16 %v243_v53, %v236_v52  ;;  %v349_v60 = vpack.c.bf16 %v230_v55, %v223_v54  ;;  %v5675_v55 = vld [vmem:[%s7211_s2 + $0x30] sm:$0xff]  }
  0xcb   :  { %1232 = vmatprep.mubr.bf16.mxu0 %v320_v61  ;;  %5100 = vmatprep.mubr.msk.bf16.mxu1 %vm749_vm0, %v279_v62  ;;  %v235_v61 = vld [vmem:[%s7210_s0 + $0x6b0] sm:$0xff]  ;;  %v242_v62 = vld [vmem:[%s7210_s0 + $0x6e8] sm:$0xff] }
  0xcc   :  { %v354_v6 = vpack.c.bf16 %v242_v62, %v235_v61  ;;  %5129 = vmatpush3.bf16.msra.mxu1 %v5671_v1 }
  0xcd   :  { %5130 = vmatprep.subr.bf16.mxu1 %v5672_v16 }
  0xd0   :  { %5131 = vmatpush3.bf16.msra.mxu1 %v5672_v16 }
  0xd1   :  { %5132 = vmatprep.subr.bf16.mxu1 %v5673_v29 }
  0xd2   :  { %1233 = vmatmul.mubr.bf16.gmra.mrb[88].mxu0 %v319_v7  ;;  %5101 = vmatmul.mubr.msk.bf16.gmra.mrb[88].mxu1 %vm749_vm0, %v286_v8  ;;  %v356_v7 = vpack.c.bf16 %v244_v0, %v237_v63 }
  0xd3   :  { %1240 = vmatprep.mubr.bf16.mxu0 %v327_v9  ;;  %5104 = vmatprep.mubr.msk.bf16.mxu1 %vm749_vm0, %v293_v10 }
  0xd4   :  { %5133 = vmatpush3.bf16.msra.mxu1 %v5673_v29 }
  0xd5   :  { %5134 = vmatprep.subr.bf16.mxu1 %v5674_v42 }
  0xd8   :  { %5135 = vmatpush3.bf16.msra.mxu1 %v5674_v42 }
  0xd9   :  { %5136 = vmatprep.subr.bf16.mxu1 %v5675_v55 }
  0xda   :  { %1241 = vmatmul.mubr.bf16.gmra.mrb[92].mxu0 %v326_v19  ;;  %5105 = vmatmul.mubr.msk.bf16.gmra.mrb[92].mxu1 %vm749_vm0, %v300_v20 }
  0xdb   :  { %1248 = vmatprep.mubr.bf16.mxu0 %v334_v21  ;;  %5108 = vmatprep.mubr.msk.bf16.mxu1 %vm749_vm0, %v307_v22 }
  0xdc   :  { %5137 = vmatpush3.bf16.msra.mxu1 %v5675_v55 }
  0xe2   :  { %1249 = vmatmul.mubr.bf16.gmra.mrb[96].mxu0 %v333_v31  ;;  %5109 = vmatmul.mubr.msk.bf16.gmra.mrb[96].mxu1 %vm749_vm0, %v314_v32 }
  0xe3   :  { %1256 = vmatprep.mubr.bf16.mxu0 %v341_v33  ;;  %5112 = vmatprep.mubr.msk.bf16.mxu1 %vm749_vm0, %v321_v34 }
  0xea   :  { %1257 = vmatmul.mubr.bf16.gmra.mrb[100].mxu0 %v340_v44  ;;  %5113 = vmatmul.mubr.msk.bf16.gmra.mrb[100].mxu1 %vm749_vm0, %v328_v45 }
  0xeb   :  { %1264 = vmatprep.mubr.bf16.mxu0 %v348_v46  ;;  %5116 = vmatprep.mubr.msk.bf16.mxu1 %vm749_vm0, %v335_v47 }
  0xf2   :  { %1265 = vmatmul.mubr.bf16.gmra.mrb[104].mxu0 %v347_v57  ;;  %5117 = vmatmul.mubr.msk.bf16.gmra.mrb[104].mxu1 %vm749_vm0, %v342_v58 }
  0xf3   :  { %1272 = vmatprep.mubr.bf16.mxu0 %v355_v59  ;;  %5120 = vmatprep.mubr.msk.bf16.mxu1 %vm749_vm0, %v349_v60 }
  0xf5   :  { %v4513_v2 = vpop.f32.mrb[0].mxu0  ;;  %v4585_v3 = vpop.f32.mrb[0].mxu1 }
  0xf6   :  { %v4514_v4 = vpop.f32.mrb[1].mxu0  ;;  %v4586_v5 = vpop.f32.mrb[1].mxu1 }
  0xf7   :  { %v6622_v8 = vadd.f32 %v4514_v4, %v4513_v2  ;;  %v4516_v9 = vpop.f32.mrb[2].mxu0  ;;  %v6624_v10 = vadd.f32 %v4586_v5, %v4585_v3  ;;  %v4588_v11 = vpop.f32.mrb[2].mxu1  ;;  %v5676_v5 = vld [vmem:[%s7211_s2 + $0x38] sm:$0xff]  }
  0xf8   :  { %v4517_v12 = vpop.f32.mrb[3].mxu0  ;;  %v4589_v13 = vpop.f32.mrb[3].mxu1  ;;  %5138 = vmatprep.subr.bf16.mxu1 %v5676_v5 }
  0xf9   :  { %v6626_v14 = vadd.f32 %v4517_v12, %v4516_v9  ;;  %v6628_v15 = vadd.f32 %v4589_v13, %v4588_v11  ;;  %5139 = vmatpush3.bf16.msra.mxu1 %v5676_v5 }
  0xfa   :  { %1273 = vmatmul.mubr.bf16.gmra.mrb[108].mxu0 %v354_v6  ;;  %5121 = vmatmul.mubr.msk.bf16.gmra.mrb[108].mxu1 %vm749_vm0, %v356_v7 }
  0xfd   :  { %v4519_v17 = vpop.f32.mrb[4].mxu0  ;;  %v4591_v18 = vpop.f32.mrb[4].mxu1 }
  0xfe   :  { %v4520_v19 = vpop.f32.mrb[5].mxu0  ;;  %v4592_v20 = vpop.f32.mrb[5].mxu1 }
  0xff   :  { %v6634_v21 = vadd.f32 %v4520_v19, %v4519_v17  ;;  %v4522_v22 = vpop.f32.mrb[6].mxu0  ;;  %v6636_v23 = vadd.f32 %v4592_v20, %v4591_v18  ;;  %v4594_v24 = vpop.f32.mrb[6].mxu1 }
 0x100   :  { %v4523_v25 = vpop.f32.mrb[7].mxu0  ;;  %v4595_v26 = vpop.f32.mrb[7].mxu1 }
 0x101   :  { %v6638_v27 = vadd.f32 %v4523_v25, %v4522_v22  ;;  %v6640_v28 = vadd.f32 %v4595_v26, %v4594_v24 }
 0x105   :  { %v4525_v30 = vpop.f32.mrb[8].mxu0  ;;  %v4597_v31 = vpop.f32.mrb[8].mxu1 }
 0x106   :  { %v4526_v32 = vpop.f32.mrb[9].mxu0  ;;  %v4598_v33 = vpop.f32.mrb[9].mxu1 }
 0x107   :  { %v6645_v34 = vadd.f32 %v4526_v32, %v4525_v30  ;;  %v4528_v35 = vpop.f32.mrb[10].mxu0  ;;  %v6647_v36 = vadd.f32 %v4598_v33, %v4597_v31  ;;  %v4600_v37 = vpop.f32.mrb[10].mxu1 }
 0x108   :  { %v4529_v38 = vpop.f32.mrb[11].mxu0  ;;  %v4601_v39 = vpop.f32.mrb[11].mxu1 }
 0x109   :  { %v6649_v40 = vadd.f32 %v4529_v38, %v4528_v35  ;;  %v6651_v41 = vadd.f32 %v4601_v39, %v4600_v37 }
 0x10d   :  { %v4531_v43 = vpop.f32.mrb[12].mxu0  ;;  %v4603_v44 = vpop.f32.mrb[12].mxu1 }
 0x10e   :  { %v4532_v45 = vpop.f32.mrb[13].mxu0  ;;  %v4604_v46 = vpop.f32.mrb[13].mxu1 }
 0x10f   :  { %v6656_v47 = vadd.f32 %v4532_v45, %v4531_v43  ;;  %v4534_v48 = vpop.f32.mrb[14].mxu0  ;;  %v6658_v49 = vadd.f32 %v4604_v46, %v4603_v44  ;;  %v4606_v50 = vpop.f32.mrb[14].mxu1 }
 0x110   :  { %v4535_v51 = vpop.f32.mrb[15].mxu0  ;;  %v4607_v52 = vpop.f32.mrb[15].mxu1 }
 0x111   :  { %v6660_v53 = vadd.f32 %v4535_v51, %v4534_v48  ;;  %v6662_v54 = vadd.f32 %v4607_v52, %v4606_v50 }
 0x115   :  { %v4537_v56 = vpop.f32.mrb[16].mxu0  ;;  %v4625_v57 = vpop.f32.mrb[16].mxu1 }
 0x116   :  { %v4538_v58 = vpop.f32.mrb[17].mxu0  ;;  %v4626_v59 = vpop.f32.mrb[17].mxu1 }
 0x117   :  { %v6667_v60 = vadd.f32 %v4538_v58, %v4537_v56  ;;  %v4627_v61 = vadd.f32 %v4626_v59, %v4625_v57  ;;  %v4540_v62 = vpop.f32.mrb[18].mxu0  ;;  %v4628_v63 = vpop.f32.mrb[18].mxu1 }
 0x118   :  { %v4541_v0 = vpop.f32.mrb[19].mxu0  ;;  %v4629_v1 = vpop.f32.mrb[19].mxu1 }
 0x119   :  { %v6670_v2 = vadd.f32 %v4627_v61, %v6622_v8  ;;  %v4542_v3 = vadd.f32 %v4541_v0, %v4540_v62  ;;  %v4630_v4 = vadd.f32 %v4629_v1, %v4628_v63 }
 0x11b   :  { %v6676_v6 = vadd.f32 %v4630_v4, %v6626_v14 }
 0x11d   :  { %v4543_v7 = vpop.f32.mrb[20].mxu0  ;;  %v4631_v9 = vpop.f32.mrb[20].mxu1 }
 0x11e   :  { %v4544_v11 = vpop.f32.mrb[21].mxu0  ;;  %v4632_v12 = vpop.f32.mrb[21].mxu1 }
 0x11f   :  { %v4545_v13 = vadd.f32 %v4544_v11, %v4543_v7  ;;  %v4633_v16 = vadd.f32 %v4632_v12, %v4631_v9  ;;  %v4546_v17 = vpop.f32.mrb[22].mxu0  ;;  %v4634_v8 = vpop.f32.mrb[22].mxu1 }
 0x120   :  { %v4547_v18 = vpop.f32.mrb[23].mxu0  ;;  %v4635_v19 = vpop.f32.mrb[23].mxu1 }
 0x121   :  { %v6679_v20 = vadd.f32 %v4633_v16, %v6634_v21  ;;  %v4548_v22 = vadd.f32 %v4547_v18, %v4546_v17  ;;  %v4636_v24 = vadd.f32 %v4635_v19, %v4634_v8 }
 0x123   :  { %v6682_v14 = vadd.f32 %v4636_v24, %v6638_v27 }
 0x125   :  { %v4549_v25 = vpop.f32.mrb[24].mxu0  ;;  %v4637_v26 = vpop.f32.mrb[24].mxu1 }
 0x126   :  { %v4550_v29 = vpop.f32.mrb[25].mxu0  ;;  %v4638_v30 = vpop.f32.mrb[25].mxu1 }
 0x127   :  { %v4551_v31 = vadd.f32 %v4550_v29, %v4549_v25  ;;  %v4639_v32 = vadd.f32 %v4638_v30, %v4637_v26  ;;  %v4552_v33 = vpop.f32.mrb[26].mxu0  ;;  %v4640_v35 = vpop.f32.mrb[26].mxu1 }
 0x128   :  { %v4553_v37 = vpop.f32.mrb[27].mxu0  ;;  %v4641_v38 = vpop.f32.mrb[27].mxu1 }
 0x129   :  { %v6685_v39 = vadd.f32 %v4639_v32, %v6645_v34  ;;  %v4554_v21 = vadd.f32 %v4553_v37, %v4552_v33  ;;  %v4642_v42 = vadd.f32 %v4641_v38, %v4640_v35 }
 0x12b   :  { %v6688_v43 = vadd.f32 %v4642_v42, %v6649_v40 }
 0x12d   :  { %v4555_v27 = vpop.f32.mrb[28].mxu0  ;;  %v4643_v44 = vpop.f32.mrb[28].mxu1 }
 0x12e   :  { %v4556_v45 = vpop.f32.mrb[29].mxu0  ;;  %v4644_v46 = vpop.f32.mrb[29].mxu1 }
 0x12f   :  { %v4557_v48 = vadd.f32 %v4556_v45, %v4555_v27  ;;  %v4645_v50 = vadd.f32 %v4644_v46, %v4643_v44  ;;  %v4558_v51 = vpop.f32.mrb[30].mxu0  ;;  %v4646_v52 = vpop.f32.mrb[30].mxu1 }
 0x130   :  { %v4559_v55 = vpop.f32.mrb[31].mxu0  ;;  %v4647_v56 = vpop.f32.mrb[31].mxu1 }
 0x131   :  { %v6691_v57 = vadd.f32 %v4645_v50, %v6656_v47  ;;  %v4560_v34 = vadd.f32 %v4559_v55, %v4558_v51  ;;  %v4648_v58 = vadd.f32 %v4647_v56, %v4646_v52 }
 0x133   :  { %v6694_v59 = vadd.f32 %v4648_v58, %v6660_v53 }
 0x135   :  { %v4561_v40 = vpop.f32.mrb[32].mxu0  ;;  %v4649_v61 = vpop.f32.mrb[32].mxu1 }
 0x136   :  { %v4562_v62 = vpop.f32.mrb[33].mxu0  ;;  %v4650_v63 = vpop.f32.mrb[33].mxu1 }
 0x137   :  { %v4563_v0 = vadd.f32 %v4562_v62, %v4561_v40  ;;  %v4651_v1 = vadd.f32 %v4650_v63, %v4649_v61  ;;  %v4564_v4 = vpop.f32.mrb[34].mxu0  ;;  %v4652_v5 = vpop.f32.mrb[34].mxu1 }
 0x138   :  { %v4565_v7 = vpop.f32.mrb[35].mxu0  ;;  %v4653_v9 = vpop.f32.mrb[35].mxu1 }
 0x139   :  { %v6697_v11 = vadd.f32 %v4651_v1, %v6667_v60  ;;  %v4566_v47 = vadd.f32 %v4565_v7, %v4564_v4  ;;  %v4654_v12 = vadd.f32 %v4653_v9, %v4652_v5 }
 0x13b   :  { %v6699_v16 = vadd.f32 %v4654_v12, %v4542_v3 }
 0x13d   :  { %v4567_v17 = vpop.f32.mrb[36].mxu0  ;;  %v4655_v53 = vpop.f32.mrb[36].mxu1 }
 0x13e   :  { %v4568_v8 = vpop.f32.mrb[37].mxu0  ;;  %v4656_v18 = vpop.f32.mrb[37].mxu1 }
 0x13f   :  { %v6701_v19 = vadd.f32 %v4568_v8, %v4567_v17  ;;  %v4657_v24 = vadd.f32 %v4656_v18, %v4655_v53  ;;  %v4570_v25 = vpop.f32.mrb[38].mxu0  ;;  %v4658_v26 = vpop.f32.mrb[38].mxu1 }
 0x140   :  { %v4571_v29 = vpop.f32.mrb[39].mxu0  ;;  %v4659_v30 = vpop.f32.mrb[39].mxu1 }
 0x141   :  { %v6703_v32 = vadd.f32 %v4657_v24, %v4545_v13  ;;  %v6705_v33 = vadd.f32 %v4571_v29, %v4570_v25  ;;  %v4660_v60 = vadd.f32 %v4659_v30, %v4658_v26 }
 0x143   :  { %v6707_v35 = vadd.f32 %v4660_v60, %v4548_v22 }
 0x145   :  { %v4573_v3 = vpop.f32.mrb[40].mxu0  ;;  %v4661_v37 = vpop.f32.mrb[40].mxu1 }
 0x146   :  { %v4574_v38 = vpop.f32.mrb[41].mxu0  ;;  %v4662_v42 = vpop.f32.mrb[41].mxu1 }
 0x147   :  { %v6709_v27 = vadd.f32 %v4574_v38, %v4573_v3  ;;  %v4663_v44 = vadd.f32 %v4662_v42, %v4661_v37  ;;  %v4576_v45 = vpop.f32.mrb[42].mxu0  ;;  %v4664_v46 = vpop.f32.mrb[42].mxu1 }
 0x148   :  { %v4577_v50 = vpop.f32.mrb[43].mxu0  ;;  %v4665_v51 = vpop.f32.mrb[43].mxu1 }
 0x149   :  { %v6711_v52 = vadd.f32 %v4663_v44, %v4551_v31  ;;  %v6713_v13 = vadd.f32 %v4577_v50, %v4576_v45  ;;  %v4666_v55 = vadd.f32 %v4665_v51, %v4664_v46  ;;  %v5677_v44 = vld [vmem:[%s7211_s2 + $0x40] sm:$0xff]   ;;  %v5678_v45 = vld [vmem:[%s7211_s2 + $0x48] sm:$0xff]  }
 0x14a   :  { %5172 = vmatprep.subr.bf16.mxu0 %v5677_v44 }
 0x14b   :  { %v6715_v56 = vadd.f32 %v4666_v55, %v4554_v21  ;;  %5173 = vmatpush3.bf16.msra.mxu0 %v5677_v44 }
 0x14c   :  { %5174 = vmatprep.subr.bf16.mxu0 %v5678_v45 }
 0x14d   :  { %v4579_v22 = vpop.f32.mrb[44].mxu0  ;;  %v4667_v58 = vpop.f32.mrb[44].mxu1 }
 0x14e   :  { %v4580_v40 = vpop.f32.mrb[45].mxu0  ;;  %v4668_v61 = vpop.f32.mrb[45].mxu1 }
 0x14f   :  { %v6717_v62 = vadd.f32 %v4580_v40, %v4579_v22  ;;  %v4669_v63 = vadd.f32 %v4668_v61, %v4667_v58  ;;  %v4582_v1 = vpop.f32.mrb[46].mxu0  ;;  %v4670_v4 = vpop.f32.mrb[46].mxu1  ;;  %5175 = vmatpush3.bf16.msra.mxu0 %v5678_v45  ;;  %v5682_v45 = vld [vmem:[%s7211_s2 + $0x68] sm:$0xff]  }
 0x150   :  { %v4583_v5 = vpop.f32.mrb[47].mxu0  ;;  %v4671_v7 = vpop.f32.mrb[47].mxu1 }
 0x151   :  { %v6719_v9 = vadd.f32 %v4669_v63, %v4557_v48  ;;  %v6721_v31 = vadd.f32 %v4583_v5, %v4582_v1  ;;  %v4672_v12 = vadd.f32 %v4671_v7, %v4670_v4 }
 0x153   :  { %v6723_v17 = vadd.f32 %v4672_v12, %v4560_v34  ;;  %v5680_v12 = vld [vmem:[%s7211_s2 + $0x58] sm:$0xff]  }
 0x155   :  { %v4673_v21 = vpop.f32.mrb[48].mxu1  ;;  %v4737_v53 = vpop.f32.mrb[48].mxu0 }
 0x156   :  { %v4674_v8 = vpop.f32.mrb[49].mxu1  ;;  %v4738_v18 = vpop.f32.mrb[49].mxu0 }
 0x157   :  { %v4675_v24 = vadd.f32 %v4674_v8, %v4673_v21  ;;  %v4739_v25 = vadd.f32 %v4738_v18, %v4737_v53  ;;  %v4676_v26 = vpop.f32.mrb[50].mxu1  ;;  %v4740_v29 = vpop.f32.mrb[50].mxu0 }
 0x158   :  { %v4677_v30 = vpop.f32.mrb[51].mxu1  ;;  %v4741_v60 = vpop.f32.mrb[51].mxu0 }
 0x159   :  { %v6725_v3 = vadd.f32 %v4675_v24, %v4563_v0  ;;  %v4678_v37 = vadd.f32 %v4677_v30, %v4676_v26  ;;  %v4742_v48 = vadd.f32 %v4741_v60, %v4740_v29  ;;  %v6728_v38 = vadd.f32 %v4739_v25, %v6670_v2 }
 0x15b   :  { %v6730_v42 = vadd.f32 %v4678_v37, %v4566_v47  ;;  %v6733_v34 = vadd.f32 %v4742_v48, %v6676_v6  ;;  %v5679_v6 = vld [vmem:[%s7211_s2 + $0x50] sm:$0xff]  }
 0x15c   :  { %5176 = vmatprep.subr.bf16.mxu0 %v5679_v6 }
 0x15d   :  { %v4679_v0 = vpop.f32.mrb[52].mxu1  ;;  %v4743_v46 = vpop.f32.mrb[52].mxu0  ;;  %5177 = vmatpush3.bf16.msra.mxu0 %v5679_v6 }
 0x15e   :  { %v4680_v50 = vpop.f32.mrb[53].mxu1  ;;  %v4744_v51 = vpop.f32.mrb[53].mxu0  ;;  %5178 = vmatprep.subr.bf16.mxu0 %v5680_v12 }
 0x15f   :  { %v4681_v2 = vadd.f32 %v4680_v50, %v4679_v0  ;;  %v4745_v47 = vadd.f32 %v4744_v51, %v4743_v46  ;;  %v4682_v55 = vpop.f32.mrb[54].mxu1  ;;  %v4746_v22 = vpop.f32.mrb[54].mxu0 }
 0x160   :  { %v4683_v58 = vpop.f32.mrb[55].mxu1  ;;  %v4747_v40 = vpop.f32.mrb[55].mxu0 }
 0x161   :  { %v6745_v61 = vadd.f32 %v4681_v2, %v6701_v19  ;;  %v4684_v63 = vadd.f32 %v4683_v58, %v4682_v55  ;;  %v4748_v1 = vadd.f32 %v4747_v40, %v4746_v22  ;;  %v6748_v4 = vadd.f32 %v4745_v47, %v6679_v20  ;;  %5179 = vmatpush3.bf16.msra.mxu0 %v5680_v12  ;;  %v5684_v12 = vld [vmem:[%s7211_s2 + $0x78] sm:$0xff]  }
 0x163   :  { %v6751_v5 = vadd.f32 %v4684_v63, %v6705_v33  ;;  %v6754_v7 = vadd.f32 %v4748_v1, %v6682_v14  ;;  %v5681_v14 = vld [vmem:[%s7211_s2 + $0x60] sm:$0xff]  }
 0x164   :  { %5180 = vmatprep.subr.bf16.mxu0 %v5681_v14 }
 0x165   :  { %v4685_v21 = vpop.f32.mrb[56].mxu1  ;;  %v4749_v19 = vpop.f32.mrb[56].mxu0  ;;  %5181 = vmatpush3.bf16.msra.mxu0 %v5681_v14 }
 0x166   :  { %v4686_v53 = vpop.f32.mrb[57].mxu1  ;;  %v4750_v8 = vpop.f32.mrb[57].mxu0  ;;  %5182 = vmatprep.subr.bf16.mxu0 %v5682_v45 }
 0x167   :  { %v4687_v18 = vadd.f32 %v4686_v53, %v4685_v21  ;;  %v4751_v20 = vadd.f32 %v4750_v8, %v4749_v19  ;;  %v4688_v24 = vpop.f32.mrb[58].mxu1  ;;  %v4752_v25 = vpop.f32.mrb[58].mxu0 }
 0x168   :  { %v4689_v33 = vpop.f32.mrb[59].mxu1  ;;  %v4753_v26 = vpop.f32.mrb[59].mxu0 }
 0x169   :  { %v6763_v29 = vadd.f32 %v4687_v18, %v6709_v27  ;;  %v4690_v30 = vadd.f32 %v4689_v33, %v4688_v24  ;;  %v4754_v60 = vadd.f32 %v4753_v26, %v4752_v25  ;;  %v6766_v37 = vadd.f32 %v4751_v20, %v6685_v39  ;;  %5183 = vmatpush3.bf16.msra.mxu0 %v5682_v45 }
 0x16b   :  { %v6769_v48 = vadd.f32 %v4690_v30, %v6713_v13  ;;  %v6772_v44 = vadd.f32 %v4754_v60, %v6688_v43  ;;  %v5683_v43 = vld [vmem:[%s7211_s2 + $0x70] sm:$0xff]  }
 0x16c   :  { %5184 = vmatprep.subr.bf16.mxu0 %v5683_v43 }
 0x16d   :  { %v4691_v0 = vpop.f32.mrb[60].mxu1  ;;  %v4755_v27 = vpop.f32.mrb[60].mxu0  ;;  %5185 = vmatpush3.bf16.msra.mxu0 %v5683_v43 }
 0x16e   :  { %v4692_v46 = vpop.f32.mrb[61].mxu1  ;;  %v4756_v50 = vpop.f32.mrb[61].mxu0  ;;  %5186 = vmatprep.subr.bf16.mxu0 %v5684_v12 }
 0x16f   :  { %v4693_v51 = vadd.f32 %v4692_v46, %v4691_v0  ;;  %v4757_v39 = vadd.f32 %v4756_v50, %v4755_v27  ;;  %v4694_v2 = vpop.f32.mrb[62].mxu1  ;;  %v4758_v47 = vpop.f32.mrb[62].mxu0 }
 0x170   :  { %v4695_v13 = vpop.f32.mrb[63].mxu1  ;;  %v4759_v55 = vpop.f32.mrb[63].mxu0 }
 0x171   :  { %v6781_v22 = vadd.f32 %v4693_v51, %v6717_v62  ;;  %v4696_v6 = vadd.f32 %v4695_v13, %v4694_v2  ;;  %v4760_v58 = vadd.f32 %v4759_v55, %v4758_v47  ;;  %v6784_v40 = vadd.f32 %v4757_v39, %v6691_v57  ;;  %5187 = vmatpush3.bf16.msra.mxu0 %v5684_v12 }
 0x173   :  { %v6787_v63 = vadd.f32 %v4696_v6, %v6721_v31  ;;  %v6790_v1 = vadd.f32 %v4760_v58, %v6694_v59 }
 0x175   :  { %v4697_v21 = vpop.f32.mrb[64].mxu1  ;;  %v4761_v62 = vpop.f32.mrb[64].mxu0 }
 0x176   :  { %v4698_v19 = vpop.f32.mrb[65].mxu1  ;;  %v4762_v53 = vpop.f32.mrb[65].mxu0 }
 0x177   :  { %v4699_v8 = vadd.f32 %v4698_v19, %v4697_v21  ;;  %v4763_v57 = vadd.f32 %v4762_v53, %v4761_v62  ;;  %v4700_v18 = vpop.f32.mrb[66].mxu1  ;;  %v4764_v20 = vpop.f32.mrb[66].mxu0 }
 0x178   :  { %v4701_v31 = vpop.f32.mrb[67].mxu1  ;;  %v4765_v24 = vpop.f32.mrb[67].mxu0 }
 0x179   :  { %v6796_v59 = vadd.f32 %v4699_v8, %v6624_v10  ;;  %v4702_v25 = vadd.f32 %v4701_v31, %v4700_v18  ;;  %v4766_v14 = vadd.f32 %v4765_v24, %v4764_v20  ;;  %v6799_v33 = vadd.f32 %v4763_v57, %v6697_v11 }
 0x17b   :  { %v6802_v26 = vadd.f32 %v4702_v25, %v6628_v15  ;;  %v6805_v30 = vadd.f32 %v4766_v14, %v6699_v16 }
 0x17d   :  { %v4703_v60 = vpop.f32.mrb[68].mxu1  ;;  %v4767_v45 = vpop.f32.mrb[68].mxu0 }
 0x17e   :  { %v4704_v0 = vpop.f32.mrb[69].mxu1  ;;  %v4768_v27 = vpop.f32.mrb[69].mxu0 }
 0x17f   :  { %v4705_v46 = vadd.f32 %v4704_v0, %v4703_v60  ;;  %v4769_v50 = vadd.f32 %v4768_v27, %v4767_v45  ;;  %v4706_v10 = vpop.f32.mrb[70].mxu1  ;;  %v4770_v51 = vpop.f32.mrb[70].mxu0 }
 0x180   :  { %v4707_v39 = vpop.f32.mrb[71].mxu1  ;;  %v4771_v2 = vpop.f32.mrb[71].mxu0 }
 0x181   :  { %v6808_v11 = vadd.f32 %v4705_v46, %v6636_v23  ;;  %v4708_v47 = vadd.f32 %v4707_v39, %v4706_v10  ;;  %v4772_v43 = vadd.f32 %v4771_v2, %v4770_v51  ;;  %v6811_v15 = vadd.f32 %v4769_v50, %v6703_v32 }
 0x183   :  { %v6814_v16 = vadd.f32 %v4708_v47, %v6640_v28  ;;  %v6817_v13 = vadd.f32 %v4772_v43, %v6707_v35 }
 0x185   :  { %v4709_v55 = vpop.f32.mrb[72].mxu1  ;;  %v4773_v6 = vpop.f32.mrb[72].mxu0 }
 0x186   :  { %v4710_v58 = vpop.f32.mrb[73].mxu1  ;;  %v4774_v12 = vpop.f32.mrb[73].mxu0 }
 0x187   :  { %v4711_v21 = vadd.f32 %v4710_v58, %v4709_v55  ;;  %v4775_v62 = vadd.f32 %v4774_v12, %v4773_v6  ;;  %v4712_v19 = vpop.f32.mrb[74].mxu1  ;;  %v4776_v23 = vpop.f32.mrb[74].mxu0 }
 0x188   :  { %v4713_v53 = vpop.f32.mrb[75].mxu1  ;;  %v4777_v8 = vpop.f32.mrb[75].mxu0 }
 0x189   :  { %v6820_v57 = vadd.f32 %v4711_v21, %v6647_v36  ;;  %v4714_v32 = vadd.f32 %v4713_v53, %v4712_v19  ;;  %v4778_v18 = vadd.f32 %v4777_v8, %v4776_v23  ;;  %v6823_v28 = vadd.f32 %v4775_v62, %v6711_v52 }
 0x18b   :  { %v6826_v35 = vadd.f32 %v4714_v32, %v6651_v41  ;;  %v6829_v20 = vadd.f32 %v4778_v18, %v6715_v56 }
 0x18d   :  { %v4715_v31 = vpop.f32.mrb[76].mxu1  ;;  %v4779_v24 = vpop.f32.mrb[76].mxu0 }
 0x18e   :  { %v4716_v25 = vpop.f32.mrb[77].mxu1  ;;  %v4780_v14 = vpop.f32.mrb[77].mxu0 }
 0x18f   :  { %v4717_v60 = vadd.f32 %v4716_v25, %v4715_v31  ;;  %v4781_v45 = vadd.f32 %v4780_v14, %v4779_v24  ;;  %v4718_v0 = vpop.f32.mrb[78].mxu1  ;;  %v4782_v36 = vpop.f32.mrb[78].mxu0 }
 0x190   :  { %v4719_v27 = vpop.f32.mrb[79].mxu1  ;;  %v4783_v46 = vpop.f32.mrb[79].mxu0 }
 0x191   :  { %v6832_v50 = vadd.f32 %v4717_v60, %v6658_v49  ;;  %v4720_v52 = vadd.f32 %v4719_v27, %v4718_v0  ;;  %v4784_v10 = vadd.f32 %v4783_v46, %v4782_v36  ;;  %v6835_v41 = vadd.f32 %v4781_v45, %v6719_v9 }
 0x193   :  { %v6838_v56 = vadd.f32 %v4720_v52, %v6662_v54  ;;  %v6841_v51 = vadd.f32 %v4784_v10, %v6723_v17 }
 0x195   :  { %v4785_v39 = vpop.f32.mrb[80].mxu0  ;;  %v5094_v2 = vpop.f32.mrb[80].mxu1 }
 0x196   :  { %v1324_v47 = vadd.f32 %v5094_v2, %v6748_v4  ;;  %v4786_v43 = vpop.f32.mrb[81].mxu0  ;;  %v1315_v55 = vpop.f32.mrb[81].mxu1 }
 0x197   :  { %v4787_v6 = vadd.f32 %v4786_v43, %v4785_v39  ;;  %v1316_v49 = vadd.f32 %v1315_v55, %v6728_v38  ;;  %v4788_v58 = vpop.f32.mrb[82].mxu0  ;;  %v5095_v12 = vpop.f32.mrb[82].mxu1 }
 0x198   :  { %v1327_v9 = vadd.f32 %v5095_v12, %v6754_v7  ;;  %v4789_v21 = vpop.f32.mrb[83].mxu0  ;;  %v1318_v62 = vpop.f32.mrb[83].mxu1  ;;  %v1444_v23 = vmax.f32 %v1324_v47, 0.0 }
 0x199   :  { %v4790_v54 = vadd.f32 %v4789_v21, %v4788_v58  ;;  %v1319_v19 = vadd.f32 %v1318_v62, %v6733_v34  ;;  %v6848_v17 = vadd.f32 %v4787_v6, %v6725_v3  ;;  %v1442_v4 = vmax.f32 %v1316_v49, 0.0 }
 0x19a   :  { %v1445_v53 = vmax.f32 %v1327_v9, 0.0 }
 0x19b   :  { %v1443_v8 = vmax.f32 %v1319_v19, 0.0  ;;  %v6851_v32 = vadd.f32 %v4790_v54, %v6730_v42 }
 0x19c   :  { %v1475_v38 = vpack.c.bf16 %v1445_v53, %v1444_v23 }
 0x19d   :  { %v1474_v18 = vpack.c.bf16 %v1443_v8, %v1442_v4  ;;  %v4791_v31 = vpop.f32.mrb[84].mxu0  ;;  %v5098_v24 = vpop.f32.mrb[84].mxu1 }
 0x19e   :  { %v1340_v7 = vadd.f32 %v5098_v24, %v6784_v40  ;;  %v4792_v25 = vpop.f32.mrb[85].mxu0  ;;  %v1331_v14 = vpop.f32.mrb[85].mxu1 }
 0x19f   :  { %v4793_v60 = vadd.f32 %v4792_v25, %v4791_v31  ;;  %v1332_v34 = vadd.f32 %v1331_v14, %v6766_v37  ;;  %v4794_v3 = vpop.f32.mrb[86].mxu0  ;;  %v5099_v45 = vpop.f32.mrb[86].mxu1  ;;  %5140 = vmatprep.mubr.bf16.mxu1 %v1474_v18 }
 0x1a0   :  { %v1343_v0 = vadd.f32 %v5099_v45, %v6790_v1  ;;  %v4795_v36 = vpop.f32.mrb[87].mxu0  ;;  %v1334_v27 = vpop.f32.mrb[87].mxu1  ;;  %5141 = vmatmul.mubr.bf16.vlgmr.msra.gmra.mrb[112].mxu1 %v1475_v38  ;;  %v1448_v10 = vmax.f32 %v1340_v7, 0.0 }
 0x1a1   :  { %v4796_v42 = vadd.f32 %v4795_v36, %v4794_v3  ;;  %v1335_v46 = vadd.f32 %v1334_v27, %v6772_v44  ;;  %v1227_v52 = vadd.f32 %v4793_v60, %v6745_v61  ;;  %v1446_v39 = vmax.f32 %v1332_v34, 0.0 }
 0x1a2   :  { %v1449_v40 = vmax.f32 %v1343_v0, 0.0 }
 0x1a3   :  { %v1447_v2 = vmax.f32 %v1335_v46, 0.0  ;;  %v1230_v47 = vadd.f32 %v4796_v42, %v6751_v5 }
 0x1a4   :  { %v1477_v37 = vpack.c.bf16 %v1449_v40, %v1448_v10 }
 0x1a5   :  { %v1476_v43 = vpack.c.bf16 %v1447_v2, %v1446_v39  ;;  %v4797_v55 = vpop.f32.mrb[88].mxu0  ;;  %v5102_v6 = vpop.f32.mrb[88].mxu1 }
 0x1a6   :  { %v1356_v1 = vadd.f32 %v5102_v6, %v6811_v15  ;;  %v4798_v49 = vpop.f32.mrb[89].mxu0  ;;  %v1347_v58 = vpop.f32.mrb[89].mxu1 }
 0x1a7   :  { %v4799_v12 = vadd.f32 %v4798_v49, %v4797_v55  ;;  %v1348_v9 = vadd.f32 %v1347_v58, %v6799_v33  ;;  %v4800_v44 = vpop.f32.mrb[90].mxu0  ;;  %v5103_v21 = vpop.f32.mrb[90].mxu1  ;;  %5144 = vmatprep.mubr.bf16.mxu1 %v1476_v43 }
 0x1a8   :  { %v1359_v61 = vadd.f32 %v5103_v21, %v6817_v13  ;;  %v4801_v62 = vpop.f32.mrb[91].mxu0  ;;  %v1350_v54 = vpop.f32.mrb[91].mxu1  ;;  %5145 = vmatmul.mubr.bf16.gmra.mrb[116].mxu1 %v1477_v37  ;;  %v1452_v53 = vmax.f32 %v1356_v1, 0.0 }
 0x1a9   :  { %v4802_v5 = vadd.f32 %v4801_v62, %v4800_v44  ;;  %v1351_v19 = vadd.f32 %v1350_v54, %v6805_v30  ;;  %v1235_v23 = vadd.f32 %v4799_v12, %v6763_v29  ;;  %v1450_v4 = vmax.f32 %v1348_v9, 0.0 }
 0x1aa   :  { %v1453_v15 = vmax.f32 %v1359_v61, 0.0 }
 0x1ab   :  { %v1451_v8 = vmax.f32 %v1351_v19, 0.0  ;;  %v6865_v38 = vadd.f32 %v4802_v5, %v6769_v48 }
 0x1ac   :  { %v1479_v33 = vpack.c.bf16 %v1453_v15, %v1452_v53 }
 0x1ad   :  { %v1478_v18 = vpack.c.bf16 %v1451_v8, %v1450_v4  ;;  %v4803_v31 = vpop.f32.mrb[92].mxu0  ;;  %v5106_v24 = vpop.f32.mrb[92].mxu1 }
 0x1ae   :  { %v1372_v13 = vadd.f32 %v5106_v24, %v6835_v41  ;;  %v4804_v7 = vpop.f32.mrb[93].mxu0  ;;  %v1363_v25 = vpop.f32.mrb[93].mxu1 }
 0x1af   :  { %v4805_v14 = vadd.f32 %v4804_v7, %v4803_v31  ;;  %v1364_v30 = vadd.f32 %v1363_v25, %v6823_v28  ;;  %v4806_v60 = vpop.f32.mrb[94].mxu0  ;;  %v5107_v29 = vpop.f32.mrb[94].mxu1  ;;  %5148 = vmatprep.mubr.bf16.mxu1 %v1478_v18 }
 0x1b0   :  { %v1375_v34 = vadd.f32 %v5107_v29, %v6841_v51  ;;  %v4807_v3 = vpop.f32.mrb[95].mxu0  ;;  %v1366_v45 = vpop.f32.mrb[95].mxu1  ;;  %5149 = vmatmul.mubr.bf16.gmra.mrb[120].mxu1 %v1479_v33  ;;  %v1456_v27 = vmax.f32 %v1372_v13, 0.0 }
 0x1b1   :  { %v4808_v48 = vadd.f32 %v4807_v3, %v4806_v60  ;;  %v1367_v0 = vadd.f32 %v1366_v45, %v6829_v20  ;;  %v1243_v36 = vadd.f32 %v4805_v14, %v6781_v22  ;;  %v1454_v42 = vmax.f32 %v1364_v30, 0.0 }
 0x1b2   :  { %v1457_v41 = vmax.f32 %v1375_v34, 0.0 }
 0x1b3   :  { %v1455_v46 = vmax.f32 %v1367_v0, 0.0  ;;  %v1246_v10 = vadd.f32 %v4808_v48, %v6787_v63 }
 0x1b4   :  { %v1481_v28 = vpack.c.bf16 %v1457_v41, %v1456_v27 }
 0x1b5   :  { %v1480_v40 = vpack.c.bf16 %v1455_v46, %v1454_v42  ;;  %v4809_v39 = vpop.f32.mrb[96].mxu0  ;;  %v5110_v2 = vpop.f32.mrb[96].mxu1 }
 0x1b6   :  { %v1388_v37 = vadd.f32 %v5110_v2, %v1227_v52  ;;  %v4810_v51 = vpop.f32.mrb[97].mxu0  ;;  %v1379_v43 = vpop.f32.mrb[97].mxu1 }
 0x1b7   :  { %v4811_v55 = vadd.f32 %v4810_v51, %v4809_v39  ;;  %v1380_v6 = vadd.f32 %v1379_v43, %v6848_v17  ;;  %v4812_v1 = vpop.f32.mrb[98].mxu0  ;;  %v5111_v20 = vpop.f32.mrb[98].mxu1  ;;  %5152 = vmatprep.mubr.bf16.mxu1 %v1480_v40 }
 0x1b8   :  { %v1391_v22 = vadd.f32 %v5111_v20, %v1230_v47  ;;  %v4813_v49 = vpop.f32.mrb[99].mxu0  ;;  %v1382_v58 = vpop.f32.mrb[99].mxu1  ;;  %5153 = vmatmul.mubr.bf16.gmra.mrb[124].mxu1 %v1481_v28  ;;  %v1460_v44 = vmax.f32 %v1388_v37, 0.0 }
 0x1b9   :  { %v4814_v12 = vadd.f32 %v4813_v49, %v4812_v1  ;;  %v1383_v63 = vadd.f32 %v1382_v58, %v6851_v32  ;;  %v1251_v9 = vadd.f32 %v4811_v55, %v6796_v59  ;;  %v1458_v52 = vmax.f32 %v1380_v6, 0.0 }
 0x1ba   :  { %v1461_v21 = vmax.f32 %v1391_v22, 0.0 }
 0x1bb   :  { %v1459_v61 = vmax.f32 %v1383_v63, 0.0  ;;  %v1254_v62 = vadd.f32 %v4814_v12, %v6802_v26 }
 0x1bc   :  { %v1483_v54 = vpack.c.bf16 %v1461_v21, %v1460_v44 }
 0x1bd   :  { %v1482_v17 = vpack.c.bf16 %v1459_v61, %v1458_v52  ;;  %v4815_v5 = vpop.f32.mrb[100].mxu0  ;;  %v5114_v19 = vpop.f32.mrb[100].mxu1 }
 0x1be   :  { %v1404_v53 = vadd.f32 %v5114_v19, %v1243_v36  ;;  %v4816_v47 = vpop.f32.mrb[101].mxu0  ;;  %v1395_v15 = vpop.f32.mrb[101].mxu1 }
 0x1bf   :  { %v4817_v4 = vadd.f32 %v4816_v47, %v4815_v5  ;;  %v1396_v8 = vadd.f32 %v1395_v15, %v1235_v23  ;;  %v4818_v33 = vpop.f32.mrb[102].mxu0  ;;  %v5115_v18 = vpop.f32.mrb[102].mxu1  ;;  %5156 = vmatprep.mubr.bf16.mxu1 %v1482_v17  ;;  %v5685_v15 = vld [vmem:[%s7211_s2 + $0x80] sm:$0xff]  }
 0x1c0   :  { %v1407_v32 = vadd.f32 %v5115_v18, %v1246_v10  ;;  %v4819_v59 = vpop.f32.mrb[103].mxu0  ;;  %v1398_v31 = vpop.f32.mrb[103].mxu1  ;;  %5157 = vmatmul.mubr.bf16.gmra.mrb[128].mxu1 %v1483_v54  ;;  %v1464_v7 = vmax.f32 %v1404_v53, 0.0  ;;  %5220 = vmatprep.subr.bf16.mxu1 %v5685_v15  ;;  %v5691_v18 = vld [vmem:[%s7211_s2 + $0xb0] sm:$0xff]  }
 0x1c1   :  { %v4820_v24 = vadd.f32 %v4819_v59, %v4818_v33  ;;  %v1399_v13 = vadd.f32 %v1398_v31, %v6865_v38  ;;  %v1259_v26 = vadd.f32 %v4817_v4, %v6808_v11  ;;  %v1462_v14 = vmax.f32 %v1396_v8, 0.0  ;;  %5221 = vmatpush3.bf16.msra.mxu1 %v5685_v15  ;;  %v5688_v4 = vld [vmem:[%s7211_s2 + $0x98] sm:$0xff]   ;;  %v5689_v8 = vld [vmem:[%s7211_s2 + $0xa0] sm:$0xff]   ;;  %v5690_v33 = vld [vmem:[%s7211_s2 + $0xa8] sm:$0xff]  }
 0x1c2   :  { %v1465_v25 = vmax.f32 %v1407_v32, 0.0 }
 0x1c3   :  { %v1463_v30 = vmax.f32 %v1399_v13, 0.0  ;;  %v1262_v60 = vadd.f32 %v4820_v24, %v6814_v16 }
 0x1c4   :  { %v1485_v29 = vpack.c.bf16 %v1465_v25, %v1464_v7 }
 0x1c5   :  { %v1484_v23 = vpack.c.bf16 %v1463_v30, %v1462_v14  ;;  %v4821_v34 = vpop.f32.mrb[104].mxu0  ;;  %v5118_v3 = vpop.f32.mrb[104].mxu1 }
 0x1c6   :  { %v1420_v45 = vadd.f32 %v5118_v3, %v1259_v26  ;;  %v4822_v48 = vpop.f32.mrb[105].mxu0  ;;  %v1411_v0 = vpop.f32.mrb[105].mxu1 }
 0x1c7   :  { %v4823_v36 = vadd.f32 %v4822_v48, %v4821_v34  ;;  %v1412_v27 = vadd.f32 %v1411_v0, %v1251_v9  ;;  %v4824_v41 = vpop.f32.mrb[106].mxu0  ;;  %v5119_v42 = vpop.f32.mrb[106].mxu1  ;;  %5160 = vmatprep.mubr.bf16.mxu1 %v1484_v23 }
 0x1c8   :  { %v1423_v38 = vadd.f32 %v5119_v42, %v1262_v60  ;;  %v4825_v11 = vpop.f32.mrb[107].mxu0  ;;  %v1414_v46 = vpop.f32.mrb[107].mxu1  ;;  %5161 = vmatmul.mubr.bf16.gmra.mrb[132].mxu1 %v1485_v29  ;;  %v1468_v40 = vmax.f32 %v1420_v45, 0.0 }
 0x1c9   :  { %v4826_v10 = vadd.f32 %v4825_v11, %v4824_v41  ;;  %v1415_v28 = vadd.f32 %v1414_v46, %v1254_v62  ;;  %v1267_v16 = vadd.f32 %v4823_v36, %v6820_v57  ;;  %v1466_v2 = vmax.f32 %v1412_v27, 0.0 }
 0x1ca   :  { %v1469_v39 = vmax.f32 %v1423_v38, 0.0 }
 0x1cb   :  { %v1467_v37 = vmax.f32 %v1415_v28, 0.0  ;;  %v1270_v51 = vadd.f32 %v4826_v10, %v6826_v35 }
 0x1cc   :  { %v1487_v43 = vpack.c.bf16 %v1469_v39, %v1468_v40 }
 0x1cd   :  { %v1486_v55 = vpack.c.bf16 %v1467_v37, %v1466_v2  ;;  %v4827_v6 = vpop.f32.mrb[108].mxu0  ;;  %v5122_v1 = vpop.f32.mrb[108].mxu1 }
 0x1ce   :  { %v4828_v20 = vpop.f32.mrb[109].mxu0  ;;  %v1427_v22 = vpop.f32.mrb[109].mxu1 }
 0x1cf   :  { %v4829_v49 = vadd.f32 %v4828_v20, %v4827_v6  ;;  %v1428_v58 = vadd.f32 %v1427_v22, %v1267_v16  ;;  %v4830_v12 = vpop.f32.mrb[110].mxu0  ;;  %v5123_v63 = vpop.f32.mrb[110].mxu1  ;;  %5164 = vmatprep.mubr.bf16.mxu1 %v1486_v55 }
 0x1d0   :  { %v4831_v9 = vpop.f32.mrb[111].mxu0  ;;  %v1430_v44 = vpop.f32.mrb[111].mxu1  ;;  %5165 = vmatmul.mubr.bf16.gmra.mrb[136].mxu1 %v1487_v43 }
 0x1d1   :  { %v1275_v57 = vadd.f32 %v4829_v49, %v6832_v50  ;;  %v4832_v21 = vadd.f32 %v4831_v9, %v4830_v12  ;;  %v1431_v52 = vadd.f32 %v1430_v44, %v1270_v51  ;;  %v1470_v35 = vmax.f32 %v1428_v58, 0.0  ;;  %v5686_v50 = vld [vmem:[%s7211_s2 + $0x88] sm:$0xff]  }
 0x1d2   :  { %5222 = vmatprep.subr.bf16.mxu1 %v5686_v50 }
 0x1d3   :  { %v1436_v61 = vadd.f32 %v5122_v1, %v1275_v57  ;;  %v1278_v62 = vadd.f32 %v4832_v21, %v6838_v56  ;;  %v1471_v54 = vmax.f32 %v1431_v52, 0.0  ;;  %v5687_v56 = vld [vmem:[%s7211_s2 + $0x90] sm:$0xff]   ;;  %5223 = vmatpush3.bf16.msra.mxu1 %v5686_v50 }
 0x1d4   :  { %5224 = vmatprep.subr.bf16.mxu1 %v5687_v56 }
 0x1d5   :  { %v1439_v17 = vadd.f32 %v5123_v63, %v1278_v62  ;;  %v1488_v5 = vpack.c.bf16 %v1471_v54, %v1470_v35  ;;  %v1472_v19 = vmax.f32 %v1436_v61, 0.0 }
 0x1d7   :  { %v1473_v53 = vmax.f32 %v1439_v17, 0.0  ;;  %5168 = vmatprep.mubr.bf16.mxu1 %v1488_v5  ;;  %5225 = vmatpush3.bf16.msra.mxu1 %v5687_v56 }
 0x1d8   :  { %5226 = vmatprep.subr.bf16.mxu1 %v5688_v4 }
 0x1d9   :  { %v1489_v47 = vpack.c.bf16 %v1473_v53, %v1472_v19 }
 0x1db   :  { %5169 = vmatmul.mubr.bf16.gmra.mrb[140].mxu1 %v1489_v47 }
 0x1dc   :  { %5227 = vmatpush3.bf16.msra.mxu1 %v5688_v4 }
 0x1dd   :  { %5228 = vmatprep.subr.bf16.mxu1 %v5689_v8 }
 0x1e0   :  { %5229 = vmatpush3.bf16.msra.mxu1 %v5689_v8 }
 0x1e1   :  { %5230 = vmatprep.subr.bf16.mxu1 %v5690_v33 }
 0x1e4   :  { %5231 = vmatpush3.bf16.msra.mxu1 %v5690_v33 }
 0x1e5   :  { %5232 = vmatprep.subr.bf16.mxu1 %v5691_v18 }
 0x1e8   :  { %5233 = vmatpush3.bf16.msra.mxu1 %v5691_v18 }
 0x273   :  { %v5142_v32 = vpop.f32.mrb[112].mxu1 }
 0x274   :  { %v1588_v59 = vpop.f32.mrb[113].mxu1  ;;  %v1717_v24 = vmax.f32 %v5142_v32, 0.0 }
 0x275   :  { %v5143_v31 = vpop.f32.mrb[114].mxu1  ;;  %v1715_v7 = vmax.f32 %v1588_v59, 0.0 }
 0x276   :  { %v1718_v13 = vmax.f32 %v5143_v31, 0.0  ;;  %v1591_v26 = vpop.f32.mrb[115].mxu1 }
 0x277   :  { %v1716_v25 = vmax.f32 %v1591_v26, 0.0 }
 0x278   :  { %v1748_v14 = vpack.c.bf16 %v1718_v13, %v1717_v24 }
 0x279   :  { %v1747_v30 = vpack.c.bf16 %v1716_v25, %v1715_v7 }
 0x27b   :  { %v5146_v60 = vpop.f32.mrb[116].mxu1  ;;  %5188 = vmatprep.mubr.bf16.mxu0 %v1747_v30 }
 0x27c   :  { %v1604_v29 = vpop.f32.mrb[117].mxu1  ;;  %5189 = vmatmul.mubr.bf16.vlgmr.msra.gmra.mrb[112].mxu0 %v1748_v14  ;;  %v1721_v34 = vmax.f32 %v5146_v60, 0.0 }
 0x27d   :  { %v5147_v23 = vpop.f32.mrb[118].mxu1  ;;  %v1719_v48 = vmax.f32 %v1604_v29, 0.0 }
 0x27e   :  { %v1722_v3 = vmax.f32 %v5147_v23, 0.0  ;;  %v1607_v45 = vpop.f32.mrb[119].mxu1 }
 0x27f   :  { %v1720_v0 = vmax.f32 %v1607_v45, 0.0 }
 0x280   :  { %v1750_v36 = vpack.c.bf16 %v1722_v3, %v1721_v34 }
 0x281   :  { %v1749_v27 = vpack.c.bf16 %v1720_v0, %v1719_v48  ;;  %v5692_v48 = vld [vmem:[%s7211_s2 + $0xb8] sm:$0xff]   ;;  %v5693_v0 = vld [vmem:[%s7211_s2 + $0xc0] sm:$0xff]  }
 0x282   :  { %5234 = vmatprep.subr.bf16.mxu1 %v5692_v48  ;;  %5268 = vmatprep.subr.bf16.mxu0 %v5693_v0 }
 0x283   :  { %v5150_v41 = vpop.f32.mrb[120].mxu1  ;;  %5192 = vmatprep.mubr.bf16.mxu0 %v1749_v27  ;;  %5235 = vmatpush3.bf16.msra.mxu1 %v5692_v48  ;;  %v5695_v27 = vld [vmem:[%s7211_s2 + $0xd0] sm:$0xff]  }
 0x284   :  { %v1620_v42 = vpop.f32.mrb[121].mxu1  ;;  %5193 = vmatmul.mubr.bf16.gmra.mrb[116].mxu0 %v1750_v36  ;;  %v1725_v11 = vmax.f32 %v5150_v41, 0.0  ;;  %v5694_v36 = vld [vmem:[%s7211_s2 + $0xc8] sm:$0xff]   ;;  %v5696_v41 = vld [vmem:[%s7211_s2 + $0xd8] sm:$0xff]  }
 0x285   :  { %v5151_v38 = vpop.f32.mrb[122].mxu1  ;;  %v1723_v28 = vmax.f32 %v1620_v42, 0.0  ;;  %5269 = vmatpush3.bf16.msra.mxu0 %v5693_v0  ;;  %v5697_v42 = vld [vmem:[%s7211_s2 + $0xe0] sm:$0xff]  }
 0x286   :  { %v1726_v46 = vmax.f32 %v5151_v38, 0.0  ;;  %v1623_v10 = vpop.f32.mrb[123].mxu1  ;;  %5270 = vmatprep.subr.bf16.mxu0 %v5694_v36  ;;  %v5698_v38 = vld [vmem:[%s7211_s2 + $0xe8] sm:$0xff]  }
 0x287   :  { %v1724_v16 = vmax.f32 %v1623_v10, 0.0 }
 0x288   :  { %v1752_v40 = vpack.c.bf16 %v1726_v46, %v1725_v11  ;;  %v5699_v11 = vld [vmem:[%s7211_s2 + $0xf0] sm:$0xff]  }
 0x289   :  { %v1751_v39 = vpack.c.bf16 %v1724_v16, %v1723_v28  ;;  %5271 = vmatpush3.bf16.msra.mxu0 %v5694_v36 }
 0x28a   :  { %5272 = vmatprep.subr.bf16.mxu0 %v5695_v27 }
 0x28b   :  { %v5154_v2 = vpop.f32.mrb[124].mxu1  ;;  %5196 = vmatprep.mubr.bf16.mxu0 %v1751_v39 }
 0x28c   :  { %v1636_v37 = vpop.f32.mrb[125].mxu1  ;;  %5197 = vmatmul.mubr.bf16.gmra.mrb[120].mxu0 %v1752_v40  ;;  %v1729_v43 = vmax.f32 %v5154_v2, 0.0 }
 0x28d   :  { %v5155_v51 = vpop.f32.mrb[126].mxu1  ;;  %v1727_v1 = vmax.f32 %v1636_v37, 0.0  ;;  %5273 = vmatpush3.bf16.msra.mxu0 %v5695_v27 }
 0x28e   :  { %v1730_v55 = vmax.f32 %v5155_v51, 0.0  ;;  %v1639_v6 = vpop.f32.mrb[127].mxu1  ;;  %5274 = vmatprep.subr.bf16.mxu0 %v5696_v41 }
 0x28f   :  { %v1728_v20 = vmax.f32 %v1639_v6, 0.0 }
 0x290   :  { %v1754_v22 = vpack.c.bf16 %v1730_v55, %v1729_v43 }
 0x291   :  { %v1753_v49 = vpack.c.bf16 %v1728_v20, %v1727_v1  ;;  %5275 = vmatpush3.bf16.msra.mxu0 %v5696_v41 }
 0x292   :  { %5276 = vmatprep.subr.bf16.mxu0 %v5697_v42 }
 0x293   :  { %v5158_v58 = vpop.f32.mrb[128].mxu1  ;;  %5200 = vmatprep.mubr.bf16.mxu0 %v1753_v49 }
 0x294   :  { %v1652_v12 = vpop.f32.mrb[129].mxu1  ;;  %5201 = vmatmul.mubr.bf16.gmra.mrb[124].mxu0 %v1754_v22  ;;  %v1733_v9 = vmax.f32 %v5158_v58, 0.0 }
 0x295   :  { %v5159_v63 = vpop.f32.mrb[130].mxu1  ;;  %v1731_v21 = vmax.f32 %v1652_v12, 0.0  ;;  %5277 = vmatpush3.bf16.msra.mxu0 %v5697_v42 }
 0x296   :  { %v1734_v44 = vmax.f32 %v5159_v63, 0.0  ;;  %v1655_v57 = vpop.f32.mrb[131].mxu1  ;;  %5278 = vmatprep.subr.bf16.mxu0 %v5698_v38 }
 0x297   :  { %v1732_v52 = vmax.f32 %v1655_v57, 0.0 }
 0x298   :  { %v1756_v61 = vpack.c.bf16 %v1734_v44, %v1733_v9 }
 0x299   :  { %v1755_v35 = vpack.c.bf16 %v1732_v52, %v1731_v21  ;;  %5279 = vmatpush3.bf16.msra.mxu0 %v5698_v38 }
 0x29a   :  { %5280 = vmatprep.subr.bf16.mxu0 %v5699_v11 }
 0x29b   :  { %v5162_v62 = vpop.f32.mrb[132].mxu1  ;;  %5204 = vmatprep.mubr.bf16.mxu0 %v1755_v35 }
 0x29c   :  { %v1668_v54 = vpop.f32.mrb[133].mxu1  ;;  %5205 = vmatmul.mubr.bf16.gmra.mrb[128].mxu0 %v1756_v61  ;;  %v1737_v5 = vmax.f32 %v5162_v62, 0.0 }
 0x29d   :  { %v5163_v17 = vpop.f32.mrb[134].mxu1  ;;  %v1735_v47 = vmax.f32 %v1668_v54, 0.0  ;;  %5281 = vmatpush3.bf16.msra.mxu0 %v5699_v11 }
 0x29e   :  { %v1738_v19 = vmax.f32 %v5163_v17, 0.0  ;;  %v1671_v53 = vpop.f32.mrb[135].mxu1 }
 0x29f   :  { %v1736_v15 = vmax.f32 %v1671_v53, 0.0 }
 0x2a0   :  { %v1758_v50 = vpack.c.bf16 %v1738_v19, %v1737_v5 }
 0x2a1   :  { %v1757_v56 = vpack.c.bf16 %v1736_v15, %v1735_v47 }
 0x2a3   :  { %v5166_v4 = vpop.f32.mrb[136].mxu1  ;;  %5208 = vmatprep.mubr.bf16.mxu0 %v1757_v56 }
 0x2a4   :  { %v1684_v8 = vpop.f32.mrb[137].mxu1  ;;  %5209 = vmatmul.mubr.bf16.gmra.mrb[132].mxu0 %v1758_v50  ;;  %v1741_v18 = vmax.f32 %v5166_v4, 0.0 }
 0x2a5   :  { %v5167_v33 = vpop.f32.mrb[138].mxu1  ;;  %v1739_v31 = vmax.f32 %v1684_v8, 0.0 }
 0x2a6   :  { %v1742_v32 = vmax.f32 %v5167_v33, 0.0  ;;  %v1687_v59 = vpop.f32.mrb[139].mxu1 }
 0x2a7   :  { %v1740_v24 = vmax.f32 %v1687_v59, 0.0 }
 0x2a8   :  { %v1760_v13 = vpack.c.bf16 %v1742_v32, %v1741_v18 }
 0x2a9   :  { %v1759_v26 = vpack.c.bf16 %v1740_v24, %v1739_v31 }
 0x2ab   :  { %5212 = vmatprep.mubr.bf16.mxu0 %v1759_v26 }
 0x2ac   :  { %5213 = vmatmul.mubr.bf16.gmra.mrb[136].mxu0 %v1760_v13 }
 0x2ae   :  { %v5170_v7 = vpop.f32.mrb[140].mxu1 }
 0x2af   :  { %v1700_v25 = vpop.f32.mrb[141].mxu1  ;;  %v1745_v30 = vmax.f32 %v5170_v7, 0.0 }
 0x2b0   :  { %v5171_v14 = vpop.f32.mrb[142].mxu1  ;;  %v1743_v23 = vmax.f32 %v1700_v25, 0.0 }
 0x2b1   :  { %v1746_v60 = vmax.f32 %v5171_v14, 0.0  ;;  %v1703_v29 = vpop.f32.mrb[143].mxu1 }
 0x2b2   :  { %v1744_v34 = vmax.f32 %v1703_v29, 0.0 }
 0x2b3   :  { %v1762_v3 = vpack.c.bf16 %v1746_v60, %v1745_v30 }
 0x2b4   :  { %v1761_v45 = vpack.c.bf16 %v1744_v34, %v1743_v23 }
 0x2b6   :  { %5216 = vmatprep.mubr.bf16.mxu0 %v1761_v45 }
 0x2b7   :  { %5217 = vmatmul.mubr.bf16.gmra.mrb[140].mxu0 %v1762_v3 }
 0x34f   :  { %v5190_v46 = vpop.f32.mrb[112].mxu0 }
 0x350   :  { %v1862_v10 = vpop.f32.mrb[113].mxu0  ;;  %v1991_v16 = vmax.f32 %v5190_v46, 0.0 }
 0x351   :  { %v5191_v28 = vpop.f32.mrb[114].mxu0  ;;  %v1989_v2 = vmax.f32 %v1862_v10, 0.0 }
 0x352   :  { %v1992_v40 = vmax.f32 %v5191_v28, 0.0  ;;  %v1865_v39 = vpop.f32.mrb[115].mxu0 }
 0x353   :  { %v1990_v37 = vmax.f32 %v1865_v39, 0.0 }
 0x354   :  { %v2022_v51 = vpack.c.bf16 %v1992_v40, %v1991_v16 }
 0x355   :  { %v2021_v43 = vpack.c.bf16 %v1990_v37, %v1989_v2 }
 0x357   :  { %v5194_v55 = vpop.f32.mrb[116].mxu0  ;;  %5236 = vmatprep.mubr.bf16.mxu1 %v2021_v43 }
 0x358   :  { %v1878_v6 = vpop.f32.mrb[117].mxu0  ;;  %5237 = vmatmul.mubr.bf16.vlgmr.msra.gmra.mrb[144].mxu1 %v2022_v51  ;;  %v1995_v20 = vmax.f32 %v5194_v55, 0.0 }
 0x359   :  { %v5195_v1 = vpop.f32.mrb[118].mxu0  ;;  %v1993_v58 = vmax.f32 %v1878_v6, 0.0 }
 0x35a   :  { %v1996_v22 = vmax.f32 %v5195_v1, 0.0  ;;  %v1881_v49 = vpop.f32.mrb[119].mxu0 }
 0x35b   :  { %v1994_v12 = vmax.f32 %v1881_v49, 0.0 }
 0x35c   :  { %v2024_v63 = vpack.c.bf16 %v1996_v22, %v1995_v20 }
 0x35d   :  { %v2023_v9 = vpack.c.bf16 %v1994_v12, %v1993_v58  ;;  %v5700_v58 = vld [vmem:[%s7211_s2 + $0xf8] sm:$0xff]   ;;  %v5701_v12 = vld [vmem:[%s7211_s2 + $0x100] sm:$0xff]  }
 0x35e   :  { %5282 = vmatprep.subr.bf16.mxu0 %v5700_v58  ;;  %5316 = vmatprep.subr.bf16.mxu1 %v5701_v12 }
 0x35f   :  { %v5198_v44 = vpop.f32.mrb[120].mxu0  ;;  %5240 = vmatprep.mubr.bf16.mxu1 %v2023_v9  ;;  %5283 = vmatpush3.bf16.msra.mxu0 %v5700_v58  ;;  %v5703_v9 = vld [vmem:[%s7211_s2 + $0x110] sm:$0xff]  }
 0x360   :  { %v1894_v57 = vpop.f32.mrb[121].mxu0  ;;  %5241 = vmatmul.mubr.bf16.gmra.mrb[148].mxu1 %v2024_v63  ;;  %v1999_v52 = vmax.f32 %v5198_v44, 0.0  ;;  %v5702_v63 = vld [vmem:[%s7211_s2 + $0x108] sm:$0xff]   ;;  %v5704_v44 = vld [vmem:[%s7211_s2 + $0x118] sm:$0xff]  }
 0x361   :  { %v5199_v21 = vpop.f32.mrb[122].mxu0  ;;  %v1997_v62 = vmax.f32 %v1894_v57, 0.0  ;;  %5317 = vmatpush3.bf16.msra.mxu1 %v5701_v12  ;;  %v5705_v57 = vld [vmem:[%s7211_s2 + $0x120] sm:$0xff]  }
 0x362   :  { %v2000_v61 = vmax.f32 %v5199_v21, 0.0  ;;  %v1897_v35 = vpop.f32.mrb[123].mxu0  ;;  %5318 = vmatprep.subr.bf16.mxu1 %v5702_v63  ;;  %v5706_v21 = vld [vmem:[%s7211_s2 + $0x128] sm:$0xff]  }
 0x363   :  { %v1998_v54 = vmax.f32 %v1897_v35, 0.0 }
 0x364   :  { %v2026_v17 = vpack.c.bf16 %v2000_v61, %v1999_v52  ;;  %v5707_v52 = vld [vmem:[%s7211_s2 + $0x130] sm:$0xff]  }
 0x365   :  { %v2025_v5 = vpack.c.bf16 %v1998_v54, %v1997_v62  ;;  %5319 = vmatpush3.bf16.msra.mxu1 %v5702_v63 }
 0x366   :  { %5320 = vmatprep.subr.bf16.mxu1 %v5703_v9 }
 0x367   :  { %v5202_v19 = vpop.f32.mrb[124].mxu0  ;;  %5244 = vmatprep.mubr.bf16.mxu1 %v2025_v5 }
 0x368   :  { %v1910_v53 = vpop.f32.mrb[125].mxu0  ;;  %5245 = vmatmul.mubr.bf16.gmra.mrb[152].mxu1 %v2026_v17  ;;  %v2003_v15 = vmax.f32 %v5202_v19, 0.0 }
 0x369   :  { %v5203_v47 = vpop.f32.mrb[126].mxu0  ;;  %v2001_v4 = vmax.f32 %v1910_v53, 0.0  ;;  %5321 = vmatpush3.bf16.msra.mxu1 %v5703_v9 }
 0x36a   :  { %v2004_v50 = vmax.f32 %v5203_v47, 0.0  ;;  %v1913_v56 = vpop.f32.mrb[127].mxu0  ;;  %5322 = vmatprep.subr.bf16.mxu1 %v5704_v44 }
 0x36b   :  { %v2002_v8 = vmax.f32 %v1913_v56, 0.0 }
 0x36c   :  { %v2028_v33 = vpack.c.bf16 %v2004_v50, %v2003_v15 }
 0x36d   :  { %v2027_v18 = vpack.c.bf16 %v2002_v8, %v2001_v4  ;;  %5323 = vmatpush3.bf16.msra.mxu1 %v5704_v44 }
 0x36e   :  { %5324 = vmatprep.subr.bf16.mxu1 %v5705_v57 }
 0x36f   :  { %v5206_v32 = vpop.f32.mrb[128].mxu0  ;;  %5248 = vmatprep.mubr.bf16.mxu1 %v2027_v18 }
 0x370   :  { %v1926_v59 = vpop.f32.mrb[129].mxu0  ;;  %5249 = vmatmul.mubr.bf16.gmra.mrb[156].mxu1 %v2028_v33  ;;  %v2007_v24 = vmax.f32 %v5206_v32, 0.0 }
 0x371   :  { %v5207_v31 = vpop.f32.mrb[130].mxu0  ;;  %v2005_v7 = vmax.f32 %v1926_v59, 0.0  ;;  %5325 = vmatpush3.bf16.msra.mxu1 %v5705_v57 }
 0x372   :  { %v2008_v13 = vmax.f32 %v5207_v31, 0.0  ;;  %v1929_v26 = vpop.f32.mrb[131].mxu0  ;;  %5326 = vmatprep.subr.bf16.mxu1 %v5706_v21 }
 0x373   :  { %v2006_v25 = vmax.f32 %v1929_v26, 0.0 }
 0x374   :  { %v2030_v14 = vpack.c.bf16 %v2008_v13, %v2007_v24 }
 0x375   :  { %v2029_v30 = vpack.c.bf16 %v2006_v25, %v2005_v7  ;;  %5327 = vmatpush3.bf16.msra.mxu1 %v5706_v21 }
 0x376   :  { %5328 = vmatprep.subr.bf16.mxu1 %v5707_v52 }
 0x377   :  { %v5210_v60 = vpop.f32.mrb[132].mxu0  ;;  %5252 = vmatprep.mubr.bf16.mxu1 %v2029_v30 }
 0x378   :  { %v1942_v29 = vpop.f32.mrb[133].mxu0  ;;  %5253 = vmatmul.mubr.bf16.gmra.mrb[160].mxu1 %v2030_v14  ;;  %v2011_v34 = vmax.f32 %v5210_v60, 0.0 }
 0x379   :  { %v5211_v23 = vpop.f32.mrb[134].mxu0  ;;  %v2009_v48 = vmax.f32 %v1942_v29, 0.0  ;;  %5329 = vmatpush3.bf16.msra.mxu1 %v5707_v52 }
 0x37a   :  { %v2012_v3 = vmax.f32 %v5211_v23, 0.0  ;;  %v1945_v45 = vpop.f32.mrb[135].mxu0 }
 0x37b   :  { %v2010_v0 = vmax.f32 %v1945_v45, 0.0 }
 0x37c   :  { %v2032_v36 = vpack.c.bf16 %v2012_v3, %v2011_v34 }
 0x37d   :  { %v2031_v27 = vpack.c.bf16 %v2010_v0, %v2009_v48 }
 0x37f   :  { %v5214_v41 = vpop.f32.mrb[136].mxu0  ;;  %5256 = vmatprep.mubr.bf16.mxu1 %v2031_v27 }
 0x380   :  { %v1958_v42 = vpop.f32.mrb[137].mxu0  ;;  %5257 = vmatmul.mubr.bf16.gmra.mrb[164].mxu1 %v2032_v36  ;;  %v2015_v11 = vmax.f32 %v5214_v41, 0.0 }
 0x381   :  { %v5215_v38 = vpop.f32.mrb[138].mxu0  ;;  %v2013_v28 = vmax.f32 %v1958_v42, 0.0 }
 0x382   :  { %v2016_v46 = vmax.f32 %v5215_v38, 0.0  ;;  %v1961_v10 = vpop.f32.mrb[139].mxu0 }
 0x383   :  { %v2014_v16 = vmax.f32 %v1961_v10, 0.0 }
 0x384   :  { %v2034_v40 = vpack.c.bf16 %v2016_v46, %v2015_v11 }
 0x385   :  { %v2033_v39 = vpack.c.bf16 %v2014_v16, %v2013_v28 }
 0x387   :  { %5260 = vmatprep.mubr.bf16.mxu1 %v2033_v39 }
 0x388   :  { %5261 = vmatmul.mubr.bf16.gmra.mrb[168].mxu1 %v2034_v40 }
 0x38a   :  { %v5218_v2 = vpop.f32.mrb[140].mxu0 }
 0x38b   :  { %v1974_v37 = vpop.f32.mrb[141].mxu0  ;;  %v2019_v43 = vmax.f32 %v5218_v2, 0.0 }
 0x38c   :  { %v5219_v51 = vpop.f32.mrb[142].mxu0  ;;  %v2017_v1 = vmax.f32 %v1974_v37, 0.0 }
 0x38d   :  { %v2020_v55 = vmax.f32 %v5219_v51, 0.0  ;;  %v1977_v6 = vpop.f32.mrb[143].mxu0 }
 0x38e   :  { %v2018_v20 = vmax.f32 %v1977_v6, 0.0 }
 0x38f   :  { %v2036_v22 = vpack.c.bf16 %v2020_v55, %v2019_v43 }
 0x390   :  { %v2035_v49 = vpack.c.bf16 %v2018_v20, %v2017_v1 }
 0x392   :  { %5264 = vmatprep.mubr.bf16.mxu1 %v2035_v49 }
 0x393   :  { %5265 = vmatmul.mubr.bf16.gmra.mrb[172].mxu1 %v2036_v22 }
 0x42b   :  { %v5238_v61 = vpop.f32.mrb[144].mxu1 }
 0x42c   :  { %v2136_v35 = vpop.f32.mrb[145].mxu1  ;;  %v2265_v54 = vmax.f32 %v5238_v61, 0.0 }
 0x42d   :  { %v5239_v62 = vpop.f32.mrb[146].mxu1  ;;  %v2263_v19 = vmax.f32 %v2136_v35, 0.0 }
 0x42e   :  { %v2266_v17 = vmax.f32 %v5239_v62, 0.0  ;;  %v2139_v5 = vpop.f32.mrb[147].mxu1 }
 0x42f   :  { %v2264_v53 = vmax.f32 %v2139_v5, 0.0 }
 0x430   :  { %v2296_v47 = vpack.c.bf16 %v2266_v17, %v2265_v54 }
 0x431   :  { %v2295_v15 = vpack.c.bf16 %v2264_v53, %v2263_v19 }
 0x433   :  { %v5242_v50 = vpop.f32.mrb[148].mxu1  ;;  %5284 = vmatprep.mubr.bf16.mxu0 %v2295_v15 }
 0x434   :  { %v2152_v56 = vpop.f32.mrb[149].mxu1  ;;  %5285 = vmatmul.mubr.bf16.vlgmr.msra.gmra.mrb[144].mxu0 %v2296_v47  ;;  %v2269_v8 = vmax.f32 %v5242_v50, 0.0 }
 0x435   :  { %v5243_v4 = vpop.f32.mrb[150].mxu1  ;;  %v2267_v32 = vmax.f32 %v2152_v56, 0.0 }
 0x436   :  { %v2270_v33 = vmax.f32 %v5243_v4, 0.0  ;;  %v2155_v18 = vpop.f32.mrb[151].mxu1 }
 0x437   :  { %v2268_v59 = vmax.f32 %v2155_v18, 0.0 }
 0x438   :  { %v2298_v31 = vpack.c.bf16 %v2270_v33, %v2269_v8 }
 0x439   :  { %v2297_v24 = vpack.c.bf16 %v2268_v59, %v2267_v32  ;;  %v5708_v32 = vld [vmem:[%s7211_s2 + $0x138] sm:$0xff]   ;;  %v5709_v59 = vld [vmem:[%s7211_s2 + $0x140] sm:$0xff]  }
 0x43a   :  { %5330 = vmatprep.subr.bf16.mxu1 %v5708_v32  ;;  %5364 = vmatprep.subr.bf16.mxu0 %v5709_v59 }
 0x43b   :  { %v5246_v13 = vpop.f32.mrb[152].mxu1  ;;  %5288 = vmatprep.mubr.bf16.mxu0 %v2297_v24  ;;  %5331 = vmatpush3.bf16.msra.mxu1 %v5708_v32  ;;  %v5711_v24 = vld [vmem:[%s7211_s2 + $0x150] sm:$0xff]  }
 0x43c   :  { %v2168_v26 = vpop.f32.mrb[153].mxu1  ;;  %5289 = vmatmul.mubr.bf16.gmra.mrb[148].mxu0 %v2298_v31  ;;  %v2273_v25 = vmax.f32 %v5246_v13, 0.0  ;;  %v5710_v31 = vld [vmem:[%s7211_s2 + $0x148] sm:$0xff]   ;;  %v5712_v13 = vld [vmem:[%s7211_s2 + $0x158] sm:$0xff]  }
 0x43d   :  { %v5247_v7 = vpop.f32.mrb[154].mxu1  ;;  %v2271_v60 = vmax.f32 %v2168_v26, 0.0  ;;  %5365 = vmatpush3.bf16.msra.mxu0 %v5709_v59  ;;  %v5713_v26 = vld [vmem:[%s7211_s2 + $0x160] sm:$0xff]  }
 0x43e   :  { %v2274_v14 = vmax.f32 %v5247_v7, 0.0  ;;  %v2171_v30 = vpop.f32.mrb[155].mxu1  ;;  %5366 = vmatprep.subr.bf16.mxu0 %v5710_v31  ;;  %v5714_v7 = vld [vmem:[%s7211_s2 + $0x168] sm:$0xff]  }
 0x43f   :  { %v2272_v29 = vmax.f32 %v2171_v30, 0.0 }
 0x440   :  { %v2300_v23 = vpack.c.bf16 %v2274_v14, %v2273_v25  ;;  %v5715_v25 = vld [vmem:[%s7211_s2 + $0x170] sm:$0xff]  }
 0x441   :  { %v2299_v34 = vpack.c.bf16 %v2272_v29, %v2271_v60  ;;  %5367 = vmatpush3.bf16.msra.mxu0 %v5710_v31 }
 0x442   :  { %5368 = vmatprep.subr.bf16.mxu0 %v5711_v24 }
 0x443   :  { %v5250_v3 = vpop.f32.mrb[156].mxu1  ;;  %5292 = vmatprep.mubr.bf16.mxu0 %v2299_v34 }
 0x444   :  { %v2184_v45 = vpop.f32.mrb[157].mxu1  ;;  %5293 = vmatmul.mubr.bf16.gmra.mrb[152].mxu0 %v2300_v23  ;;  %v2277_v0 = vmax.f32 %v5250_v3, 0.0 }
 0x445   :  { %v5251_v48 = vpop.f32.mrb[158].mxu1  ;;  %v2275_v41 = vmax.f32 %v2184_v45, 0.0  ;;  %5369 = vmatpush3.bf16.msra.mxu0 %v5711_v24 }
 0x446   :  { %v2278_v36 = vmax.f32 %v5251_v48, 0.0  ;;  %v2187_v27 = vpop.f32.mrb[159].mxu1  ;;  %5370 = vmatprep.subr.bf16.mxu0 %v5712_v13 }
 0x447   :  { %v2276_v42 = vmax.f32 %v2187_v27, 0.0 }
 0x448   :  { %v2302_v38 = vpack.c.bf16 %v2278_v36, %v2277_v0 }
 0x449   :  { %v2301_v11 = vpack.c.bf16 %v2276_v42, %v2275_v41  ;;  %5371 = vmatpush3.bf16.msra.mxu0 %v5712_v13 }
 0x44a   :  { %5372 = vmatprep.subr.bf16.mxu0 %v5713_v26 }
 0x44b   :  { %v5254_v46 = vpop.f32.mrb[160].mxu1  ;;  %5296 = vmatprep.mubr.bf16.mxu0 %v2301_v11 }
 0x44c   :  { %v2200_v10 = vpop.f32.mrb[161].mxu1  ;;  %5297 = vmatmul.mubr.bf16.gmra.mrb[156].mxu0 %v2302_v38  ;;  %v2281_v16 = vmax.f32 %v5254_v46, 0.0 }
 0x44d   :  { %v5255_v28 = vpop.f32.mrb[162].mxu1  ;;  %v2279_v2 = vmax.f32 %v2200_v10, 0.0  ;;  %5373 = vmatpush3.bf16.msra.mxu0 %v5713_v26 }
 0x44e   :  { %v2282_v40 = vmax.f32 %v5255_v28, 0.0  ;;  %v2203_v39 = vpop.f32.mrb[163].mxu1  ;;  %5374 = vmatprep.subr.bf16.mxu0 %v5714_v7 }
 0x44f   :  { %v2280_v37 = vmax.f32 %v2203_v39, 0.0 }
 0x450   :  { %v2304_v51 = vpack.c.bf16 %v2282_v40, %v2281_v16 }
 0x451   :  { %v2303_v43 = vpack.c.bf16 %v2280_v37, %v2279_v2  ;;  %5375 = vmatpush3.bf16.msra.mxu0 %v5714_v7 }
 0x452   :  { %5376 = vmatprep.subr.bf16.mxu0 %v5715_v25 }
 0x453   :  { %v5258_v55 = vpop.f32.mrb[164].mxu1  ;;  %5300 = vmatprep.mubr.bf16.mxu0 %v2303_v43 }
 0x454   :  { %v2216_v6 = vpop.f32.mrb[165].mxu1  ;;  %5301 = vmatmul.mubr.bf16.gmra.mrb[160].mxu0 %v2304_v51  ;;  %v2285_v20 = vmax.f32 %v5258_v55, 0.0 }
 0x455   :  { %v5259_v1 = vpop.f32.mrb[166].mxu1  ;;  %v2283_v58 = vmax.f32 %v2216_v6, 0.0  ;;  %5377 = vmatpush3.bf16.msra.mxu0 %v5715_v25 }
 0x456   :  { %v2286_v22 = vmax.f32 %v5259_v1, 0.0  ;;  %v2219_v49 = vpop.f32.mrb[167].mxu1 }
 0x457   :  { %v2284_v12 = vmax.f32 %v2219_v49, 0.0 }
 0x458   :  { %v2306_v63 = vpack.c.bf16 %v2286_v22, %v2285_v20 }
 0x459   :  { %v2305_v9 = vpack.c.bf16 %v2284_v12, %v2283_v58 }
 0x45b   :  { %v5262_v44 = vpop.f32.mrb[168].mxu1  ;;  %5304 = vmatprep.mubr.bf16.mxu0 %v2305_v9 }
 0x45c   :  { %v2232_v57 = vpop.f32.mrb[169].mxu1  ;;  %5305 = vmatmul.mubr.bf16.gmra.mrb[164].mxu0 %v2306_v63  ;;  %v2289_v52 = vmax.f32 %v5262_v44, 0.0 }
 0x45d   :  { %v5263_v21 = vpop.f32.mrb[170].mxu1  ;;  %v2287_v62 = vmax.f32 %v2232_v57, 0.0 }
 0x45e   :  { %v2290_v61 = vmax.f32 %v5263_v21, 0.0  ;;  %v2235_v35 = vpop.f32.mrb[171].mxu1 }
 0x45f   :  { %v2288_v54 = vmax.f32 %v2235_v35, 0.0 }
 0x460   :  { %v2308_v17 = vpack.c.bf16 %v2290_v61, %v2289_v52 }
 0x461   :  { %v2307_v5 = vpack.c.bf16 %v2288_v54, %v2287_v62 }
 0x463   :  { %5308 = vmatprep.mubr.bf16.mxu0 %v2307_v5 }
 0x464   :  { %5309 = vmatmul.mubr.bf16.gmra.mrb[168].mxu0 %v2308_v17 }
 0x466   :  { %v5266_v19 = vpop.f32.mrb[172].mxu1 }
 0x467   :  { %v2248_v53 = vpop.f32.mrb[173].mxu1  ;;  %v2293_v15 = vmax.f32 %v5266_v19, 0.0 }
 0x468   :  { %v5267_v47 = vpop.f32.mrb[174].mxu1  ;;  %v2291_v4 = vmax.f32 %v2248_v53, 0.0 }
 0x469   :  { %v2294_v50 = vmax.f32 %v5267_v47, 0.0  ;;  %v2251_v56 = vpop.f32.mrb[175].mxu1 }
 0x46a   :  { %v2292_v8 = vmax.f32 %v2251_v56, 0.0 }
 0x46b   :  { %v2310_v33 = vpack.c.bf16 %v2294_v50, %v2293_v15 }
 0x46c   :  { %v2309_v18 = vpack.c.bf16 %v2292_v8, %v2291_v4 }
 0x46e   :  { %5312 = vmatprep.mubr.bf16.mxu0 %v2309_v18 }
 0x46f   :  { %5313 = vmatmul.mubr.bf16.gmra.mrb[172].mxu0 %v2310_v33 }
 0x507   :  { %v5286_v14 = vpop.f32.mrb[144].mxu0 }
 0x508   :  { %v2410_v30 = vpop.f32.mrb[145].mxu0  ;;  %v2539_v29 = vmax.f32 %v5286_v14, 0.0 }
 0x509   :  { %v5287_v60 = vpop.f32.mrb[146].mxu0  ;;  %v2537_v3 = vmax.f32 %v2410_v30, 0.0 }
 0x50a   :  { %v2540_v23 = vmax.f32 %v5287_v60, 0.0  ;;  %v2413_v34 = vpop.f32.mrb[147].mxu0 }
 0x50b   :  { %v2538_v45 = vmax.f32 %v2413_v34, 0.0 }
 0x50c   :  { %v2570_v48 = vpack.c.bf16 %v2540_v23, %v2539_v29 }
 0x50d   :  { %v2569_v0 = vpack.c.bf16 %v2538_v45, %v2537_v3 }
 0x50f   :  { %v5290_v36 = vpop.f32.mrb[148].mxu0  ;;  %5332 = vmatprep.mubr.bf16.mxu1 %v2569_v0 }
 0x510   :  { %v2426_v27 = vpop.f32.mrb[149].mxu0  ;;  %5333 = vmatmul.mubr.bf16.vlgmr.msra.gmra.mrb[176].mxu1 %v2570_v48  ;;  %v2543_v42 = vmax.f32 %v5290_v36, 0.0 }
 0x511   :  { %v5291_v41 = vpop.f32.mrb[150].mxu0  ;;  %v2541_v46 = vmax.f32 %v2426_v27, 0.0 }
 0x512   :  { %v2544_v38 = vmax.f32 %v5291_v41, 0.0  ;;  %v2429_v11 = vpop.f32.mrb[151].mxu0 }
 0x513   :  { %v2542_v10 = vmax.f32 %v2429_v11, 0.0 }
 0x514   :  { %v2572_v28 = vpack.c.bf16 %v2544_v38, %v2543_v42 }
 0x515   :  { %v2571_v16 = vpack.c.bf16 %v2542_v10, %v2541_v46  ;;  %v5716_v46 = vld [vmem:[%s7211_s2 + $0x178] sm:$0xff]   ;;  %v5717_v10 = vld [vmem:[%s7211_s2 + $0x180] sm:$0xff]  }
 0x516   :  { %5378 = vmatprep.subr.bf16.mxu0 %v5716_v46  ;;  %5412 = vmatprep.subr.bf16.mxu1 %v5717_v10 }
 0x517   :  { %v5294_v40 = vpop.f32.mrb[152].mxu0  ;;  %5336 = vmatprep.mubr.bf16.mxu1 %v2571_v16  ;;  %5379 = vmatpush3.bf16.msra.mxu0 %v5716_v46  ;;  %v5719_v16 = vld [vmem:[%s7211_s2 + $0x190] sm:$0xff]  }
 0x518   :  { %v2442_v39 = vpop.f32.mrb[153].mxu0  ;;  %5337 = vmatmul.mubr.bf16.gmra.mrb[180].mxu1 %v2572_v28  ;;  %v2547_v37 = vmax.f32 %v5294_v40, 0.0  ;;  %v5718_v28 = vld [vmem:[%s7211_s2 + $0x188] sm:$0xff]   ;;  %v5720_v40 = vld [vmem:[%s7211_s2 + $0x198] sm:$0xff]  }
 0x519   :  { %v5295_v2 = vpop.f32.mrb[154].mxu0  ;;  %v2545_v55 = vmax.f32 %v2442_v39, 0.0  ;;  %5413 = vmatpush3.bf16.msra.mxu1 %v5717_v10  ;;  %v5721_v39 = vld [vmem:[%s7211_s2 + $0x1a0] sm:$0xff]  }
 0x51a   :  { %v2548_v51 = vmax.f32 %v5295_v2, 0.0  ;;  %v2445_v43 = vpop.f32.mrb[155].mxu0  ;;  %5414 = vmatprep.subr.bf16.mxu1 %v5718_v28  ;;  %v5722_v2 = vld [vmem:[%s7211_s2 + $0x1a8] sm:$0xff]  }
 0x51b   :  { %v2546_v6 = vmax.f32 %v2445_v43, 0.0 }
 0x51c   :  { %v2574_v1 = vpack.c.bf16 %v2548_v51, %v2547_v37  ;;  %v5723_v37 = vld [vmem:[%s7211_s2 + $0x1b0] sm:$0xff]  }
 0x51d   :  { %v2573_v20 = vpack.c.bf16 %v2546_v6, %v2545_v55  ;;  %5415 = vmatpush3.bf16.msra.mxu1 %v5718_v28 }
 0x51e   :  { %5416 = vmatprep.subr.bf16.mxu1 %v5719_v16 }
 0x51f   :  { %v5298_v22 = vpop.f32.mrb[156].mxu0  ;;  %5340 = vmatprep.mubr.bf16.mxu1 %v2573_v20 }
 0x520   :  { %v2458_v49 = vpop.f32.mrb[157].mxu0  ;;  %5341 = vmatmul.mubr.bf16.gmra.mrb[184].mxu1 %v2574_v1  ;;  %v2551_v12 = vmax.f32 %v5298_v22, 0.0 }
 0x521   :  { %v5299_v58 = vpop.f32.mrb[158].mxu0  ;;  %v2549_v44 = vmax.f32 %v2458_v49, 0.0  ;;  %5417 = vmatpush3.bf16.msra.mxu1 %v5719_v16 }
 0x522   :  { %v2552_v63 = vmax.f32 %v5299_v58, 0.0  ;;  %v2461_v9 = vpop.f32.mrb[159].mxu0  ;;  %5418 = vmatprep.subr.bf16.mxu1 %v5720_v40 }
 0x523   :  { %v2550_v57 = vmax.f32 %v2461_v9, 0.0 }
 0x524   :  { %v2576_v21 = vpack.c.bf16 %v2552_v63, %v2551_v12 }
 0x525   :  { %v2575_v52 = vpack.c.bf16 %v2550_v57, %v2549_v44  ;;  %5419 = vmatpush3.bf16.msra.mxu1 %v5720_v40 }
 0x526   :  { %5420 = vmatprep.subr.bf16.mxu1 %v5721_v39 }
 0x527   :  { %v5302_v61 = vpop.f32.mrb[160].mxu0  ;;  %5344 = vmatprep.mubr.bf16.mxu1 %v2575_v52 }
 0x528   :  { %v2474_v35 = vpop.f32.mrb[161].mxu0  ;;  %5345 = vmatmul.mubr.bf16.gmra.mrb[188].mxu1 %v2576_v21  ;;  %v2555_v54 = vmax.f32 %v5302_v61, 0.0 }
 0x529   :  { %v5303_v62 = vpop.f32.mrb[162].mxu0  ;;  %v2553_v19 = vmax.f32 %v2474_v35, 0.0  ;;  %5421 = vmatpush3.bf16.msra.mxu1 %v5721_v39 }
 0x52a   :  { %v2556_v17 = vmax.f32 %v5303_v62, 0.0  ;;  %v2477_v5 = vpop.f32.mrb[163].mxu0  ;;  %5422 = vmatprep.subr.bf16.mxu1 %v5722_v2 }
 0x52b   :  { %v2554_v53 = vmax.f32 %v2477_v5, 0.0 }
 0x52c   :  { %v2578_v47 = vpack.c.bf16 %v2556_v17, %v2555_v54 }
 0x52d   :  { %v2577_v15 = vpack.c.bf16 %v2554_v53, %v2553_v19  ;;  %5423 = vmatpush3.bf16.msra.mxu1 %v5722_v2 }
 0x52e   :  { %5424 = vmatprep.subr.bf16.mxu1 %v5723_v37 }
 0x52f   :  { %v5306_v50 = vpop.f32.mrb[164].mxu0  ;;  %5348 = vmatprep.mubr.bf16.mxu1 %v2577_v15 }
 0x530   :  { %v2490_v56 = vpop.f32.mrb[165].mxu0  ;;  %5349 = vmatmul.mubr.bf16.gmra.mrb[192].mxu1 %v2578_v47  ;;  %v2559_v8 = vmax.f32 %v5306_v50, 0.0 }
 0x531   :  { %v5307_v4 = vpop.f32.mrb[166].mxu0  ;;  %v2557_v32 = vmax.f32 %v2490_v56, 0.0  ;;  %5425 = vmatpush3.bf16.msra.mxu1 %v5723_v37 }
 0x532   :  { %v2560_v33 = vmax.f32 %v5307_v4, 0.0  ;;  %v2493_v18 = vpop.f32.mrb[167].mxu0 }
 0x533   :  { %v2558_v59 = vmax.f32 %v2493_v18, 0.0 }
 0x534   :  { %v2580_v31 = vpack.c.bf16 %v2560_v33, %v2559_v8 }
 0x535   :  { %v2579_v24 = vpack.c.bf16 %v2558_v59, %v2557_v32 }
 0x537   :  { %v5310_v13 = vpop.f32.mrb[168].mxu0  ;;  %5352 = vmatprep.mubr.bf16.mxu1 %v2579_v24 }
 0x538   :  { %v2506_v26 = vpop.f32.mrb[169].mxu0  ;;  %5353 = vmatmul.mubr.bf16.gmra.mrb[196].mxu1 %v2580_v31  ;;  %v2563_v25 = vmax.f32 %v5310_v13, 0.0 }
 0x539   :  { %v5311_v7 = vpop.f32.mrb[170].mxu0  ;;  %v2561_v60 = vmax.f32 %v2506_v26, 0.0 }
 0x53a   :  { %v2564_v14 = vmax.f32 %v5311_v7, 0.0  ;;  %v2509_v30 = vpop.f32.mrb[171].mxu0 }
 0x53b   :  { %v2562_v29 = vmax.f32 %v2509_v30, 0.0 }
 0x53c   :  { %v2582_v23 = vpack.c.bf16 %v2564_v14, %v2563_v25 }
 0x53d   :  { %v2581_v34 = vpack.c.bf16 %v2562_v29, %v2561_v60 }
 0x53f   :  { %5356 = vmatprep.mubr.bf16.mxu1 %v2581_v34 }
 0x540   :  { %5357 = vmatmul.mubr.bf16.gmra.mrb[200].mxu1 %v2582_v23 }
 0x542   :  { %v5314_v3 = vpop.f32.mrb[172].mxu0 }
 0x543   :  { %v2522_v45 = vpop.f32.mrb[173].mxu0  ;;  %v2567_v0 = vmax.f32 %v5314_v3, 0.0 }
 0x544   :  { %v5315_v48 = vpop.f32.mrb[174].mxu0  ;;  %v2565_v41 = vmax.f32 %v2522_v45, 0.0 }
 0x545   :  { %v2568_v36 = vmax.f32 %v5315_v48, 0.0  ;;  %v2525_v27 = vpop.f32.mrb[175].mxu0 }
 0x546   :  { %v2566_v42 = vmax.f32 %v2525_v27, 0.0 }
 0x547   :  { %v2584_v38 = vpack.c.bf16 %v2568_v36, %v2567_v0 }
 0x548   :  { %v2583_v11 = vpack.c.bf16 %v2566_v42, %v2565_v41 }
 0x54a   :  { %5360 = vmatprep.mubr.bf16.mxu1 %v2583_v11 }
 0x54b   :  { %5361 = vmatmul.mubr.bf16.gmra.mrb[204].mxu1 %v2584_v38 }
 0x5e3   :  { %v5334_v51 = vpop.f32.mrb[176].mxu1 }
 0x5e4   :  { %v2684_v43 = vpop.f32.mrb[177].mxu1  ;;  %v2813_v6 = vmax.f32 %v5334_v51, 0.0 }
 0x5e5   :  { %v5335_v55 = vpop.f32.mrb[178].mxu1  ;;  %v2811_v22 = vmax.f32 %v2684_v43, 0.0 }
 0x5e6   :  { %v2814_v1 = vmax.f32 %v5335_v55, 0.0  ;;  %v2687_v20 = vpop.f32.mrb[179].mxu1 }
 0x5e7   :  { %v2812_v49 = vmax.f32 %v2687_v20, 0.0 }
 0x5e8   :  { %v2844_v58 = vpack.c.bf16 %v2814_v1, %v2813_v6 }
 0x5e9   :  { %v2843_v12 = vpack.c.bf16 %v2812_v49, %v2811_v22 }
 0x5eb   :  { %v5338_v63 = vpop.f32.mrb[180].mxu1  ;;  %5380 = vmatprep.mubr.bf16.mxu0 %v2843_v12 }
 0x5ec   :  { %v2700_v9 = vpop.f32.mrb[181].mxu1  ;;  %5381 = vmatmul.mubr.bf16.vlgmr.msra.gmra.mrb[176].mxu0 %v2844_v58  ;;  %v2817_v57 = vmax.f32 %v5338_v63, 0.0 }
 0x5ed   :  { %v5339_v44 = vpop.f32.mrb[182].mxu1  ;;  %v2815_v61 = vmax.f32 %v2700_v9, 0.0 }
 0x5ee   :  { %v2818_v21 = vmax.f32 %v5339_v44, 0.0  ;;  %v2703_v52 = vpop.f32.mrb[183].mxu1 }
 0x5ef   :  { %v2816_v35 = vmax.f32 %v2703_v52, 0.0 }
 0x5f0   :  { %v2846_v62 = vpack.c.bf16 %v2818_v21, %v2817_v57 }
 0x5f1   :  { %v2845_v54 = vpack.c.bf16 %v2816_v35, %v2815_v61  ;;  %v5724_v61 = vld [vmem:[%s7211_s2 + $0x1b8] sm:$0xff]   ;;  %v5725_v35 = vld [vmem:[%s7211_s2 + $0x1c0] sm:$0xff]  }
 0x5f2   :  { %5426 = vmatprep.subr.bf16.mxu1 %v5724_v61  ;;  %5460 = vmatprep.subr.bf16.mxu0 %v5725_v35 }
 0x5f3   :  { %v5342_v17 = vpop.f32.mrb[184].mxu1  ;;  %5384 = vmatprep.mubr.bf16.mxu0 %v2845_v54  ;;  %5427 = vmatpush3.bf16.msra.mxu1 %v5724_v61  ;;  %v5727_v54 = vld [vmem:[%s7211_s2 + $0x1d0] sm:$0xff]  }
 0x5f4   :  { %v2716_v5 = vpop.f32.mrb[185].mxu1  ;;  %5385 = vmatmul.mubr.bf16.gmra.mrb[180].mxu0 %v2846_v62  ;;  %v2821_v53 = vmax.f32 %v5342_v17, 0.0  ;;  %v5726_v62 = vld [vmem:[%s7211_s2 + $0x1c8] sm:$0xff]   ;;  %v5728_v17 = vld [vmem:[%s7211_s2 + $0x1d8] sm:$0xff]  }
 0x5f5   :  { %v5343_v19 = vpop.f32.mrb[186].mxu1  ;;  %v2819_v50 = vmax.f32 %v2716_v5, 0.0  ;;  %5461 = vmatpush3.bf16.msra.mxu0 %v5725_v35  ;;  %v5729_v5 = vld [vmem:[%s7211_s2 + $0x1e0] sm:$0xff]  }
 0x5f6   :  { %v2822_v47 = vmax.f32 %v5343_v19, 0.0  ;;  %v2719_v15 = vpop.f32.mrb[187].mxu1  ;;  %5462 = vmatprep.subr.bf16.mxu0 %v5726_v62  ;;  %v5730_v19 = vld [vmem:[%s7211_s2 + $0x1e8] sm:$0xff]  }
 0x5f7   :  { %v2820_v56 = vmax.f32 %v2719_v15, 0.0 }
 0x5f8   :  { %v2848_v4 = vpack.c.bf16 %v2822_v47, %v2821_v53  ;;  %v5731_v53 = vld [vmem:[%s7211_s2 + $0x1f0] sm:$0xff]  }
 0x5f9   :  { %v2847_v8 = vpack.c.bf16 %v2820_v56, %v2819_v50  ;;  %5463 = vmatpush3.bf16.msra.mxu0 %v5726_v62 }
 0x5fa   :  { %5464 = vmatprep.subr.bf16.mxu0 %v5727_v54 }
 0x5fb   :  { %v5346_v33 = vpop.f32.mrb[188].mxu1  ;;  %5388 = vmatprep.mubr.bf16.mxu0 %v2847_v8 }
 0x5fc   :  { %v2732_v18 = vpop.f32.mrb[189].mxu1  ;;  %5389 = vmatmul.mubr.bf16.gmra.mrb[184].mxu0 %v2848_v4  ;;  %v2825_v59 = vmax.f32 %v5346_v33, 0.0 }
 0x5fd   :  { %v5347_v32 = vpop.f32.mrb[190].mxu1  ;;  %v2823_v13 = vmax.f32 %v2732_v18, 0.0  ;;  %5465 = vmatpush3.bf16.msra.mxu0 %v5727_v54 }
 0x5fe   :  { %v2826_v31 = vmax.f32 %v5347_v32, 0.0  ;;  %v2735_v24 = vpop.f32.mrb[191].mxu1  ;;  %5466 = vmatprep.subr.bf16.mxu0 %v5728_v17 }
 0x5ff   :  { %v2824_v26 = vmax.f32 %v2735_v24, 0.0 }
 0x600   :  { %v2850_v7 = vpack.c.bf16 %v2826_v31, %v2825_v59 }
 0x601   :  { %v2849_v25 = vpack.c.bf16 %v2824_v26, %v2823_v13  ;;  %5467 = vmatpush3.bf16.msra.mxu0 %v5728_v17 }
 0x602   :  { %5468 = vmatprep.subr.bf16.mxu0 %v5729_v5 }
 0x603   :  { %v5350_v14 = vpop.f32.mrb[192].mxu1  ;;  %5392 = vmatprep.mubr.bf16.mxu0 %v2849_v25 }
 0x604   :  { %v2748_v30 = vpop.f32.mrb[193].mxu1  ;;  %5393 = vmatmul.mubr.bf16.gmra.mrb[188].mxu0 %v2850_v7  ;;  %v2829_v29 = vmax.f32 %v5350_v14, 0.0 }
 0x605   :  { %v5351_v60 = vpop.f32.mrb[194].mxu1  ;;  %v2827_v3 = vmax.f32 %v2748_v30, 0.0  ;;  %5469 = vmatpush3.bf16.msra.mxu0 %v5729_v5 }
 0x606   :  { %v2830_v23 = vmax.f32 %v5351_v60, 0.0  ;;  %v2751_v34 = vpop.f32.mrb[195].mxu1  ;;  %5470 = vmatprep.subr.bf16.mxu0 %v5730_v19 }
 0x607   :  { %v2828_v45 = vmax.f32 %v2751_v34, 0.0 }
 0x608   :  { %v2852_v48 = vpack.c.bf16 %v2830_v23, %v2829_v29 }
 0x609   :  { %v2851_v0 = vpack.c.bf16 %v2828_v45, %v2827_v3  ;;  %5471 = vmatpush3.bf16.msra.mxu0 %v5730_v19 }
 0x60a   :  { %5472 = vmatprep.subr.bf16.mxu0 %v5731_v53 }
 0x60b   :  { %v5354_v36 = vpop.f32.mrb[196].mxu1  ;;  %5396 = vmatprep.mubr.bf16.mxu0 %v2851_v0 }
 0x60c   :  { %v2764_v27 = vpop.f32.mrb[197].mxu1  ;;  %5397 = vmatmul.mubr.bf16.gmra.mrb[192].mxu0 %v2852_v48  ;;  %v2833_v42 = vmax.f32 %v5354_v36, 0.0 }
 0x60d   :  { %v5355_v41 = vpop.f32.mrb[198].mxu1  ;;  %v2831_v46 = vmax.f32 %v2764_v27, 0.0  ;;  %5473 = vmatpush3.bf16.msra.mxu0 %v5731_v53 }
 0x60e   :  { %v2834_v38 = vmax.f32 %v5355_v41, 0.0  ;;  %v2767_v11 = vpop.f32.mrb[199].mxu1 }
 0x60f   :  { %v2832_v10 = vmax.f32 %v2767_v11, 0.0 }
 0x610   :  { %v2854_v28 = vpack.c.bf16 %v2834_v38, %v2833_v42 }
 0x611   :  { %v2853_v16 = vpack.c.bf16 %v2832_v10, %v2831_v46 }
 0x613   :  { %v5358_v40 = vpop.f32.mrb[200].mxu1  ;;  %5400 = vmatprep.mubr.bf16.mxu0 %v2853_v16 }
 0x614   :  { %v2780_v39 = vpop.f32.mrb[201].mxu1  ;;  %5401 = vmatmul.mubr.bf16.gmra.mrb[196].mxu0 %v2854_v28  ;;  %v2837_v37 = vmax.f32 %v5358_v40, 0.0 }
 0x615   :  { %v5359_v2 = vpop.f32.mrb[202].mxu1  ;;  %v2835_v55 = vmax.f32 %v2780_v39, 0.0 }
 0x616   :  { %v2838_v51 = vmax.f32 %v5359_v2, 0.0  ;;  %v2783_v43 = vpop.f32.mrb[203].mxu1 }
 0x617   :  { %v2836_v6 = vmax.f32 %v2783_v43, 0.0 }
 0x618   :  { %v2856_v1 = vpack.c.bf16 %v2838_v51, %v2837_v37 }
 0x619   :  { %v2855_v20 = vpack.c.bf16 %v2836_v6, %v2835_v55 }
 0x61b   :  { %5404 = vmatprep.mubr.bf16.mxu0 %v2855_v20 }
 0x61c   :  { %5405 = vmatmul.mubr.bf16.gmra.mrb[200].mxu0 %v2856_v1 }
 0x61e   :  { %v5362_v22 = vpop.f32.mrb[204].mxu1 }
 0x61f   :  { %v2796_v49 = vpop.f32.mrb[205].mxu1  ;;  %v2841_v12 = vmax.f32 %v5362_v22, 0.0 }
 0x620   :  { %v5363_v58 = vpop.f32.mrb[206].mxu1  ;;  %v2839_v44 = vmax.f32 %v2796_v49, 0.0 }
 0x621   :  { %v2842_v63 = vmax.f32 %v5363_v58, 0.0  ;;  %v2799_v9 = vpop.f32.mrb[207].mxu1 }
 0x622   :  { %v2840_v57 = vmax.f32 %v2799_v9, 0.0 }
 0x623   :  { %v2858_v21 = vpack.c.bf16 %v2842_v63, %v2841_v12 }
 0x624   :  { %v2857_v52 = vpack.c.bf16 %v2840_v57, %v2839_v44 }
 0x626   :  { %5408 = vmatprep.mubr.bf16.mxu0 %v2857_v52 }
 0x627   :  { %5409 = vmatmul.mubr.bf16.gmra.mrb[204].mxu0 %v2858_v21 }
 0x6bf   :  { %v5382_v47 = vpop.f32.mrb[176].mxu0 }
 0x6c0   :  { %v2958_v15 = vpop.f32.mrb[177].mxu0  ;;  %v3087_v56 = vmax.f32 %v5382_v47, 0.0 }
 0x6c1   :  { %v5383_v50 = vpop.f32.mrb[178].mxu0  ;;  %v3085_v33 = vmax.f32 %v2958_v15, 0.0 }
 0x6c2   :  { %v3088_v4 = vmax.f32 %v5383_v50, 0.0  ;;  %v2961_v8 = vpop.f32.mrb[179].mxu0 }
 0x6c3   :  { %v3086_v18 = vmax.f32 %v2961_v8, 0.0 }
 0x6c4   :  { %v3118_v32 = vpack.c.bf16 %v3088_v4, %v3087_v56 }
 0x6c5   :  { %v3117_v59 = vpack.c.bf16 %v3086_v18, %v3085_v33 }
 0x6c7   :  { %v5386_v31 = vpop.f32.mrb[180].mxu0  ;;  %5428 = vmatprep.mubr.bf16.mxu1 %v3117_v59 }
 0x6c8   :  { %v2974_v24 = vpop.f32.mrb[181].mxu0  ;;  %5429 = vmatmul.mubr.bf16.vlgmr.msra.gmra.mrb[208].mxu1 %v3118_v32  ;;  %v3091_v26 = vmax.f32 %v5386_v31, 0.0 }
 0x6c9   :  { %v5387_v13 = vpop.f32.mrb[182].mxu0  ;;  %v3089_v14 = vmax.f32 %v2974_v24, 0.0 }
 0x6ca   :  { %v3092_v7 = vmax.f32 %v5387_v13, 0.0  ;;  %v2977_v25 = vpop.f32.mrb[183].mxu0 }
 0x6cb   :  { %v3090_v30 = vmax.f32 %v2977_v25, 0.0 }
 0x6cc   :  { %v3120_v60 = vpack.c.bf16 %v3092_v7, %v3091_v26 }
 0x6cd   :  { %v3119_v29 = vpack.c.bf16 %v3090_v30, %v3089_v14  ;;  %v5732_v14 = vld [vmem:[%s7211_s2 + $0x1f8] sm:$0xff]   ;;  %v5733_v30 = vld [vmem:[%s7211_s2 + $0x200] sm:$0xff]  }
 0x6ce   :  { %5474 = vmatprep.subr.bf16.mxu0 %v5732_v14  ;;  %5508 = vmatprep.subr.bf16.mxu1 %v5733_v30 }
 0x6cf   :  { %v5390_v23 = vpop.f32.mrb[184].mxu0  ;;  %5432 = vmatprep.mubr.bf16.mxu1 %v3119_v29  ;;  %5475 = vmatpush3.bf16.msra.mxu0 %v5732_v14  ;;  %v5735_v29 = vld [vmem:[%s7211_s2 + $0x210] sm:$0xff]  }
 0x6d0   :  { %v2990_v34 = vpop.f32.mrb[185].mxu0  ;;  %5433 = vmatmul.mubr.bf16.gmra.mrb[212].mxu1 %v3120_v60  ;;  %v3095_v45 = vmax.f32 %v5390_v23, 0.0  ;;  %v5734_v60 = vld [vmem:[%s7211_s2 + $0x208] sm:$0xff]   ;;  %v5736_v23 = vld [vmem:[%s7211_s2 + $0x218] sm:$0xff]  }
 0x6d1   :  { %v5391_v3 = vpop.f32.mrb[186].mxu0  ;;  %v3093_v36 = vmax.f32 %v2990_v34, 0.0  ;;  %5509 = vmatpush3.bf16.msra.mxu1 %v5733_v30  ;;  %v5737_v34 = vld [vmem:[%s7211_s2 + $0x220] sm:$0xff]  }
 0x6d2   :  { %v3096_v48 = vmax.f32 %v5391_v3, 0.0  ;;  %v2993_v0 = vpop.f32.mrb[187].mxu0  ;;  %5510 = vmatprep.subr.bf16.mxu1 %v5734_v60  ;;  %v5738_v3 = vld [vmem:[%s7211_s2 + $0x228] sm:$0xff]  }
 0x6d3   :  { %v3094_v27 = vmax.f32 %v2993_v0, 0.0 }
 0x6d4   :  { %v3122_v41 = vpack.c.bf16 %v3096_v48, %v3095_v45  ;;  %v5739_v45 = vld [vmem:[%s7211_s2 + $0x230] sm:$0xff]  }
 0x6d5   :  { %v3121_v42 = vpack.c.bf16 %v3094_v27, %v3093_v36  ;;  %5511 = vmatpush3.bf16.msra.mxu1 %v5734_v60 }
 0x6d6   :  { %5512 = vmatprep.subr.bf16.mxu1 %v5735_v29 }
 0x6d7   :  { %v5394_v38 = vpop.f32.mrb[188].mxu0  ;;  %5436 = vmatprep.mubr.bf16.mxu1 %v3121_v42 }
 0x6d8   :  { %v3006_v11 = vpop.f32.mrb[189].mxu0  ;;  %5437 = vmatmul.mubr.bf16.gmra.mrb[216].mxu1 %v3122_v41  ;;  %v3099_v10 = vmax.f32 %v5394_v38, 0.0 }
 0x6d9   :  { %v5395_v46 = vpop.f32.mrb[190].mxu0  ;;  %v3097_v40 = vmax.f32 %v3006_v11, 0.0  ;;  %5513 = vmatpush3.bf16.msra.mxu1 %v5735_v29 }
 0x6da   :  { %v3100_v28 = vmax.f32 %v5395_v46, 0.0  ;;  %v3009_v16 = vpop.f32.mrb[191].mxu0  ;;  %5514 = vmatprep.subr.bf16.mxu1 %v5736_v23 }
 0x6db   :  { %v3098_v39 = vmax.f32 %v3009_v16, 0.0 }
 0x6dc   :  { %v3124_v2 = vpack.c.bf16 %v3100_v28, %v3099_v10 }
 0x6dd   :  { %v3123_v37 = vpack.c.bf16 %v3098_v39, %v3097_v40  ;;  %5515 = vmatpush3.bf16.msra.mxu1 %v5736_v23 }
 0x6de   :  { %5516 = vmatprep.subr.bf16.mxu1 %v5737_v34 }
 0x6df   :  { %v5398_v51 = vpop.f32.mrb[192].mxu0  ;;  %5440 = vmatprep.mubr.bf16.mxu1 %v3123_v37 }
 0x6e0   :  { %v3022_v43 = vpop.f32.mrb[193].mxu0  ;;  %5441 = vmatmul.mubr.bf16.gmra.mrb[220].mxu1 %v3124_v2  ;;  %v3103_v6 = vmax.f32 %v5398_v51, 0.0 }
 0x6e1   :  { %v5399_v55 = vpop.f32.mrb[194].mxu0  ;;  %v3101_v22 = vmax.f32 %v3022_v43, 0.0  ;;  %5517 = vmatpush3.bf16.msra.mxu1 %v5737_v34 }
 0x6e2   :  { %v3104_v1 = vmax.f32 %v5399_v55, 0.0  ;;  %v3025_v20 = vpop.f32.mrb[195].mxu0  ;;  %5518 = vmatprep.subr.bf16.mxu1 %v5738_v3 }
 0x6e3   :  { %v3102_v49 = vmax.f32 %v3025_v20, 0.0 }
 0x6e4   :  { %v3126_v58 = vpack.c.bf16 %v3104_v1, %v3103_v6 }
 0x6e5   :  { %v3125_v12 = vpack.c.bf16 %v3102_v49, %v3101_v22  ;;  %5519 = vmatpush3.bf16.msra.mxu1 %v5738_v3 }
 0x6e6   :  { %5520 = vmatprep.subr.bf16.mxu1 %v5739_v45 }
 0x6e7   :  { %v5402_v63 = vpop.f32.mrb[196].mxu0  ;;  %5444 = vmatprep.mubr.bf16.mxu1 %v3125_v12 }
 0x6e8   :  { %v3038_v9 = vpop.f32.mrb[197].mxu0  ;;  %5445 = vmatmul.mubr.bf16.gmra.mrb[224].mxu1 %v3126_v58  ;;  %v3107_v57 = vmax.f32 %v5402_v63, 0.0 }
 0x6e9   :  { %v5403_v44 = vpop.f32.mrb[198].mxu0  ;;  %v3105_v61 = vmax.f32 %v3038_v9, 0.0  ;;  %5521 = vmatpush3.bf16.msra.mxu1 %v5739_v45 }
 0x6ea   :  { %v3108_v21 = vmax.f32 %v5403_v44, 0.0  ;;  %v3041_v52 = vpop.f32.mrb[199].mxu0 }
 0x6eb   :  { %v3106_v35 = vmax.f32 %v3041_v52, 0.0 }
 0x6ec   :  { %v3128_v62 = vpack.c.bf16 %v3108_v21, %v3107_v57 }
 0x6ed   :  { %v3127_v54 = vpack.c.bf16 %v3106_v35, %v3105_v61 }
 0x6ef   :  { %v5406_v17 = vpop.f32.mrb[200].mxu0  ;;  %5448 = vmatprep.mubr.bf16.mxu1 %v3127_v54 }
 0x6f0   :  { %v3054_v5 = vpop.f32.mrb[201].mxu0  ;;  %5449 = vmatmul.mubr.bf16.gmra.mrb[228].mxu1 %v3128_v62  ;;  %v3111_v53 = vmax.f32 %v5406_v17, 0.0 }
 0x6f1   :  { %v5407_v19 = vpop.f32.mrb[202].mxu0  ;;  %v3109_v50 = vmax.f32 %v3054_v5, 0.0 }
 0x6f2   :  { %v3112_v47 = vmax.f32 %v5407_v19, 0.0  ;;  %v3057_v15 = vpop.f32.mrb[203].mxu0 }
 0x6f3   :  { %v3110_v56 = vmax.f32 %v3057_v15, 0.0 }
 0x6f4   :  { %v3130_v4 = vpack.c.bf16 %v3112_v47, %v3111_v53 }
 0x6f5   :  { %v3129_v8 = vpack.c.bf16 %v3110_v56, %v3109_v50 }
 0x6f7   :  { %5452 = vmatprep.mubr.bf16.mxu1 %v3129_v8 }
 0x6f8   :  { %5453 = vmatmul.mubr.bf16.gmra.mrb[232].mxu1 %v3130_v4 }
 0x6fa   :  { %v5410_v33 = vpop.f32.mrb[204].mxu0 }
 0x6fb   :  { %v3070_v18 = vpop.f32.mrb[205].mxu0  ;;  %v3115_v59 = vmax.f32 %v5410_v33, 0.0 }
 0x6fc   :  { %v5411_v32 = vpop.f32.mrb[206].mxu0  ;;  %v3113_v13 = vmax.f32 %v3070_v18, 0.0 }
 0x6fd   :  { %v3116_v31 = vmax.f32 %v5411_v32, 0.0  ;;  %v3073_v24 = vpop.f32.mrb[207].mxu0 }
 0x6fe   :  { %v3114_v26 = vmax.f32 %v3073_v24, 0.0 }
 0x6ff   :  { %v3132_v7 = vpack.c.bf16 %v3116_v31, %v3115_v59 }
 0x700   :  { %v3131_v25 = vpack.c.bf16 %v3114_v26, %v3113_v13 }
 0x702   :  { %5456 = vmatprep.mubr.bf16.mxu1 %v3131_v25 }
 0x703   :  { %5457 = vmatmul.mubr.bf16.gmra.mrb[236].mxu1 %v3132_v7 }
 0x79b   :  { %v5430_v48 = vpop.f32.mrb[208].mxu1 }
 0x79c   :  { %v3232_v0 = vpop.f32.mrb[209].mxu1  ;;  %v3361_v27 = vmax.f32 %v5430_v48, 0.0 }
 0x79d   :  { %v5431_v36 = vpop.f32.mrb[210].mxu1  ;;  %v3359_v38 = vmax.f32 %v3232_v0, 0.0 }
 0x79e   :  { %v3362_v41 = vmax.f32 %v5431_v36, 0.0  ;;  %v3235_v42 = vpop.f32.mrb[211].mxu1 }
 0x79f   :  { %v3360_v11 = vmax.f32 %v3235_v42, 0.0 }
 0x7a0   :  { %v3392_v46 = vpack.c.bf16 %v3362_v41, %v3361_v27 }
 0x7a1   :  { %v3391_v10 = vpack.c.bf16 %v3360_v11, %v3359_v38 }
 0x7a3   :  { %v5434_v28 = vpop.f32.mrb[212].mxu1  ;;  %5476 = vmatprep.mubr.bf16.mxu0 %v3391_v10 }
 0x7a4   :  { %v3248_v16 = vpop.f32.mrb[213].mxu1  ;;  %5477 = vmatmul.mubr.bf16.vlgmr.msra.gmra.mrb[208].mxu0 %v3392_v46  ;;  %v3365_v39 = vmax.f32 %v5434_v28, 0.0 }
 0x7a5   :  { %v5435_v40 = vpop.f32.mrb[214].mxu1  ;;  %v3363_v51 = vmax.f32 %v3248_v16, 0.0 }
 0x7a6   :  { %v3366_v2 = vmax.f32 %v5435_v40, 0.0  ;;  %v3251_v37 = vpop.f32.mrb[215].mxu1 }
 0x7a7   :  { %v3364_v43 = vmax.f32 %v3251_v37, 0.0 }
 0x7a8   :  { %v3394_v55 = vpack.c.bf16 %v3366_v2, %v3365_v39 }
 0x7a9   :  { %v3393_v6 = vpack.c.bf16 %v3364_v43, %v3363_v51  ;;  %v5740_v51 = vld [vmem:[%s7211_s2 + $0x238] sm:$0xff]   ;;  %v5741_v43 = vld [vmem:[%s7212_s3] sm:$0xff]  }
 0x7aa   :  { %5522 = vmatprep.subr.bf16.mxu1 %v5740_v51  ;;  %5556 = vmatprep.subr.bf16.mxu0 %v5741_v43 }
 0x7ab   :  { %v5438_v1 = vpop.f32.mrb[216].mxu1  ;;  %5480 = vmatprep.mubr.bf16.mxu0 %v3393_v6  ;;  %5523 = vmatpush3.bf16.msra.mxu1 %v5740_v51  ;;  %v5743_v6 = vld [vmem:[%s7212_s3 + $0x10] sm:$0xff]  }
 0x7ac   :  { %v3264_v20 = vpop.f32.mrb[217].mxu1  ;;  %5481 = vmatmul.mubr.bf16.gmra.mrb[212].mxu0 %v3394_v55  ;;  %v3369_v49 = vmax.f32 %v5438_v1, 0.0  ;;  %v5742_v55 = vld [vmem:[%s7212_s3 + $0x8] sm:$0xff]   ;;  %v5744_v1 = vld [vmem:[%s7212_s3 + $0x18] sm:$0xff]  }
 0x7ad   :  { %v5439_v22 = vpop.f32.mrb[218].mxu1  ;;  %v3367_v63 = vmax.f32 %v3264_v20, 0.0  ;;  %5557 = vmatpush3.bf16.msra.mxu0 %v5741_v43  ;;  %v5745_v20 = vld [vmem:[%s7212_s3 + $0x20] sm:$0xff]  }
 0x7ae   :  { %v3370_v58 = vmax.f32 %v5439_v22, 0.0  ;;  %v3267_v12 = vpop.f32.mrb[219].mxu1  ;;  %5558 = vmatprep.subr.bf16.mxu0 %v5742_v55  ;;  %v5746_v22 = vld [vmem:[%s7212_s3 + $0x28] sm:$0xff]  }
 0x7af   :  { %v3368_v9 = vmax.f32 %v3267_v12, 0.0 }
 0x7b0   :  { %v3396_v44 = vpack.c.bf16 %v3370_v58, %v3369_v49  ;;  %v5747_v49 = vld [vmem:[%s7212_s3 + $0x30] sm:$0xff]  }
 0x7b1   :  { %v3395_v57 = vpack.c.bf16 %v3368_v9, %v3367_v63  ;;  %5559 = vmatpush3.bf16.msra.mxu0 %v5742_v55 }
 0x7b2   :  { %5560 = vmatprep.subr.bf16.mxu0 %v5743_v6 }
 0x7b3   :  { %v5442_v21 = vpop.f32.mrb[220].mxu1  ;;  %5484 = vmatprep.mubr.bf16.mxu0 %v3395_v57 }
 0x7b4   :  { %v3280_v52 = vpop.f32.mrb[221].mxu1  ;;  %5485 = vmatmul.mubr.bf16.gmra.mrb[216].mxu0 %v3396_v44  ;;  %v3373_v35 = vmax.f32 %v5442_v21, 0.0 }
 0x7b5   :  { %v5443_v61 = vpop.f32.mrb[222].mxu1  ;;  %v3371_v17 = vmax.f32 %v3280_v52, 0.0  ;;  %5561 = vmatpush3.bf16.msra.mxu0 %v5743_v6 }
 0x7b6   :  { %v3374_v62 = vmax.f32 %v5443_v61, 0.0  ;;  %v3283_v54 = vpop.f32.mrb[223].mxu1  ;;  %5562 = vmatprep.subr.bf16.mxu0 %v5744_v1 }
 0x7b7   :  { %v3372_v5 = vmax.f32 %v3283_v54, 0.0 }
 0x7b8   :  { %v3398_v19 = vpack.c.bf16 %v3374_v62, %v3373_v35 }
 0x7b9   :  { %v3397_v53 = vpack.c.bf16 %v3372_v5, %v3371_v17  ;;  %5563 = vmatpush3.bf16.msra.mxu0 %v5744_v1 }
 0x7ba   :  { %5564 = vmatprep.subr.bf16.mxu0 %v5745_v20 }
 0x7bb   :  { %v5446_v47 = vpop.f32.mrb[224].mxu1  ;;  %5488 = vmatprep.mubr.bf16.mxu0 %v3397_v53 }
 0x7bc   :  { %v3296_v15 = vpop.f32.mrb[225].mxu1  ;;  %5489 = vmatmul.mubr.bf16.gmra.mrb[220].mxu0 %v3398_v19  ;;  %v3377_v56 = vmax.f32 %v5446_v47, 0.0 }
 0x7bd   :  { %v5447_v50 = vpop.f32.mrb[226].mxu1  ;;  %v3375_v33 = vmax.f32 %v3296_v15, 0.0  ;;  %5565 = vmatpush3.bf16.msra.mxu0 %v5745_v20 }
 0x7be   :  { %v3378_v4 = vmax.f32 %v5447_v50, 0.0  ;;  %v3299_v8 = vpop.f32.mrb[227].mxu1  ;;  %5566 = vmatprep.subr.bf16.mxu0 %v5746_v22 }
 0x7bf   :  { %v3376_v18 = vmax.f32 %v3299_v8, 0.0 }
 0x7c0   :  { %v3400_v32 = vpack.c.bf16 %v3378_v4, %v3377_v56 }
 0x7c1   :  { %v3399_v59 = vpack.c.bf16 %v3376_v18, %v3375_v33  ;;  %5567 = vmatpush3.bf16.msra.mxu0 %v5746_v22 }
 0x7c2   :  { %5568 = vmatprep.subr.bf16.mxu0 %v5747_v49 }
 0x7c3   :  { %v5450_v31 = vpop.f32.mrb[228].mxu1  ;;  %5492 = vmatprep.mubr.bf16.mxu0 %v3399_v59 }
 0x7c4   :  { %v3312_v24 = vpop.f32.mrb[229].mxu1  ;;  %5493 = vmatmul.mubr.bf16.gmra.mrb[224].mxu0 %v3400_v32  ;;  %v3381_v26 = vmax.f32 %v5450_v31, 0.0 }
 0x7c5   :  { %v5451_v13 = vpop.f32.mrb[230].mxu1  ;;  %v3379_v14 = vmax.f32 %v3312_v24, 0.0  ;;  %5569 = vmatpush3.bf16.msra.mxu0 %v5747_v49 }
 0x7c6   :  { %v3382_v7 = vmax.f32 %v5451_v13, 0.0  ;;  %v3315_v25 = vpop.f32.mrb[231].mxu1 }
 0x7c7   :  { %v3380_v30 = vmax.f32 %v3315_v25, 0.0 }
 0x7c8   :  { %v3402_v60 = vpack.c.bf16 %v3382_v7, %v3381_v26 }
 0x7c9   :  { %v3401_v29 = vpack.c.bf16 %v3380_v30, %v3379_v14 }
 0x7cb   :  { %v5454_v23 = vpop.f32.mrb[232].mxu1  ;;  %5496 = vmatprep.mubr.bf16.mxu0 %v3401_v29 }
 0x7cc   :  { %v3328_v34 = vpop.f32.mrb[233].mxu1  ;;  %5497 = vmatmul.mubr.bf16.gmra.mrb[228].mxu0 %v3402_v60  ;;  %v3385_v45 = vmax.f32 %v5454_v23, 0.0 }
 0x7cd   :  { %v5455_v3 = vpop.f32.mrb[234].mxu1  ;;  %v3383_v36 = vmax.f32 %v3328_v34, 0.0 }
 0x7ce   :  { %v3386_v48 = vmax.f32 %v5455_v3, 0.0  ;;  %v3331_v0 = vpop.f32.mrb[235].mxu1 }
 0x7cf   :  { %v3384_v27 = vmax.f32 %v3331_v0, 0.0 }
 0x7d0   :  { %v3404_v41 = vpack.c.bf16 %v3386_v48, %v3385_v45 }
 0x7d1   :  { %v3403_v42 = vpack.c.bf16 %v3384_v27, %v3383_v36 }
 0x7d3   :  { %5500 = vmatprep.mubr.bf16.mxu0 %v3403_v42 }
 0x7d4   :  { %5501 = vmatmul.mubr.bf16.gmra.mrb[232].mxu0 %v3404_v41 }
 0x7d6   :  { %v5458_v38 = vpop.f32.mrb[236].mxu1 }
 0x7d7   :  { %v3344_v11 = vpop.f32.mrb[237].mxu1  ;;  %v3389_v10 = vmax.f32 %v5458_v38, 0.0 }
 0x7d8   :  { %v5459_v46 = vpop.f32.mrb[238].mxu1  ;;  %v3387_v40 = vmax.f32 %v3344_v11, 0.0 }
 0x7d9   :  { %v3390_v28 = vmax.f32 %v5459_v46, 0.0  ;;  %v3347_v16 = vpop.f32.mrb[239].mxu1 }
 0x7da   :  { %v3388_v39 = vmax.f32 %v3347_v16, 0.0 }
 0x7db   :  { %v3406_v2 = vpack.c.bf16 %v3390_v28, %v3389_v10 }
 0x7dc   :  { %v3405_v37 = vpack.c.bf16 %v3388_v39, %v3387_v40 }
 0x7de   :  { %5504 = vmatprep.mubr.bf16.mxu0 %v3405_v37 }
 0x7df   :  { %5505 = vmatmul.mubr.bf16.gmra.mrb[236].mxu0 %v3406_v2 }
 0x877   :  { %v5478_v58 = vpop.f32.mrb[208].mxu0 }
 0x878   :  { %v3506_v12 = vpop.f32.mrb[209].mxu0  ;;  %v3635_v9 = vmax.f32 %v5478_v58, 0.0 }
 0x879   :  { %v5479_v63 = vpop.f32.mrb[210].mxu0  ;;  %v3633_v21 = vmax.f32 %v3506_v12, 0.0 }
 0x87a   :  { %v3636_v44 = vmax.f32 %v5479_v63, 0.0  ;;  %v3509_v57 = vpop.f32.mrb[211].mxu0 }
 0x87b   :  { %v3634_v52 = vmax.f32 %v3509_v57, 0.0 }
 0x87c   :  { %v3666_v61 = vpack.c.bf16 %v3636_v44, %v3635_v9 }
 0x87d   :  { %v3665_v35 = vpack.c.bf16 %v3634_v52, %v3633_v21 }
 0x87f   :  { %v5482_v62 = vpop.f32.mrb[212].mxu0  ;;  %5524 = vmatprep.mubr.bf16.mxu1 %v3665_v35 }
 0x880   :  { %v3522_v54 = vpop.f32.mrb[213].mxu0  ;;  %5525 = vmatmul.mubr.bf16.vlgmr.msra.gmra.mrb[240].mxu1 %v3666_v61  ;;  %v3639_v5 = vmax.f32 %v5482_v62, 0.0 }
 0x881   :  { %v5483_v17 = vpop.f32.mrb[214].mxu0  ;;  %v3637_v47 = vmax.f32 %v3522_v54, 0.0 }
 0x882   :  { %v3640_v19 = vmax.f32 %v5483_v17, 0.0  ;;  %v3525_v53 = vpop.f32.mrb[215].mxu0 }
 0x883   :  { %v3638_v15 = vmax.f32 %v3525_v53, 0.0 }
 0x884   :  { %v3668_v50 = vpack.c.bf16 %v3640_v19, %v3639_v5 }
 0x885   :  { %v3667_v56 = vpack.c.bf16 %v3638_v15, %v3637_v47  ;;  %v5748_v47 = vld [vmem:[%s7212_s3 + $0x38] sm:$0xff]  }
 0x886   :  { %5570 = vmatprep.subr.bf16.mxu0 %v5748_v47 }
 0x887   :  { %v5486_v4 = vpop.f32.mrb[216].mxu0  ;;  %5528 = vmatprep.mubr.bf16.mxu1 %v3667_v56  ;;  %5571 = vmatpush3.bf16.msra.mxu0 %v5748_v47 }
 0x888   :  { %v3538_v8 = vpop.f32.mrb[217].mxu0  ;;  %5529 = vmatmul.mubr.bf16.gmra.mrb[244].mxu1 %v3668_v50  ;;  %v3643_v18 = vmax.f32 %v5486_v4, 0.0 }
 0x889   :  { %v5487_v33 = vpop.f32.mrb[218].mxu0  ;;  %v3641_v31 = vmax.f32 %v3538_v8, 0.0 }
 0x88a   :  { %v3644_v32 = vmax.f32 %v5487_v33, 0.0  ;;  %v3541_v59 = vpop.f32.mrb[219].mxu0 }
 0x88b   :  { %v3642_v24 = vmax.f32 %v3541_v59, 0.0 }
 0x88c   :  { %v3670_v13 = vpack.c.bf16 %v3644_v32, %v3643_v18 }
 0x88d   :  { %v3669_v26 = vpack.c.bf16 %v3642_v24, %v3641_v31 }
 0x88f   :  { %v5490_v7 = vpop.f32.mrb[220].mxu0  ;;  %5532 = vmatprep.mubr.bf16.mxu1 %v3669_v26 }
 0x890   :  { %v3554_v25 = vpop.f32.mrb[221].mxu0  ;;  %5533 = vmatmul.mubr.bf16.gmra.mrb[248].mxu1 %v3670_v13  ;;  %v3647_v30 = vmax.f32 %v5490_v7, 0.0 }
 0x891   :  { %v5491_v14 = vpop.f32.mrb[222].mxu0  ;;  %v3645_v23 = vmax.f32 %v3554_v25, 0.0 }
 0x892   :  { %v3648_v60 = vmax.f32 %v5491_v14, 0.0  ;;  %v3557_v29 = vpop.f32.mrb[223].mxu0 }
 0x893   :  { %v3646_v34 = vmax.f32 %v3557_v29, 0.0 }
 0x894   :  { %v3672_v3 = vpack.c.bf16 %v3648_v60, %v3647_v30 }
 0x895   :  { %v3671_v45 = vpack.c.bf16 %v3646_v34, %v3645_v23 }
 0x897   :  { %v5494_v48 = vpop.f32.mrb[224].mxu0  ;;  %5536 = vmatprep.mubr.bf16.mxu1 %v3671_v45 }
 0x898   :  { %v3570_v0 = vpop.f32.mrb[225].mxu0  ;;  %5537 = vmatmul.mubr.bf16.gmra.mrb[252].mxu1 %v3672_v3  ;;  %v3651_v27 = vmax.f32 %v5494_v48, 0.0 }
 0x899   :  { %v5495_v36 = vpop.f32.mrb[226].mxu0  ;;  %v3649_v38 = vmax.f32 %v3570_v0, 0.0 }
 0x89a   :  { %v3652_v41 = vmax.f32 %v5495_v36, 0.0  ;;  %v3573_v42 = vpop.f32.mrb[227].mxu0 }
 0x89b   :  { %v3650_v11 = vmax.f32 %v3573_v42, 0.0 }
 0x89c   :  { %v3674_v46 = vpack.c.bf16 %v3652_v41, %v3651_v27 }
 0x89d   :  { %v3673_v10 = vpack.c.bf16 %v3650_v11, %v3649_v38 }
 0x89f   :  { %v5498_v28 = vpop.f32.mrb[228].mxu0  ;;  %5540 = vmatprep.mubr.bf16.mxu1 %v3673_v10 }
 0x8a0   :  { %v3586_v16 = vpop.f32.mrb[229].mxu0  ;;  %5541 = vmatmul.mubr.bf16.gmra.mrb[0].mxu1 %v3674_v46  ;;  %v3655_v39 = vmax.f32 %v5498_v28, 0.0 }
 0x8a1   :  { %v5499_v40 = vpop.f32.mrb[230].mxu0  ;;  %v3653_v51 = vmax.f32 %v3586_v16, 0.0 }
 0x8a2   :  { %v3656_v2 = vmax.f32 %v5499_v40, 0.0  ;;  %v3589_v37 = vpop.f32.mrb[231].mxu0 }
 0x8a3   :  { %v3654_v43 = vmax.f32 %v3589_v37, 0.0 }
 0x8a4   :  { %v3676_v55 = vpack.c.bf16 %v3656_v2, %v3655_v39 }
 0x8a5   :  { %v3675_v6 = vpack.c.bf16 %v3654_v43, %v3653_v51 }
 0x8a7   :  { %v5502_v1 = vpop.f32.mrb[232].mxu0  ;;  %5544 = vmatprep.mubr.bf16.mxu1 %v3675_v6 }
 0x8a8   :  { %v3602_v20 = vpop.f32.mrb[233].mxu0  ;;  %5545 = vmatmul.mubr.bf16.gmra.mrb[4].mxu1 %v3676_v55  ;;  %v3659_v49 = vmax.f32 %v5502_v1, 0.0 }
 0x8a9   :  { %v5503_v22 = vpop.f32.mrb[234].mxu0  ;;  %v3657_v63 = vmax.f32 %v3602_v20, 0.0 }
 0x8aa   :  { %v3660_v58 = vmax.f32 %v5503_v22, 0.0  ;;  %v3605_v12 = vpop.f32.mrb[235].mxu0 }
 0x8ab   :  { %v3658_v9 = vmax.f32 %v3605_v12, 0.0 }
 0x8ac   :  { %v3678_v44 = vpack.c.bf16 %v3660_v58, %v3659_v49 }
 0x8ad   :  { %v3677_v57 = vpack.c.bf16 %v3658_v9, %v3657_v63 }
 0x8af   :  { %5548 = vmatprep.mubr.bf16.mxu1 %v3677_v57 }
 0x8b0   :  { %5549 = vmatmul.mubr.bf16.gmra.mrb[8].mxu1 %v3678_v44 }
 0x8b2   :  { %v5506_v21 = vpop.f32.mrb[236].mxu0 }
 0x8b3   :  { %v3618_v52 = vpop.f32.mrb[237].mxu0  ;;  %v3663_v35 = vmax.f32 %v5506_v21, 0.0 }
 0x8b4   :  { %v5507_v61 = vpop.f32.mrb[238].mxu0  ;;  %v3661_v17 = vmax.f32 %v3618_v52, 0.0 }
 0x8b5   :  { %v3664_v62 = vmax.f32 %v5507_v61, 0.0  ;;  %v3621_v54 = vpop.f32.mrb[239].mxu0 }
 0x8b6   :  { %v3662_v5 = vmax.f32 %v3621_v54, 0.0 }
 0x8b7   :  { %v3680_v19 = vpack.c.bf16 %v3664_v62, %v3663_v35 }
 0x8b8   :  { %v3679_v53 = vpack.c.bf16 %v3662_v5, %v3661_v17 }
 0x8ba   :  { %5552 = vmatprep.mubr.bf16.mxu1 %v3679_v53 }
 0x8bb   :  { %5553 = vmatmul.mubr.bf16.gmra.mrb[12].mxu1 %v3680_v19 }
 0x953   :  { %v5526_v15 = vpop.f32.mrb[240].mxu1 }
 0x954   :  { %v3780_v50 = vpop.f32.mrb[241].mxu1  ;;  %v3909_v4 = vmax.f32 %v5526_v15, 0.0 }
 0x955   :  { %v5527_v56 = vpop.f32.mrb[242].mxu1  ;;  %v3907_v18 = vmax.f32 %v3780_v50, 0.0 }
 0x956   :  { %v3910_v8 = vmax.f32 %v5527_v56, 0.0  ;;  %v3783_v33 = vpop.f32.mrb[243].mxu1 }
 0x957   :  { %v3908_v32 = vmax.f32 %v3783_v33, 0.0 }
 0x958   :  { %v3940_v59 = vpack.c.bf16 %v3910_v8, %v3909_v4 }
 0x959   :  { %v3939_v31 = vpack.c.bf16 %v3908_v32, %v3907_v18 }
 0x95b   :  { %v5530_v24 = vpop.f32.mrb[244].mxu1  ;;  %5572 = vmatprep.mubr.bf16.mxu0 %v3939_v31 }
 0x95c   :  { %v3796_v13 = vpop.f32.mrb[245].mxu1  ;;  %5573 = vmatmul.mubr.bf16.vlgmr.msra.gmra.mrb[240].mxu0 %v3940_v59  ;;  %v3913_v7 = vmax.f32 %v5530_v24, 0.0 }
 0x95d   :  { %v5531_v26 = vpop.f32.mrb[246].mxu1  ;;  %v3911_v30 = vmax.f32 %v3796_v13, 0.0 }
 0x95e   :  { %v3914_v25 = vmax.f32 %v5531_v26, 0.0  ;;  %v3799_v14 = vpop.f32.mrb[247].mxu1 }
 0x95f   :  { %v3912_v60 = vmax.f32 %v3799_v14, 0.0 }
 0x960   :  { %v3942_v29 = vpack.c.bf16 %v3914_v25, %v3913_v7 }
 0x961   :  { %v3941_v23 = vpack.c.bf16 %v3912_v60, %v3911_v30  ;;  %v7079_v30 = vld [vmem:[%s7213_s4] ss:$0 sm:$0xff] }
 0x963   :  { %v5534_v34 = vpop.f32.mrb[248].mxu1  ;;  %5576 = vmatprep.mubr.bf16.mxu0 %v3941_v23 }
 0x964   :  { %v3812_v3 = vpop.f32.mrb[249].mxu1  ;;  %5577 = vmatmul.mubr.bf16.gmra.mrb[244].mxu0 %v3942_v29  ;;  %v3917_v48 = vmax.f32 %v5534_v34, 0.0 }
 0x965   :  { %v5535_v45 = vpop.f32.mrb[250].mxu1  ;;  %v3915_v27 = vmax.f32 %v3812_v3, 0.0 }
 0x966   :  { %v3918_v0 = vmax.f32 %v5535_v45, 0.0  ;;  %v3815_v36 = vpop.f32.mrb[251].mxu1 }
 0x967   :  { %v3916_v41 = vmax.f32 %v3815_v36, 0.0 }
 0x968   :  { %v3944_v42 = vpack.c.bf16 %v3918_v0, %v3917_v48 }
 0x969   :  { %v3943_v38 = vpack.c.bf16 %v3916_v41, %v3915_v27 }
 0x96b   :  { %v5538_v11 = vpop.f32.mrb[252].mxu1  ;;  %5580 = vmatprep.mubr.bf16.mxu0 %v3943_v38 }
 0x96c   :  { %v3828_v46 = vpop.f32.mrb[253].mxu1  ;;  %5581 = vmatmul.mubr.bf16.gmra.mrb[248].mxu0 %v3944_v42  ;;  %v3921_v28 = vmax.f32 %v5538_v11, 0.0 }
 0x96d   :  { %v5539_v10 = vpop.f32.mrb[254].mxu1  ;;  %v3919_v39 = vmax.f32 %v3828_v46, 0.0 }
 0x96e   :  { %v3922_v16 = vmax.f32 %v5539_v10, 0.0  ;;  %v3831_v40 = vpop.f32.mrb[255].mxu1 }
 0x96f   :  { %v3920_v2 = vmax.f32 %v3831_v40, 0.0 }
 0x970   :  { %v3946_v37 = vpack.c.bf16 %v3922_v16, %v3921_v28 }
 0x971   :  { %v3945_v51 = vpack.c.bf16 %v3920_v2, %v3919_v39 }
 0x973   :  { %v5542_v43 = vpop.f32.mrb[0].mxu1  ;;  %5584 = vmatprep.mubr.bf16.mxu0 %v3945_v51 }
 0x974   :  { %v3844_v55 = vpop.f32.mrb[1].mxu1  ;;  %5585 = vmatmul.mubr.bf16.gmra.mrb[252].mxu0 %v3946_v37  ;;  %v3925_v1 = vmax.f32 %v5542_v43, 0.0 }
 0x975   :  { %v5543_v6 = vpop.f32.mrb[2].mxu1  ;;  %v3923_v49 = vmax.f32 %v3844_v55, 0.0 }
 0x976   :  { %v3926_v20 = vmax.f32 %v5543_v6, 0.0  ;;  %v3847_v22 = vpop.f32.mrb[3].mxu1 }
 0x977   :  { %v3924_v58 = vmax.f32 %v3847_v22, 0.0 }
 0x978   :  { %v3948_v12 = vpack.c.bf16 %v3926_v20, %v3925_v1 }
 0x979   :  { %v3947_v63 = vpack.c.bf16 %v3924_v58, %v3923_v49 }
 0x97b   :  { %v5546_v9 = vpop.f32.mrb[4].mxu1  ;;  %5588 = vmatprep.mubr.bf16.mxu0 %v3947_v63 }
 0x97c   :  { %v3860_v44 = vpop.f32.mrb[5].mxu1  ;;  %5589 = vmatmul.mubr.bf16.gmra.mrb[0].mxu0 %v3948_v12  ;;  %v3929_v21 = vmax.f32 %v5546_v9, 0.0 }
 0x97d   :  { %v5547_v57 = vpop.f32.mrb[6].mxu1  ;;  %v3927_v35 = vmax.f32 %v3860_v44, 0.0 }
 0x97e   :  { %v3930_v52 = vmax.f32 %v5547_v57, 0.0  ;;  %v3863_v61 = vpop.f32.mrb[7].mxu1 }
 0x97f   :  { %v3928_v62 = vmax.f32 %v3863_v61, 0.0 }
 0x980   :  { %v3950_v54 = vpack.c.bf16 %v3930_v52, %v3929_v21 }
 0x981   :  { %v3949_v17 = vpack.c.bf16 %v3928_v62, %v3927_v35 }
 0x983   :  { %v5550_v5 = vpop.f32.mrb[8].mxu1  ;;  %5592 = vmatprep.mubr.bf16.mxu0 %v3949_v17 }
 0x984   :  { %v3876_v19 = vpop.f32.mrb[9].mxu1  ;;  %5593 = vmatmul.mubr.bf16.gmra.mrb[4].mxu0 %v3950_v54  ;;  %v3933_v47 = vmax.f32 %v5550_v5, 0.0 }
 0x985   :  { %v5551_v53 = vpop.f32.mrb[10].mxu1  ;;  %v3931_v56 = vmax.f32 %v3876_v19, 0.0 }
 0x986   :  { %v3934_v15 = vmax.f32 %v5551_v53, 0.0  ;;  %v3879_v50 = vpop.f32.mrb[11].mxu1 }
 0x987   :  { %v3932_v4 = vmax.f32 %v3879_v50, 0.0 }
 0x988   :  { %v3952_v8 = vpack.c.bf16 %v3934_v15, %v3933_v47 }
 0x989   :  { %v3951_v33 = vpack.c.bf16 %v3932_v4, %v3931_v56 }
 0x98b   :  { %5596 = vmatprep.mubr.bf16.mxu0 %v3951_v33 }
 0x98c   :  { %5597 = vmatmul.mubr.bf16.gmra.mrb[8].mxu0 %v3952_v8 }
 0x98e   :  { %v5554_v18 = vpop.f32.mrb[12].mxu1 }
 0x98f   :  { %v3892_v32 = vpop.f32.mrb[13].mxu1  ;;  %v3937_v31 = vmax.f32 %v5554_v18, 0.0 }
 0x990   :  { %v5555_v59 = vpop.f32.mrb[14].mxu1  ;;  %v3935_v26 = vmax.f32 %v3892_v32, 0.0 }
 0x991   :  { %v3938_v24 = vmax.f32 %v5555_v59, 0.0  ;;  %v3895_v13 = vpop.f32.mrb[15].mxu1 }
 0x992   :  { %v3936_v7 = vmax.f32 %v3895_v13, 0.0 }
 0x993   :  { %v3954_v25 = vpack.c.bf16 %v3938_v24, %v3937_v31 }
 0x994   :  { %v3953_v14 = vpack.c.bf16 %v3936_v7, %v3935_v26 }
 0x996   :  { %5600 = vmatprep.mubr.bf16.mxu0 %v3953_v14 }
 0x997   :  { %5601 = vmatmul.mubr.bf16.gmra.mrb[12].mxu0 %v3954_v25 }
 0xa2f   :  { %v5574_v60 = vpop.f32.mrb[240].mxu0 }
 0xa30   :  { %v4069_v29 = vadd.f32 %v5574_v60, %v7079_v30  ;;  %v4060_v23 = vpop.f32.mrb[241].mxu0 }
 0xa31   :  { %v4061_v34 = vadd.f32 %v7079_v30, %v4060_v23  ;;  %v5575_v3 = vpop.f32.mrb[242].mxu0 }
 0xa32   :  { %4189 = vst [vmem:[%s7214_s5 + $0x10] sm:$0xff] %v4069_v29  ;;  %v4072_v45 = vadd.f32 %v5575_v3, %v7079_v30  ;;  %v4063_v48 = vpop.f32.mrb[243].mxu0 }
 0xa33   :  { %4187 = vst [vmem:[%s7214_s5] sm:$0xff] %v4061_v34  ;;  %v4064_v0 = vadd.f32 %v7079_v30, %v4063_v48 }
 0xa34   :  { %4190 = vst [vmem:[%s7214_s5 + $0x18] sm:$0xff] %v4072_v45 }
 0xa35   :  { %4188 = vst [vmem:[%s7214_s5 + $0x8] sm:$0xff] %v4064_v0 }
 0xa37   :  { %v5578_v36 = vpop.f32.mrb[244].mxu0 }
 0xa38   :  { %v4085_v27 = vadd.f32 %v5578_v36, %v7079_v30  ;;  %v4076_v41 = vpop.f32.mrb[245].mxu0 }
 0xa39   :  { %v4077_v42 = vadd.f32 %v7079_v30, %v4076_v41  ;;  %v5579_v38 = vpop.f32.mrb[246].mxu0 }
 0xa3a   :  { %4193 = vst [vmem:[%s7214_s5 + $0x30] sm:$0xff] %v4085_v27  ;;  %v4088_v11 = vadd.f32 %v5579_v38, %v7079_v30  ;;  %v4079_v46 = vpop.f32.mrb[247].mxu0 }
 0xa3b   :  { %4191 = vst [vmem:[%s7214_s5 + $0x20] sm:$0xff] %v4077_v42  ;;  %v4080_v10 = vadd.f32 %v7079_v30, %v4079_v46 }
 0xa3c   :  { %4194 = vst [vmem:[%s7214_s5 + $0x38] sm:$0xff] %v4088_v11 }
 0xa3d   :  { %4192 = vst [vmem:[%s7214_s5 + $0x28] sm:$0xff] %v4080_v10 }
 0xa3f   :  { %v5582_v28 = vpop.f32.mrb[248].mxu0 }
 0xa40   :  { %v4101_v16 = vadd.f32 %v5582_v28, %v7079_v30  ;;  %v4092_v40 = vpop.f32.mrb[249].mxu0 }
 0xa41   :  { %v4093_v39 = vadd.f32 %v7079_v30, %v4092_v40  ;;  %v5583_v2 = vpop.f32.mrb[250].mxu0 }
 0xa42   :  { %4197 = vst [vmem:[%s7214_s5 + $0x50] sm:$0xff] %v4101_v16  ;;  %v4104_v37 = vadd.f32 %v5583_v2, %v7079_v30  ;;  %v4095_v51 = vpop.f32.mrb[251].mxu0 }
 0xa43   :  { %4195 = vst [vmem:[%s7214_s5 + $0x40] sm:$0xff] %v4093_v39  ;;  %v4096_v43 = vadd.f32 %v7079_v30, %v4095_v51 }
 0xa44   :  { %4198 = vst [vmem:[%s7214_s5 + $0x58] sm:$0xff] %v4104_v37 }
 0xa45   :  { %4196 = vst [vmem:[%s7214_s5 + $0x48] sm:$0xff] %v4096_v43 }
 0xa47   :  { %v5586_v55 = vpop.f32.mrb[252].mxu0 }
 0xa48   :  { %v4117_v6 = vadd.f32 %v5586_v55, %v7079_v30  ;;  %v4108_v1 = vpop.f32.mrb[253].mxu0 }
 0xa49   :  { %v4109_v20 = vadd.f32 %v7079_v30, %v4108_v1  ;;  %v5587_v22 = vpop.f32.mrb[254].mxu0 }
 0xa4a   :  { %4201 = vst [vmem:[%s7214_s5 + $0x70] sm:$0xff] %v4117_v6  ;;  %v4120_v49 = vadd.f32 %v5587_v22, %v7079_v30  ;;  %v4111_v58 = vpop.f32.mrb[255].mxu0 }
 0xa4b   :  { %4199 = vst [vmem:[%s7214_s5 + $0x60] sm:$0xff] %v4109_v20  ;;  %v4112_v12 = vadd.f32 %v7079_v30, %v4111_v58 }
 0xa4c   :  { %4202 = vst [vmem:[%s7214_s5 + $0x78] sm:$0xff] %v4120_v49 }
 0xa4d   :  { %4200 = vst [vmem:[%s7214_s5 + $0x68] sm:$0xff] %v4112_v12 }
 0xa4f   :  { %v5590_v63 = vpop.f32.mrb[0].mxu0 }
 0xa50   :  { %v4133_v9 = vadd.f32 %v5590_v63, %v7079_v30  ;;  %v4124_v44 = vpop.f32.mrb[1].mxu0 }
 0xa51   :  { %v4125_v57 = vadd.f32 %v7079_v30, %v4124_v44  ;;  %v5591_v21 = vpop.f32.mrb[2].mxu0 }
 0xa52   :  { %4205 = vst [vmem:[%s7214_s5 + $0x90] sm:$0xff] %v4133_v9  ;;  %v4136_v52 = vadd.f32 %v5591_v21, %v7079_v30  ;;  %v4127_v61 = vpop.f32.mrb[3].mxu0 }
 0xa53   :  { %4203 = vst [vmem:[%s7214_s5 + $0x80] sm:$0xff] %v4125_v57  ;;  %v4128_v35 = vadd.f32 %v7079_v30, %v4127_v61 }
 0xa54   :  { %4206 = vst [vmem:[%s7214_s5 + $0x98] sm:$0xff] %v4136_v52 }
 0xa55   :  { %4204 = vst [vmem:[%s7214_s5 + $0x88] sm:$0xff] %v4128_v35 }
 0xa57   :  { %v5594_v62 = vpop.f32.mrb[4].mxu0 }
 0xa58   :  { %v4149_v54 = vadd.f32 %v5594_v62, %v7079_v30  ;;  %v4140_v17 = vpop.f32.mrb[5].mxu0 }
 0xa59   :  { %v4141_v5 = vadd.f32 %v7079_v30, %v4140_v17  ;;  %v5595_v19 = vpop.f32.mrb[6].mxu0 }
 0xa5a   :  { %4209 = vst [vmem:[%s7214_s5 + $0xb0] sm:$0xff] %v4149_v54  ;;  %v4152_v53 = vadd.f32 %v5595_v19, %v7079_v30  ;;  %v4143_v47 = vpop.f32.mrb[7].mxu0 }
 0xa5b   :  { %4207 = vst [vmem:[%s7214_s5 + $0xa0] sm:$0xff] %v4141_v5  ;;  %v4144_v15 = vadd.f32 %v7079_v30, %v4143_v47 }
 0xa5c   :  { %4210 = vst [vmem:[%s7214_s5 + $0xb8] sm:$0xff] %v4152_v53 }
 0xa5d   :  { %4208 = vst [vmem:[%s7214_s5 + $0xa8] sm:$0xff] %v4144_v15 }
 0xa5f   :  { %v5598_v50 = vpop.f32.mrb[8].mxu0 }
 0xa60   :  { %v4165_v56 = vadd.f32 %v5598_v50, %v7079_v30  ;;  %v4156_v4 = vpop.f32.mrb[9].mxu0 }
 0xa61   :  { %v4157_v8 = vadd.f32 %v7079_v30, %v4156_v4  ;;  %v5599_v33 = vpop.f32.mrb[10].mxu0 }
 0xa62   :  { %4213 = vst [vmem:[%s7214_s5 + $0xd0] sm:$0xff] %v4165_v56  ;;  %v4168_v18 = vadd.f32 %v5599_v33, %v7079_v30  ;;  %v4159_v32 = vpop.f32.mrb[11].mxu0 }
 0xa63   :  { %4211 = vst [vmem:[%s7214_s5 + $0xc0] sm:$0xff] %v4157_v8  ;;  %v4160_v59 = vadd.f32 %v7079_v30, %v4159_v32 }
 0xa64   :  { %4214 = vst [vmem:[%s7214_s5 + $0xd8] sm:$0xff] %v4168_v18 }
 0xa65   :  { %4212 = vst [vmem:[%s7214_s5 + $0xc8] sm:$0xff] %v4160_v59 }
 0xa6a   :  { %v5602_v31 = vpop.f32.mrb[12].mxu0 }
 0xa6b   :  { %v4181_v24 = vadd.f32 %v5602_v31, %v7079_v30  ;;  %v4172_v13 = vpop.f32.mrb[13].mxu0 }
 0xa6c   :  { %v4173_v26 = vadd.f32 %v7079_v30, %v4172_v13  ;;  %v5603_v7 = vpop.f32.mrb[14].mxu0 }
 0xa6d   :  { %4217 = vst [vmem:[%s7214_s5 + $0xf0] sm:$0xff] %v4181_v24  ;;  %v4184_v25 = vadd.f32 %v5603_v7, %v7079_v30  ;;  %v4175_v14 = vpop.f32.mrb[15].mxu0 }
 0xa6e   :  { %4215 = vst [vmem:[%s7214_s5 + $0xe0] sm:$0xff] %v4173_v26  ;;  %v4176_v60 = vadd.f32 %v7079_v30, %v4175_v14 }
 0xa6f   :  { %4218 = vst [vmem:[%s7214_s5 + $0xf8] sm:$0xff] %v4184_v25 }
 0xa70   :  { %4216 = vst [vmem:[%s7214_s5 + $0xe8] sm:$0xff] %v4176_v60 }

</bundles_post_ra>
